<compile_context>
chip_gen: v7x
topology: tpu7x:2x2x1
jax: 0.10.0
libtpu: 0.0.40
codegen_flags: <defaults>
</compile_context>

<pallas_src>
import jax
import jax.numpy as jnp
from jax import lax
from jax.experimental import pallas as pl
from jax.experimental.pallas import tpu as pltpu


_MASK_VALUE = -1e30  # finite "minus infinity" for the causal mask


# ---------------------------------------------------------------------------
# Helpers (run inside the kernels)
# ---------------------------------------------------------------------------
def _layernorm(v, scale, shift, out_dtype, eps=1e-5):
    """LayerNorm with f32 statistics (unbiased=False), returns out_dtype."""
    vf = v.astype(jnp.float32)
    mean = jnp.mean(vf, axis=-1, keepdims=True)
    var = jnp.mean(jnp.square(vf - mean), axis=-1, keepdims=True)
    y = (vf - mean) / jnp.sqrt(var + eps)
    y = y * scale.astype(jnp.float32) + shift.astype(jnp.float32)
    return y.astype(out_dtype)


def _gelu_tanh(v):
    c = 0.7978845608028654  # sqrt(2/pi)
    return 0.5 * v * (1.0 + jnp.tanh(c * (v + 0.044715 * (v * v * v))))


# ---------------------------------------------------------------------------
# Kernel A: LN1 + per-head QKV projection + flash attention
#   grid = (batch b, head h, query tile qi, kv tile ki)
# ---------------------------------------------------------------------------
def _attention_kernel(
    xq_ref,                       # (1, tq, D)  query-tile slab of x
    xk_ref,                       # (1, tk, D)  kv-tile slab of x (qi==0 only)
    ln1_s_ref, ln1_b_ref,         # (1, D)
    wq_ref, wk_ref, wv_ref,       # (1, D, hd)  per-head projection weights
    ctx_ref,                      # (1, 1, tq, hd)  per-head context output
    q_sc,                         # (tq, hd)  cached, pre-scaled query
    k_sc, v_sc,                   # (T, hd)   per-head K/V cache
    m_sc, l_sc,                   # (tq, 1)   online-softmax state (f32)
    acc_sc,                       # (tq, hd)  context accumulator (f32)
):
    qi = pl.program_id(2)
    ki = pl.program_id(3)
    num_kv = pl.num_programs(3)

    tq = xq_ref.shape[1]
    tk = xk_ref.shape[1]
    head_dim = wq_ref.shape[2]
    cdt = xq_ref.dtype                      # compute dtype (bf16 or f32)
    scale = float(head_dim) ** -0.5

    # ---- first query tile of this head: project K/V for this kv tile and
    #      cache in VMEM (unconditional on the causal band -- later query
    #      tiles need every kv tile). ---------------------------------------
    @pl.when(qi == 0)
    def _fill_kv_cache():
        hk = _layernorm(xk_ref[0], ln1_s_ref[0], ln1_b_ref[0], cdt)
        off = pl.multiple_of(ki * tk, tk)
        k_sc[pl.ds(off, tk), :] = jnp.dot(
            hk, wk_ref[0], preferred_element_type=jnp.float32).astype(k_sc.dtype)
        v_sc[pl.ds(off, tk), :] = jnp.dot(
            hk, wv_ref[0], preferred_element_type=jnp.float32).astype(v_sc.dtype)

    # ---- first kv tile of this (head, query tile): reset softmax state and
    #      compute the pre-scaled query block. ------------------------------
    @pl.when(ki == 0)
    def _init_query():
        m_sc[...] = jnp.full_like(m_sc, _MASK_VALUE)
        l_sc[...] = jnp.zeros_like(l_sc)
        acc_sc[...] = jnp.zeros_like(acc_sc)
        hq = _layernorm(xq_ref[0], ln1_s_ref[0], ln1_b_ref[0], cdt)
        q = jnp.dot(hq, wq_ref[0], preferred_element_type=jnp.float32) * scale
        q_sc[...] = q.astype(q_sc.dtype)

    # ---- online-softmax update (skip tiles fully above the causal band). --
    @pl.when(ki * tk <= qi * tq + (tq - 1))
    def _attend():
        off = pl.multiple_of(ki * tk, tk)
        k = k_sc[pl.ds(off, tk), :]
        v = v_sc[pl.ds(off, tk), :]

        # (tq, hd) x (tk, hd)^T -> (tq, tk), f32 accumulation on the MXU.
        s = lax.dot_general(q_sc[...], k, (((1,), (1,)), ((), ())),
                            preferred_element_type=jnp.float32)

        # Tile-local causal mask from program ids (finite negative fill).
        q_pos = qi * tq + lax.broadcasted_iota(jnp.int32, (tq, tk), 0)
        k_pos = ki * tk + lax.broadcasted_iota(jnp.int32, (tq, tk), 1)
        s = jnp.where(k_pos > q_pos, _MASK_VALUE, s)

        m_prev = m_sc[...]
        m_new = jnp.maximum(m_prev, jnp.max(s, axis=-1, keepdims=True))
        alpha = jnp.exp(m_prev - m_new)
        p = jnp.exp(s - m_new)
        l_sc[...] = alpha * l_sc[...] + jnp.sum(p, axis=-1, keepdims=True)
        acc_sc[...] = alpha * acc_sc[...] + jnp.dot(
            p.astype(cdt), v, preferred_element_type=jnp.float32)
        m_sc[...] = m_new

    # ---- last kv tile: normalize and emit this head's context block. ------
    @pl.when(ki == num_kv - 1)
    def _finalize():
        ctx = acc_sc[...] * pl.reciprocal(l_sc[...], approx=True)
        ctx_ref[0, 0] = ctx.astype(ctx_ref.dtype)


# ---------------------------------------------------------------------------
# Kernel B: out-projection + residual + LN2 + FFN + residual
#   grid = (batch b, row tile ti)
# ---------------------------------------------------------------------------
def _output_ffn_kernel(
    x_ref,                        # (1, ts, D)   residual-stream tile of x
    ctx_ref,                      # (1, H, ts, hd)  per-head context
    wo_ref,                       # (H, hd, D)   per-head out-proj rows
    bo_ref,                       # (1, D)
    ln2_s_ref, ln2_b_ref,         # (1, D)
    w1_ref, b1_ref,               # (D, 4D), (1, 4D)
    w2_ref, b2_ref,               # (4D, D), (1, D)
    o_ref,                        # (1, ts, D)
):
    cdt = x_ref.dtype
    ts, D = x_ref.shape[1], x_ref.shape[2]
    H = ctx_ref.shape[1]

    # Out-projection: sum over heads of ctx_h @ Wo_h (static unrolled loop).
    attn = jnp.zeros((ts, D), jnp.float32)
    for h in range(H):
        attn = attn + jnp.dot(ctx_ref[0, h], wo_ref[h],
                              preferred_element_type=jnp.float32)

    # Residual 1 (f32 residual stream inside the kernel).
    x1 = x_ref[0].astype(jnp.float32) + attn + bo_ref[0].astype(jnp.float32)

    # LN2 + FFN (Linear -> tanh-GELU -> Linear) + residual 2.
    h2 = _layernorm(x1, ln2_s_ref[0], ln2_b_ref[0], cdt)
    f = jnp.dot(h2, w1_ref[...],
                preferred_element_type=jnp.float32) + b1_ref[0].astype(jnp.float32)
    f = _gelu_tanh(f)
    f = jnp.dot(f.astype(cdt), w2_ref[...],
                preferred_element_type=jnp.float32) + b2_ref[0].astype(jnp.float32)

    o_ref[0] = (x1 + f).astype(o_ref.dtype)


# ---------------------------------------------------------------------------
# Wrapper
# ---------------------------------------------------------------------------
def transformer_block(x, params, *, num_heads, tq=None, tk=None, ts=None,
                      vmem_limit_bytes=64 * 1024 * 1024):
    B, T, D = x.shape
    H = num_heads
    assert D % H == 0, "emb_dim must be divisible by num_heads"
    hd = D // H
    H4 = 4 * D

    if tq is None:
        tq = min(128, T)
    if tk is None:
        tk = min(128, T)
    if ts is None:
        ts = min(256, T)
    assert T % tq == 0 and T % tk == 0 and T % ts == 0
    assert (tq % 8 == 0 or tq == T) and (tk % 8 == 0 or tk == T)
    assert (ts % 8 == 0 or ts == T)
    nq, nk, nt = T // tq, T // tk, T // ts

    # Pre-split the projection weights per head OUTSIDE the kernel (free XLA
    # reshape/transpose) so the kernels never slice the lane axis.
    wq_h = params["wq"].reshape(D, H, hd).transpose(1, 0, 2)   # (H, D, hd)
    wk_h = params["wk"].reshape(D, H, hd).transpose(1, 0, 2)
    wv_h = params["wv"].reshape(D, H, hd).transpose(1, 0, 2)
    wo_h = params["wo"].reshape(H, hd, D)                      # (H, hd, D)

    def run(single_buffer):
        def const_a(shape):                       # constants for kernel A
            zeros = (0,) * len(shape)
            if single_buffer:
                return pl.BlockSpec(shape, lambda b, h, q, k: zeros,
                                    pipeline_mode=pl.Buffered(1))
            return pl.BlockSpec(shape, lambda b, h, q, k: zeros)

        def const_b(shape):                       # constants for kernel B
            zeros = (0,) * len(shape)
            if single_buffer:
                return pl.BlockSpec(shape, lambda b, t: zeros,
                                    pipeline_mode=pl.Buffered(1))
            return pl.BlockSpec(shape, lambda b, t: zeros)

        def per_head_w():
            return pl.BlockSpec((1, D, hd), lambda b, h, q, k: (h, 0, 0))

        # ---------------- Kernel A: attention -> per-head context ----------
        attn_in_specs = [
            pl.BlockSpec((1, tq, D), lambda b, h, q, k: (b, q, 0)),     # x (q)
            # x (kv): only needed while qi == 0 (cache fill); pin otherwise.
            pl.BlockSpec((1, tk, D),
                         lambda b, h, q, k: (b, jnp.where(q == 0, k, 0), 0)),
            const_a((1, D)), const_a((1, D)),                           # ln1
            per_head_w(), per_head_w(), per_head_w(),                   # Wq/Wk/Wv
        ]
        attn_out_spec = pl.BlockSpec((1, 1, tq, hd),
                                     lambda b, h, q, k: (b, h, q, 0))
        attn_scratch = [
            pltpu.VMEM((tq, hd), x.dtype),       # pre-scaled query tile
            pltpu.VMEM((T, hd), x.dtype),        # per-head K cache
            pltpu.VMEM((T, hd), x.dtype),        # per-head V cache
            pltpu.VMEM((tq, 1), jnp.float32),    # m (running max)
            pltpu.VMEM((tq, 1), jnp.float32),    # l (running denominator)
            pltpu.VMEM((tq, hd), jnp.float32),   # context accumulator
        ]

        ctx = pl.pallas_call(
            _attention_kernel,
            out_shape=jax.ShapeDtypeStruct((B, H, T, hd), x.dtype),
            grid_spec=pltpu.PrefetchScalarGridSpec(
                num_scalar_prefetch=0,
                grid=(B, H, nq, nk),
                in_specs=attn_in_specs,
                out_specs=attn_out_spec,
                scratch_shapes=attn_scratch),
            compiler_params=pltpu.CompilerParams(
                # q/k axes are sequential (per-head K/V cache carried across
                # query tiles); batch and heads are megacore-parallel.
                dimension_semantics=("parallel", "parallel",
                                     "arbitrary", "arbitrary"),
                vmem_limit_bytes=vmem_limit_bytes),
        )(x, x, params["ln1_s"], params["ln1_b"], wq_h, wk_h, wv_h)

        # ---------------- Kernel B: out-proj + residual + LN2 + FFN --------
        ffn_in_specs = [
            pl.BlockSpec((1, ts, D), lambda b, t: (b, t, 0)),           # x
            pl.BlockSpec((1, H, ts, hd), lambda b, t: (b, 0, t, 0)),    # ctx
            const_b((H, hd, D)), const_b((1, D)),                       # Wo, bo
            const_b((1, D)), const_b((1, D)),                           # ln2
            const_b((D, H4)), const_b((1, H4)),                         # W1, b1
            const_b((H4, D)), const_b((1, D)),                          # W2, b2
        ]
        ffn_out_spec = pl.BlockSpec((1, ts, D), lambda b, t: (b, t, 0))

        out = pl.pallas_call(
            _output_ffn_kernel,
            out_shape=jax.ShapeDtypeStruct((B, T, D), x.dtype),
            grid_spec=pltpu.PrefetchScalarGridSpec(
                num_scalar_prefetch=0,
                grid=(B, nt),
                in_specs=ffn_in_specs,
                out_specs=ffn_out_spec,
                scratch_shapes=[]),
            compiler_params=pltpu.CompilerParams(
                dimension_semantics=("parallel", "parallel"),
                vmem_limit_bytes=vmem_limit_bytes),
        )(x, ctx, wo_h, params["bo"], params["ln2_s"], params["ln2_b"],
          params["w1"], params["b1"], params["w2"], params["b2"])
        return out

    try:
        return run(True)
    except Exception:
        # pl.Buffered(1) single-buffering unsupported in this JAX version:
        # fall back to default double-buffered constant blocks.
        return run(False)


# ---------------------------------------------------------------------------
# Pure-JAX reference (mirrors the PyTorch forward, dropout = identity)
# ---------------------------------------------------------------------------
def reference_block(x, p, *, num_heads):
    def ln(v, s, b):
        m = jnp.mean(v, -1, keepdims=True)
        var = jnp.mean((v - m) ** 2, -1, keepdims=True)
        return s[0] * ((v - m) / jnp.sqrt(var + 1e-5)) + b[0]

    B, T, D = x.shape
    hd = D // num_heads
    h = ln(x, p["ln1_s"], p["ln1_b"])
    q = h @ p["wq"]
    k = h @ p["wk"]
    v = h @ p["wv"]
    q = q.reshape(B, T, num_heads, hd).transpose(0, 2, 1, 3)
    k = k.reshape(B, T, num_heads, hd).transpose(0, 2, 1, 3)
    v = v.reshape(B, T, num_heads, hd).transpose(0, 2, 1, 3)
    s = jnp.einsum("bhqd,bhkd->bhqk", q, k) / (hd ** 0.5)
    mask = jnp.triu(jnp.ones((T, T), bool), 1)
    s = jnp.where(mask, -jnp.inf, s)
    w = jax.nn.softmax(s, axis=-1)
    ctx = jnp.einsum("bhqk,bhkd->bhqd", w, v).transpose(0, 2, 1, 3).reshape(B, T, D)
    attn = ctx @ p["wo"] + p["bo"][0]
    x = x + attn
    h2 = ln(x, p["ln2_s"], p["ln2_b"])
    c = (2.0 / jnp.pi) ** 0.5
    f = h2 @ p["w1"] + p["b1"][0]
    f = 0.5 * f * (1 + jnp.tanh(c * (f + 0.044715 * f ** 3)))
    f = f @ p["w2"] + p["b2"][0]
    return x + f


# ---------------------------------------------------------------------------
if __name__ == "__main__":
    # batch, seq (= context_length), emb_dim, heads  (head_dim = 32)
    B, T, D, H = 2, 128, 128, 4
    key = jax.random.PRNGKey(0)
    ks = jax.random.split(key, 10)

    def w(k, shape, s=0.02):
        return (s * jax.random.normal(k, shape)).astype(jnp.float32)

    params = {
        "ln1_s": jnp.ones((1, D), jnp.float32),
        "ln1_b": jnp.zeros((1, D), jnp.float32),
        "wq": w(ks[0], (D, D)),
        "wk": w(ks[1], (D, D)),
        "wv": w(ks[2], (D, D)),
        "wo": w(ks[3], (D, D)),
        "bo": w(ks[4], (1, D)),
        "ln2_s": jnp.ones((1, D), jnp.float32),
        "ln2_b": jnp.zeros((1, D), jnp.float32),
        "w1": w(ks[5], (D, 4 * D)),
        "b1": w(ks[6], (1, 4 * D)),
        "w2": w(ks[7], (4 * D, D)),
        "b2": w(ks[8], (1, D)),
    }
    x = jax.random.normal(ks[9], (B, T, D), jnp.float32)

    # f32 run: exercises multi q-tile / multi kv-tile / causal-skip / 4 heads
    # / K-V cache reuse across query tiles / multi row-tile FFN pass.
    out = jax.block_until_ready(
        transformer_block(x, params, num_heads=H, tq=64, tk=64, ts=64))
    with jax.default_matmul_precision("highest"):
        ref = jax.block_until_ready(reference_block(x, params, num_heads=H))

    assert out.shape == (B, T, D)
    max_err = float(jnp.max(jnp.abs(out - ref)))
    assert jnp.allclose(out, ref, atol=2e-3, rtol=2e-3), (
        f"mismatch vs reference (max abs err {max_err})")

    # bf16 activations/weights path (f32 accumulation inside the kernels).
    x_bf = x.astype(jnp.bfloat16)
    params_bf = {k2: v2.astype(jnp.bfloat16) for k2, v2 in params.items()}
    out_bf = jax.block_until_ready(
        transformer_block(x_bf, params_bf, num_heads=H, tq=64, tk=64, ts=64))
    assert out_bf.shape == (B, T, D) and out_bf.dtype == jnp.bfloat16
    assert bool(jnp.all(jnp.isfinite(out_bf.astype(jnp.float32))))

    print("KERNEL_OK")
</pallas_src>

<mosaic_0001>
module attributes {stable_mosaic.version = 11 : i64} {
  func.func @_attention_kernel(%arg0: i32, %arg1: i32, %arg2: i32, %arg3: i32, %arg4: memref<1x64x128xf32, #tpu.memory_space<vmem>>, %arg5: memref<1x64x128xf32, #tpu.memory_space<vmem>>, %arg6: memref<1x128xf32, #tpu.memory_space<vmem>>, %arg7: memref<1x128xf32, #tpu.memory_space<vmem>>, %arg8: memref<1x128x32xf32, #tpu.memory_space<vmem>>, %arg9: memref<1x128x32xf32, #tpu.memory_space<vmem>>, %arg10: memref<1x128x32xf32, #tpu.memory_space<vmem>>, %arg11: memref<1x1x64x32xf32, #tpu.memory_space<vmem>>, %arg12: memref<64x32xf32, #tpu.memory_space<vmem>>, %arg13: memref<128x32xf32, #tpu.memory_space<vmem>>, %arg14: memref<128x32xf32, #tpu.memory_space<vmem>>, %arg15: memref<64x1xf32, #tpu.memory_space<vmem>>, %arg16: memref<64x1xf32, #tpu.memory_space<vmem>>, %arg17: memref<64x32xf32, #tpu.memory_space<vmem>>) attributes {dimension_semantics = [#tpu.dimension_semantics<parallel>, #tpu.dimension_semantics<parallel>, #tpu.dimension_semantics<arbitrary>, #tpu.dimension_semantics<arbitrary>], iteration_bounds = array<i64: 2, 4, 2, 2>, scalar_prefetch = 0 : i64, scratch_operands = 6 : i64, tpu.core_type = #tpu.core_type<tc>, window_params = [{transform_indices = @transform_0, window_bounds = array<i64: 1, 64, 128>}, {transform_indices = @transform_1, window_bounds = array<i64: 1, 64, 128>}, {pipeline_mode = #tpu.pipeline_mode<synchronous>, transform_indices = @transform_2, window_bounds = array<i64: 1, 128>}, {pipeline_mode = #tpu.pipeline_mode<synchronous>, transform_indices = @transform_3, window_bounds = array<i64: 1, 128>}, {transform_indices = @transform_4, window_bounds = array<i64: 1, 128, 32>}, {transform_indices = @transform_5, window_bounds = array<i64: 1, 128, 32>}, {transform_indices = @transform_6, window_bounds = array<i64: 1, 128, 32>}, {transform_indices = @transform_7, window_bounds = array<i64: 1, 1, 64, 32>}]} {
    %c0_i32 = arith.constant 0 : i32
    %0 = arith.cmpi eq, %arg2, %c0_i32 : i32
    %1 = arith.extui %0 : i1 to i32
    %c0_i32_0 = arith.constant 0 : i32
    %2 = arith.cmpi ne, %1, %c0_i32_0 : i32
    scf.if %2 {
      %c0 = arith.constant 0 : index
      %c0_6 = arith.constant 0 : index
      %c0_7 = arith.constant 0 : index
      %15 = vector.load %arg5[%c0, %c0_6, %c0_7] : memref<1x64x128xf32, #tpu.memory_space<vmem>>, vector<1x64x128xf32>
      %16 = vector.shape_cast %15 : vector<1x64x128xf32> to vector<64x128xf32>
      %c0_8 = arith.constant 0 : index
      %c0_9 = arith.constant 0 : index
      %17 = vector.load %arg6[%c0_8, %c0_9] : memref<1x128xf32, #tpu.memory_space<vmem>>, vector<1x128xf32>
      %18 = vector.shape_cast %17 : vector<1x128xf32> to vector<128xf32>
      %c0_10 = arith.constant 0 : index
      %c0_11 = arith.constant 0 : index
      %19 = vector.load %arg7[%c0_10, %c0_11] : memref<1x128xf32, #tpu.memory_space<vmem>>, vector<1x128xf32>
      %20 = vector.shape_cast %19 : vector<1x128xf32> to vector<128xf32>
      %cst = arith.constant dense<0.000000e+00> : vector<64xf32>
      %21 = vector.multi_reduction <add>, %16, %cst [1] : vector<64x128xf32> to vector<64xf32>
      %22 = vector.shape_cast %21 : vector<64xf32> to vector<64x1xf32>
      %cst_12 = arith.constant 1.280000e+02 : f32
      %23 = vector.broadcast %cst_12 : f32 to vector<64x1xf32>
      %24 = arith.divf %22, %23 : vector<64x1xf32>
      %25 = vector.broadcast %24 : vector<64x1xf32> to vector<64x128xf32>
      %26 = arith.subf %16, %25 : vector<64x128xf32>
      %27 = arith.mulf %26, %26 : vector<64x128xf32>
      %cst_13 = arith.constant dense<0.000000e+00> : vector<64xf32>
      %28 = vector.multi_reduction <add>, %27, %cst_13 [1] : vector<64x128xf32> to vector<64xf32>
      %29 = vector.shape_cast %28 : vector<64xf32> to vector<64x1xf32>
      %cst_14 = arith.constant 1.280000e+02 : f32
      %30 = vector.broadcast %cst_14 : f32 to vector<64x1xf32>
      %31 = arith.divf %29, %30 : vector<64x1xf32>
      %32 = vector.broadcast %24 : vector<64x1xf32> to vector<64x128xf32>
      %33 = arith.subf %16, %32 : vector<64x128xf32>
      %cst_15 = arith.constant 9.99999974E-6 : f32
      %34 = vector.broadcast %cst_15 : f32 to vector<64x1xf32>
      %35 = arith.addf %31, %34 : vector<64x1xf32>
      %36 = math.sqrt %35 : vector<64x1xf32>
      %37 = vector.broadcast %36 : vector<64x1xf32> to vector<64x128xf32>
      %38 = arith.divf %33, %37 : vector<64x128xf32>
      %39 = vector.shape_cast %18 : vector<128xf32> to vector<1x128xf32>
      %40 = vector.broadcast %39 : vector<1x128xf32> to vector<64x128xf32>
      %41 = arith.mulf %38, %40 : vector<64x128xf32>
      %42 = vector.shape_cast %20 : vector<128xf32> to vector<1x128xf32>
      %43 = vector.broadcast %42 : vector<1x128xf32> to vector<64x128xf32>
      %44 = arith.addf %41, %43 : vector<64x128xf32>
      %c64_i32_16 = arith.constant 64 : i32
      %45 = arith.muli %arg3, %c64_i32_16 : i32
      %46 = tpu.assume_multiple %45, 64 : i32
      %c0_17 = arith.constant 0 : index
      %c0_18 = arith.constant 0 : index
      %c0_19 = arith.constant 0 : index
      %47 = vector.load %arg9[%c0_17, %c0_18, %c0_19] : memref<1x128x32xf32, #tpu.memory_space<vmem>>, vector<1x128x32xf32>
      %48 = vector.shape_cast %47 : vector<1x128x32xf32> to vector<128x32xf32>
      %cst_20 = arith.constant dense<0.000000e+00> : vector<64x32xf32>
      %49 = tpu.matmul %44, %48, %cst_20 {dimension_numbers = #tpu.dot_dimension_numbers<[1], [0], [0], [1], [0, 0, 1, 1], [], []>} : vector<64x128xf32>, vector<128x32xf32>, vector<64x32xf32> -> vector<64x32xf32>
      %50 = arith.index_cast %46 : i32 to index
      %c0_21 = arith.constant 0 : index
      %51 = vector.load %arg13[%50, %c0_21] : memref<128x32xf32, #tpu.memory_space<vmem>>, vector<64x32xf32>
      tpu.vector_store %arg13[%50, %c0_21], %49 {strides = array<i32>} : memref<128x32xf32, #tpu.memory_space<vmem>>, vector<64x32xf32>,
      %c0_22 = arith.constant 0 : index
      %c0_23 = arith.constant 0 : index
      %c0_24 = arith.constant 0 : index
      %52 = vector.load %arg10[%c0_22, %c0_23, %c0_24] : memref<1x128x32xf32, #tpu.memory_space<vmem>>, vector<1x128x32xf32>
      %53 = vector.shape_cast %52 : vector<1x128x32xf32> to vector<128x32xf32>
      %cst_25 = arith.constant dense<0.000000e+00> : vector<64x32xf32>
      %54 = tpu.matmul %44, %53, %cst_25 {dimension_numbers = #tpu.dot_dimension_numbers<[1], [0], [0], [1], [0, 0, 1, 1], [], []>} : vector<64x128xf32>, vector<128x32xf32>, vector<64x32xf32> -> vector<64x32xf32>
      %55 = arith.index_cast %46 : i32 to index
      %c0_26 = arith.constant 0 : index
      %56 = vector.load %arg14[%55, %c0_26] : memref<128x32xf32, #tpu.memory_space<vmem>>, vector<64x32xf32>
      tpu.vector_store %arg14[%55, %c0_26], %54 {strides = array<i32>} : memref<128x32xf32, #tpu.memory_space<vmem>>, vector<64x32xf32>,
    } else {
    }
    %c0_i32_1 = arith.constant 0 : i32
    %3 = arith.cmpi eq, %arg3, %c0_i32_1 : i32
    %4 = arith.extui %3 : i1 to i32
    %c0_i32_2 = arith.constant 0 : i32
    %5 = arith.cmpi ne, %4, %c0_i32_2 : i32
    scf.if %5 {
      %cst = arith.constant -1.000000e+30 : f32
      %15 = vector.broadcast %cst : f32 to vector<64x1xf32>
      %c0 = arith.constant 0 : index
      %c0_6 = arith.constant 0 : index
      %16 = vector.load %arg15[%c0, %c0_6] : memref<64x1xf32, #tpu.memory_space<vmem>>, vector<64x1xf32>
      tpu.vector_store %arg15[%c0, %c0_6], %15 {strides = array<i32>} : memref<64x1xf32, #tpu.memory_space<vmem>>, vector<64x1xf32>,
      %cst_7 = arith.constant 0.000000e+00 : f32
      %17 = vector.broadcast %cst_7 : f32 to vector<64x1xf32>
      %c0_8 = arith.constant 0 : index
      %c0_9 = arith.constant 0 : index
      %18 = vector.load %arg16[%c0_8, %c0_9] : memref<64x1xf32, #tpu.memory_space<vmem>>, vector<64x1xf32>
      tpu.vector_store %arg16[%c0_8, %c0_9], %17 {strides = array<i32>} : memref<64x1xf32, #tpu.memory_space<vmem>>, vector<64x1xf32>,
      %cst_10 = arith.constant 0.000000e+00 : f32
      %19 = vector.broadcast %cst_10 : f32 to vector<64x32xf32>
      %c0_11 = arith.constant 0 : index
      %c0_12 = arith.constant 0 : index
      %20 = vector.load %arg17[%c0_11, %c0_12] : memref<64x32xf32, #tpu.memory_space<vmem>>, vector<64x32xf32>
      tpu.vector_store %arg17[%c0_11, %c0_12], %19 {strides = array<i32>} : memref<64x32xf32, #tpu.memory_space<vmem>>, vector<64x32xf32>,
      %c0_13 = arith.constant 0 : index
      %c0_14 = arith.constant 0 : index
      %c0_15 = arith.constant 0 : index
      %21 = vector.load %arg4[%c0_13, %c0_14, %c0_15] : memref<1x64x128xf32, #tpu.memory_space<vmem>>, vector<1x64x128xf32>
      %22 = vector.shape_cast %21 : vector<1x64x128xf32> to vector<64x128xf32>
      %c0_16 = arith.constant 0 : index
      %c0_17 = arith.constant 0 : index
      %23 = vector.load %arg6[%c0_16, %c0_17] : memref<1x128xf32, #tpu.memory_space<vmem>>, vector<1x128xf32>
      %24 = vector.shape_cast %23 : vector<1x128xf32> to vector<128xf32>
      %c0_18 = arith.constant 0 : index
      %c0_19 = arith.constant 0 : index
      %25 = vector.load %arg7[%c0_18, %c0_19] : memref<1x128xf32, #tpu.memory_space<vmem>>, vector<1x128xf32>
      %26 = vector.shape_cast %25 : vector<1x128xf32> to vector<128xf32>
      %cst_20 = arith.constant dense<0.000000e+00> : vector<64xf32>
      %27 = vector.multi_reduction <add>, %22, %cst_20 [1] : vector<64x128xf32> to vector<64xf32>
      %28 = vector.shape_cast %27 : vector<64xf32> to vector<64x1xf32>
      %cst_21 = arith.constant 1.280000e+02 : f32
      %29 = vector.broadcast %cst_21 : f32 to vector<64x1xf32>
      %30 = arith.divf %28, %29 : vector<64x1xf32>
      %31 = vector.broadcast %30 : vector<64x1xf32> to vector<64x128xf32>
      %32 = arith.subf %22, %31 : vector<64x128xf32>
      %33 = arith.mulf %32, %32 : vector<64x128xf32>
      %cst_22 = arith.constant dense<0.000000e+00> : vector<64xf32>
      %34 = vector.multi_reduction <add>, %33, %cst_22 [1] : vector<64x128xf32> to vector<64xf32>
      %35 = vector.shape_cast %34 : vector<64xf32> to vector<64x1xf32>
      %cst_23 = arith.constant 1.280000e+02 : f32
      %36 = vector.broadcast %cst_23 : f32 to vector<64x1xf32>
      %37 = arith.divf %35, %36 : vector<64x1xf32>
      %38 = vector.broadcast %30 : vector<64x1xf32> to vector<64x128xf32>
      %39 = arith.subf %22, %38 : vector<64x128xf32>
      %cst_24 = arith.constant 9.99999974E-6 : f32
      %40 = vector.broadcast %cst_24 : f32 to vector<64x1xf32>
      %41 = arith.addf %37, %40 : vector<64x1xf32>
      %42 = math.sqrt %41 : vector<64x1xf32>
      %43 = vector.broadcast %42 : vector<64x1xf32> to vector<64x128xf32>
      %44 = arith.divf %39, %43 : vector<64x128xf32>
      %45 = vector.shape_cast %24 : vector<128xf32> to vector<1x128xf32>
      %46 = vector.broadcast %45 : vector<1x128xf32> to vector<64x128xf32>
      %47 = arith.mulf %44, %46 : vector<64x128xf32>
      %48 = vector.shape_cast %26 : vector<128xf32> to vector<1x128xf32>
      %49 = vector.broadcast %48 : vector<1x128xf32> to vector<64x128xf32>
      %50 = arith.addf %47, %49 : vector<64x128xf32>
      %c0_25 = arith.constant 0 : index
      %c0_26 = arith.constant 0 : index
      %c0_27 = arith.constant 0 : index
      %51 = vector.load %arg8[%c0_25, %c0_26, %c0_27] : memref<1x128x32xf32, #tpu.memory_space<vmem>>, vector<1x128x32xf32>
      %52 = vector.shape_cast %51 : vector<1x128x32xf32> to vector<128x32xf32>
      %cst_28 = arith.constant dense<0.000000e+00> : vector<64x32xf32>
      %53 = tpu.matmul %50, %52, %cst_28 {dimension_numbers = #tpu.dot_dimension_numbers<[1], [0], [0], [1], [0, 0, 1, 1], [], []>} : vector<64x128xf32>, vector<128x32xf32>, vector<64x32xf32> -> vector<64x32xf32>
      %cst_29 = arith.constant 0.176776692 : f32
      %54 = vector.broadcast %cst_29 : f32 to vector<64x32xf32>
      %55 = arith.mulf %53, %54 : vector<64x32xf32>
      %c0_30 = arith.constant 0 : index
      %c0_31 = arith.constant 0 : index
      %56 = vector.load %arg12[%c0_30, %c0_31] : memref<64x32xf32, #tpu.memory_space<vmem>>, vector<64x32xf32>
      tpu.vector_store %arg12[%c0_30, %c0_31], %55 {strides = array<i32>} : memref<64x32xf32, #tpu.memory_space<vmem>>, vector<64x32xf32>,
    } else {
    }
    %c64_i32 = arith.constant 64 : i32
    %6 = arith.muli %arg3, %c64_i32 : i32
    %c64_i32_3 = arith.constant 64 : i32
    %7 = arith.muli %arg2, %c64_i32_3 : i32
    %c63_i32 = arith.constant 63 : i32
    %8 = arith.addi %7, %c63_i32 : i32
    %9 = arith.cmpi sle, %6, %8 : i32
    %10 = arith.extui %9 : i1 to i32
    %c0_i32_4 = arith.constant 0 : i32
    %11 = arith.cmpi ne, %10, %c0_i32_4 : i32
    scf.if %11 {
      %c64_i32_6 = arith.constant 64 : i32
      %15 = arith.muli %arg3, %c64_i32_6 : i32
      %16 = tpu.assume_multiple %15, 64 : i32
      %17 = arith.index_cast %16 : i32 to index
      %c0 = arith.constant 0 : index
      %18 = vector.load %arg13[%17, %c0] : memref<128x32xf32, #tpu.memory_space<vmem>>, vector<64x32xf32>
      %19 = arith.index_cast %16 : i32 to index
      %c0_7 = arith.constant 0 : index
      %20 = vector.load %arg14[%19, %c0_7] : memref<128x32xf32, #tpu.memory_space<vmem>>, vector<64x32xf32>
      %c0_8 = arith.constant 0 : index
      %c0_9 = arith.constant 0 : index
      %21 = vector.load %arg12[%c0_8, %c0_9] : memref<64x32xf32, #tpu.memory_space<vmem>>, vector<64x32xf32>
      %cst = arith.constant dense<0.000000e+00> : vector<64x64xf32>
      %22 = tpu.matmul %21, %18, %cst {dimension_numbers = #tpu.dot_dimension_numbers<[1], [1], [0], [0], [0, 0, 1, 0], [], []>} : vector<64x32xf32>, vector<64x32xf32>, vector<64x64xf32> -> vector<64x64xf32>
      %c64_i32_10 = arith.constant 64 : i32
      %23 = arith.muli %arg2, %c64_i32_10 : i32
      %24 = tpu.iota {dimensions = array<i32: 0>} : vector<64x64xi32>
      %25 = vector.broadcast %23 : i32 to vector<64x64xi32>
      %26 = arith.addi %25, %24 : vector<64x64xi32>
      %c64_i32_11 = arith.constant 64 : i32
      %27 = arith.muli %arg3, %c64_i32_11 : i32
      %28 = tpu.iota {dimensions = array<i32: 1>} : vector<64x64xi32>
      %29 = vector.broadcast %27 : i32 to vector<64x64xi32>
      %30 = arith.addi %29, %28 : vector<64x64xi32>
      %31 = arith.cmpi sgt, %30, %26 : vector<64x64xi32>
      %cst_12 = arith.constant -1.000000e+30 : f32
      %32 = vector.broadcast %cst_12 : f32 to vector<64x64xf32>
      %33 = arith.select %31, %32, %22 : vector<64x64xi1>, vector<64x64xf32>
      %c0_13 = arith.constant 0 : index
      %c0_14 = arith.constant 0 : index
      %34 = vector.load %arg15[%c0_13, %c0_14] : memref<64x1xf32, #tpu.memory_space<vmem>>, vector<64x1xf32>
      %cst_15 = arith.constant dense<0xFF800000> : vector<64xf32>
      %35 = vector.multi_reduction <maximumf>, %33, %cst_15 [1] : vector<64x64xf32> to vector<64xf32>
      %36 = vector.shape_cast %35 : vector<64xf32> to vector<64x1xf32>
      %37 = arith.maximumf %34, %36 : vector<64x1xf32>
      %38 = arith.subf %34, %37 : vector<64x1xf32>
      %39 = math.exp %38 : vector<64x1xf32>
      %40 = vector.broadcast %37 : vector<64x1xf32> to vector<64x64xf32>
      %41 = arith.subf %33, %40 : vector<64x64xf32>
      %42 = math.exp %41 : vector<64x64xf32>
      %c0_16 = arith.constant 0 : index
      %c0_17 = arith.constant 0 : index
      %43 = vector.load %arg16[%c0_16, %c0_17] : memref<64x1xf32, #tpu.memory_space<vmem>>, vector<64x1xf32>
      %44 = arith.mulf %39, %43 : vector<64x1xf32>
      %cst_18 = arith.constant dense<0.000000e+00> : vector<64xf32>
      %45 = vector.multi_reduction <add>, %42, %cst_18 [1] : vector<64x64xf32> to vector<64xf32>
      %46 = vector.shape_cast %45 : vector<64xf32> to vector<64x1xf32>
      %47 = arith.addf %44, %46 : vector<64x1xf32>
      %c0_19 = arith.constant 0 : index
      %c0_20 = arith.constant 0 : index
      %48 = vector.load %arg16[%c0_19, %c0_20] : memref<64x1xf32, #tpu.memory_space<vmem>>, vector<64x1xf32>
      tpu.vector_store %arg16[%c0_19, %c0_20], %47 {strides = array<i32>} : memref<64x1xf32, #tpu.memory_space<vmem>>, vector<64x1xf32>,
      %c0_21 = arith.constant 0 : index
      %c0_22 = arith.constant 0 : index
      %49 = vector.load %arg17[%c0_21, %c0_22] : memref<64x32xf32, #tpu.memory_space<vmem>>, vector<64x32xf32>
      %50 = vector.broadcast %39 : vector<64x1xf32> to vector<64x32xf32>
      %51 = arith.mulf %50, %49 : vector<64x32xf32>
      %cst_23 = arith.constant dense<0.000000e+00> : vector<64x32xf32>
      %52 = tpu.matmul %42, %20, %cst_23 {dimension_numbers = #tpu.dot_dimension_numbers<[1], [0], [0], [1], [0, 0, 1, 1], [], []>} : vector<64x64xf32>, vector<64x32xf32>, vector<64x32xf32> -> vector<64x32xf32>
      %53 = arith.addf %51, %52 : vector<64x32xf32>
      %c0_24 = arith.constant 0 : index
      %c0_25 = arith.constant 0 : index
      %54 = vector.load %arg17[%c0_24, %c0_25] : memref<64x32xf32, #tpu.memory_space<vmem>>, vector<64x32xf32>
      tpu.vector_store %arg17[%c0_24, %c0_25], %53 {strides = array<i32>} : memref<64x32xf32, #tpu.memory_space<vmem>>, vector<64x32xf32>,
      %c0_26 = arith.constant 0 : index
      %c0_27 = arith.constant 0 : index
      %55 = vector.load %arg15[%c0_26, %c0_27] : memref<64x1xf32, #tpu.memory_space<vmem>>, vector<64x1xf32>
      tpu.vector_store %arg15[%c0_26, %c0_27], %37 {strides = array<i32>} : memref<64x1xf32, #tpu.memory_space<vmem>>, vector<64x1xf32>,
    } else {
    }
    %c1_i32 = arith.constant 1 : i32
    %12 = arith.cmpi eq, %arg3, %c1_i32 : i32
    %13 = arith.extui %12 : i1 to i32
    %c0_i32_5 = arith.constant 0 : i32
    %14 = arith.cmpi ne, %13, %c0_i32_5 : i32
    scf.if %14 {
      %c0 = arith.constant 0 : index
      %c0_6 = arith.constant 0 : index
      %15 = vector.load %arg17[%c0, %c0_6] : memref<64x32xf32, #tpu.memory_space<vmem>>, vector<64x32xf32>
      %c0_7 = arith.constant 0 : index
      %c0_8 = arith.constant 0 : index
      %16 = vector.load %arg16[%c0_7, %c0_8] : memref<64x1xf32, #tpu.memory_space<vmem>>, vector<64x1xf32>
      %17 = tpu.reciprocal %16 {approx = true} : vector<64x1xf32> -> vector<64x1xf32>
      %18 = vector.broadcast %17 : vector<64x1xf32> to vector<64x32xf32>
      %19 = arith.mulf %15, %18 : vector<64x32xf32>
      %c0_9 = arith.constant 0 : index
      %c0_10 = arith.constant 0 : index
      %c0_11 = arith.constant 0 : index
      %c0_12 = arith.constant 0 : index
      %20 = vector.load %arg11[%c0_9, %c0_10, %c0_11, %c0_12] : memref<1x1x64x32xf32, #tpu.memory_space<vmem>>, vector<1x1x64x32xf32>
      %21 = vector.shape_cast %20 : vector<1x1x64x32xf32> to vector<64x32xf32>
      %22 = vector.shape_cast %19 : vector<64x32xf32> to vector<1x1x64x32xf32>
      tpu.vector_store %arg11[%c0_9, %c0_10, %c0_11, %c0_12], %22 {strides = array<i32>} : memref<1x1x64x32xf32, #tpu.memory_space<vmem>>, vector<1x1x64x32xf32>,
    } else {
    }
    return
  }
  func.func @transform_0(%arg0: i32, %arg1: i32, %arg2: i32, %arg3: i32) -> (i32, i32, i32) {
    %c0_i32 = arith.constant 0 : i32
    %c0_i32_0 = arith.constant 0 : i32
    return %arg0, %arg2, %c0_i32 : i32, i32, i32
  }
  func.func @transform_1(%arg0: i32, %arg1: i32, %arg2: i32, %arg3: i32) -> (i32, i32, i32) {
    %c0_i32 = arith.constant 0 : i32
    %0 = arith.cmpi eq, %arg2, %c0_i32 : i32
    %c0_i32_0 = arith.constant 0 : i32
    %1 = arith.select %0, %arg3, %c0_i32_0 : i32
    %c0_i32_1 = arith.constant 0 : i32
    %c0_i32_2 = arith.constant 0 : i32
    return %arg0, %1, %c0_i32_1 : i32, i32, i32
  }
  func.func @transform_2(%arg0: i32, %arg1: i32, %arg2: i32, %arg3: i32) -> (i32, i32) {
    %c0_i32 = arith.constant 0 : i32
    %c0_i32_0 = arith.constant 0 : i32
    %c0_i32_1 = arith.constant 0 : i32
    return %c0_i32, %c0_i32_0 : i32, i32
  }
  func.func @transform_3(%arg0: i32, %arg1: i32, %arg2: i32, %arg3: i32) -> (i32, i32) {
    %c0_i32 = arith.constant 0 : i32
    %c0_i32_0 = arith.constant 0 : i32
    %c0_i32_1 = arith.constant 0 : i32
    return %c0_i32, %c0_i32_0 : i32, i32
  }
  func.func @transform_4(%arg0: i32, %arg1: i32, %arg2: i32, %arg3: i32) -> (i32, i32, i32) {
    %c0_i32 = arith.constant 0 : i32
    %c0_i32_0 = arith.constant 0 : i32
    %c0_i32_1 = arith.constant 0 : i32
    return %arg1, %c0_i32, %c0_i32_0 : i32, i32, i32
  }
  func.func @transform_5(%arg0: i32, %arg1: i32, %arg2: i32, %arg3: i32) -> (i32, i32, i32) {
    %c0_i32 = arith.constant 0 : i32
    %c0_i32_0 = arith.constant 0 : i32
    %c0_i32_1 = arith.constant 0 : i32
    return %arg1, %c0_i32, %c0_i32_0 : i32, i32, i32
  }
  func.func @transform_6(%arg0: i32, %arg1: i32, %arg2: i32, %arg3: i32) -> (i32, i32, i32) {
    %c0_i32 = arith.constant 0 : i32
    %c0_i32_0 = arith.constant 0 : i32
    %c0_i32_1 = arith.constant 0 : i32
    return %arg1, %c0_i32, %c0_i32_0 : i32, i32, i32
  }
  func.func @transform_7(%arg0: i32, %arg1: i32, %arg2: i32, %arg3: i32) -> (i32, i32, i32, i32) {
    %c0_i32 = arith.constant 0 : i32
    %c0_i32_0 = arith.constant 0 : i32
    return %arg0, %arg1, %arg2, %c0_i32 : i32, i32, i32, i32
  }
}

module attributes {stable_mosaic.version = 11 : i64} {
  func.func @_attention_kernel(%arg0: i32, %arg1: i32, %arg2: i32, %arg3: i32, %arg4: memref<1x64x128xf32, #tpu.memory_space<vmem>>, %arg5: memref<1x64x128xf32, #tpu.memory_space<vmem>>, %arg6: memref<1x128xf32, #tpu.memory_space<vmem>>, %arg7: memref<1x128xf32, #tpu.memory_space<vmem>>, %arg8: memref<1x128x32xf32, #tpu.memory_space<vmem>>, %arg9: memref<1x128x32xf32, #tpu.memory_space<vmem>>, %arg10: memref<1x128x32xf32, #tpu.memory_space<vmem>>, %arg11: memref<1x1x64x32xf32, #tpu.memory_space<vmem>>, %arg12: memref<64x32xf32, #tpu.memory_space<vmem>>, %arg13: memref<128x32xf32, #tpu.memory_space<vmem>>, %arg14: memref<128x32xf32, #tpu.memory_space<vmem>>, %arg15: memref<64x1xf32, #tpu.memory_space<vmem>>, %arg16: memref<64x1xf32, #tpu.memory_space<vmem>>, %arg17: memref<64x32xf32, #tpu.memory_space<vmem>>) attributes {dimension_semantics = [#tpu.dimension_semantics<parallel>, #tpu.dimension_semantics<parallel>, #tpu.dimension_semantics<arbitrary>, #tpu.dimension_semantics<arbitrary>], iteration_bounds = array<i64: 2, 4, 2, 2>, scalar_prefetch = 0 : i64, scratch_operands = 6 : i64, tpu.core_type = #tpu.core_type<tc>, window_params = [{transform_indices = @transform_0, window_bounds = array<i64: 1, 64, 128>}, {transform_indices = @transform_1, window_bounds = array<i64: 1, 64, 128>}, {pipeline_mode = #tpu.pipeline_mode<synchronous>, transform_indices = @transform_2, window_bounds = array<i64: 1, 128>}, {pipeline_mode = #tpu.pipeline_mode<synchronous>, transform_indices = @transform_3, window_bounds = array<i64: 1, 128>}, {transform_indices = @transform_4, window_bounds = array<i64: 1, 128, 32>}, {transform_indices = @transform_5, window_bounds = array<i64: 1, 128, 32>}, {transform_indices = @transform_6, window_bounds = array<i64: 1, 128, 32>}, {transform_indices = @transform_7, window_bounds = array<i64: 1, 1, 64, 32>}]} {
    %c0_i32 = arith.constant 0 : i32
    %0 = arith.cmpi eq, %arg2, %c0_i32 : i32
    %1 = arith.extui %0 : i1 to i32
    %c0_i32_0 = arith.constant 0 : i32
    %2 = arith.cmpi ne, %1, %c0_i32_0 : i32
    scf.if %2 {
      %c0 = arith.constant 0 : index
      %c0_6 = arith.constant 0 : index
      %c0_7 = arith.constant 0 : index
      %15 = vector.load %arg5[%c0, %c0_6, %c0_7] : memref<1x64x128xf32, #tpu.memory_space<vmem>>, vector<1x64x128xf32>
      %16 = vector.shape_cast %15 : vector<1x64x128xf32> to vector<64x128xf32>
      %c0_8 = arith.constant 0 : index
      %c0_9 = arith.constant 0 : index
      %17 = vector.load %arg6[%c0_8, %c0_9] : memref<1x128xf32, #tpu.memory_space<vmem>>, vector<1x128xf32>
      %18 = vector.shape_cast %17 : vector<1x128xf32> to vector<128xf32>
      %c0_10 = arith.constant 0 : index
      %c0_11 = arith.constant 0 : index
      %19 = vector.load %arg7[%c0_10, %c0_11] : memref<1x128xf32, #tpu.memory_space<vmem>>, vector<1x128xf32>
      %20 = vector.shape_cast %19 : vector<1x128xf32> to vector<128xf32>
      %cst = arith.constant dense<0.000000e+00> : vector<64xf32>
      %21 = vector.multi_reduction <add>, %16, %cst [1] : vector<64x128xf32> to vector<64xf32>
      %22 = vector.shape_cast %21 : vector<64xf32> to vector<64x1xf32>
      %cst_12 = arith.constant 1.280000e+02 : f32
      %23 = vector.broadcast %cst_12 : f32 to vector<64x1xf32>
      %24 = arith.divf %22, %23 : vector<64x1xf32>
      %25 = vector.broadcast %24 : vector<64x1xf32> to vector<64x128xf32>
      %26 = arith.subf %16, %25 : vector<64x128xf32>
      %27 = arith.mulf %26, %26 : vector<64x128xf32>
      %cst_13 = arith.constant dense<0.000000e+00> : vector<64xf32>
      %28 = vector.multi_reduction <add>, %27, %cst_13 [1] : vector<64x128xf32> to vector<64xf32>
      %29 = vector.shape_cast %28 : vector<64xf32> to vector<64x1xf32>
      %cst_14 = arith.constant 1.280000e+02 : f32
      %30 = vector.broadcast %cst_14 : f32 to vector<64x1xf32>
      %31 = arith.divf %29, %30 : vector<64x1xf32>
      %32 = vector.broadcast %24 : vector<64x1xf32> to vector<64x128xf32>
      %33 = arith.subf %16, %32 : vector<64x128xf32>
      %cst_15 = arith.constant 9.99999974E-6 : f32
      %34 = vector.broadcast %cst_15 : f32 to vector<64x1xf32>
      %35 = arith.addf %31, %34 : vector<64x1xf32>
      %36 = math.sqrt %35 : vector<64x1xf32>
      %37 = vector.broadcast %36 : vector<64x1xf32> to vector<64x128xf32>
      %38 = arith.divf %33, %37 : vector<64x128xf32>
      %39 = vector.shape_cast %18 : vector<128xf32> to vector<1x128xf32>
      %40 = vector.broadcast %39 : vector<1x128xf32> to vector<64x128xf32>
      %41 = arith.mulf %38, %40 : vector<64x128xf32>
      %42 = vector.shape_cast %20 : vector<128xf32> to vector<1x128xf32>
      %43 = vector.broadcast %42 : vector<1x128xf32> to vector<64x128xf32>
      %44 = arith.addf %41, %43 : vector<64x128xf32>
      %c64_i32_16 = arith.constant 64 : i32
      %45 = arith.muli %arg3, %c64_i32_16 : i32
      %46 = tpu.assume_multiple %45, 64 : i32
      %c0_17 = arith.constant 0 : index
      %c0_18 = arith.constant 0 : index
      %c0_19 = arith.constant 0 : index
      %47 = vector.load %arg9[%c0_17, %c0_18, %c0_19] : memref<1x128x32xf32, #tpu.memory_space<vmem>>, vector<1x128x32xf32>
      %48 = vector.shape_cast %47 : vector<1x128x32xf32> to vector<128x32xf32>
      %cst_20 = arith.constant dense<0.000000e+00> : vector<64x32xf32>
      %49 = tpu.matmul %44, %48, %cst_20 {dimension_numbers = #tpu.dot_dimension_numbers<[1], [0], [0], [1], [0, 0, 1, 1], [], []>} : vector<64x128xf32>, vector<128x32xf32>, vector<64x32xf32> -> vector<64x32xf32>
      %50 = arith.index_cast %46 : i32 to index
      %c0_21 = arith.constant 0 : index
      %51 = vector.load %arg13[%50, %c0_21] : memref<128x32xf32, #tpu.memory_space<vmem>>, vector<64x32xf32>
      tpu.vector_store %arg13[%50, %c0_21], %49 {strides = array<i32>} : memref<128x32xf32, #tpu.memory_space<vmem>>, vector<64x32xf32>,
      %c0_22 = arith.constant 0 : index
      %c0_23 = arith.constant 0 : index
      %c0_24 = arith.constant 0 : index
      %52 = vector.load %arg10[%c0_22, %c0_23, %c0_24] : memref<1x128x32xf32, #tpu.memory_space<vmem>>, vector<1x128x32xf32>
      %53 = vector.shape_cast %52 : vector<1x128x32xf32> to vector<128x32xf32>
      %cst_25 = arith.constant dense<0.000000e+00> : vector<64x32xf32>
      %54 = tpu.matmul %44, %53, %cst_25 {dimension_numbers = #tpu.dot_dimension_numbers<[1], [0], [0], [1], [0, 0, 1, 1], [], []>} : vector<64x128xf32>, vector<128x32xf32>, vector<64x32xf32> -> vector<64x32xf32>
      %55 = arith.index_cast %46 : i32 to index
      %c0_26 = arith.constant 0 : index
      %56 = vector.load %arg14[%55, %c0_26] : memref<128x32xf32, #tpu.memory_space<vmem>>, vector<64x32xf32>
      tpu.vector_store %arg14[%55, %c0_26], %54 {strides = array<i32>} : memref<128x32xf32, #tpu.memory_space<vmem>>, vector<64x32xf32>,
    } else {
    }
    %c0_i32_1 = arith.constant 0 : i32
    %3 = arith.cmpi eq, %arg3, %c0_i32_1 : i32
    %4 = arith.extui %3 : i1 to i32
    %c0_i32_2 = arith.constant 0 : i32
    %5 = arith.cmpi ne, %4, %c0_i32_2 : i32
    scf.if %5 {
      %cst = arith.constant -1.000000e+30 : f32
      %15 = vector.broadcast %cst : f32 to vector<64x1xf32>
      %c0 = arith.constant 0 : index
      %c0_6 = arith.constant 0 : index
      %16 = vector.load %arg15[%c0, %c0_6] : memref<64x1xf32, #tpu.memory_space<vmem>>, vector<64x1xf32>
      tpu.vector_store %arg15[%c0, %c0_6], %15 {strides = array<i32>} : memref<64x1xf32, #tpu.memory_space<vmem>>, vector<64x1xf32>,
      %cst_7 = arith.constant 0.000000e+00 : f32
      %17 = vector.broadcast %cst_7 : f32 to vector<64x1xf32>
      %c0_8 = arith.constant 0 : index
      %c0_9 = arith.constant 0 : index
      %18 = vector.load %arg16[%c0_8, %c0_9] : memref<64x1xf32, #tpu.memory_space<vmem>>, vector<64x1xf32>
      tpu.vector_store %arg16[%c0_8, %c0_9], %17 {strides = array<i32>} : memref<64x1xf32, #tpu.memory_space<vmem>>, vector<64x1xf32>,
      %cst_10 = arith.constant 0.000000e+00 : f32
      %19 = vector.broadcast %cst_10 : f32 to vector<64x32xf32>
      %c0_11 = arith.constant 0 : index
      %c0_12 = arith.constant 0 : index
      %20 = vector.load %arg17[%c0_11, %c0_12] : memref<64x32xf32, #tpu.memory_space<vmem>>, vector<64x32xf32>
      tpu.vector_store %arg17[%c0_11, %c0_12], %19 {strides = array<i32>} : memref<64x32xf32, #tpu.memory_space<vmem>>, vector<64x32xf32>,
      %c0_13 = arith.constant 0 : index
      %c0_14 = arith.constant 0 : index
      %c0_15 = arith.constant 0 : index
      %21 = vector.load %arg4[%c0_13, %c0_14, %c0_15] : memref<1x64x128xf32, #tpu.memory_space<vmem>>, vector<1x64x128xf32>
      %22 = vector.shape_cast %21 : vector<1x64x128xf32> to vector<64x128xf32>
      %c0_16 = arith.constant 0 : index
      %c0_17 = arith.constant 0 : index
      %23 = vector.load %arg6[%c0_16, %c0_17] : memref<1x128xf32, #tpu.memory_space<vmem>>, vector<1x128xf32>
      %24 = vector.shape_cast %23 : vector<1x128xf32> to vector<128xf32>
      %c0_18 = arith.constant 0 : index
      %c0_19 = arith.constant 0 : index
      %25 = vector.load %arg7[%c0_18, %c0_19] : memref<1x128xf32, #tpu.memory_space<vmem>>, vector<1x128xf32>
      %26 = vector.shape_cast %25 : vector<1x128xf32> to vector<128xf32>
      %cst_20 = arith.constant dense<0.000000e+00> : vector<64xf32>
      %27 = vector.multi_reduction <add>, %22, %cst_20 [1] : vector<64x128xf32> to vector<64xf32>
      %28 = vector.shape_cast %27 : vector<64xf32> to vector<64x1xf32>
      %cst_21 = arith.constant 1.280000e+02 : f32
      %29 = vector.broadcast %cst_21 : f32 to vector<64x1xf32>
      %30 = arith.divf %28, %29 : vector<64x1xf32>
      %31 = vector.broadcast %30 : vector<64x1xf32> to vector<64x128xf32>
      %32 = arith.subf %22, %31 : vector<64x128xf32>
      %33 = arith.mulf %32, %32 : vector<64x128xf32>
      %cst_22 = arith.constant dense<0.000000e+00> : vector<64xf32>
      %34 = vector.multi_reduction <add>, %33, %cst_22 [1] : vector<64x128xf32> to vector<64xf32>
      %35 = vector.shape_cast %34 : vector<64xf32> to vector<64x1xf32>
      %cst_23 = arith.constant 1.280000e+02 : f32
      %36 = vector.broadcast %cst_23 : f32 to vector<64x1xf32>
      %37 = arith.divf %35, %36 : vector<64x1xf32>
      %38 = vector.broadcast %30 : vector<64x1xf32> to vector<64x128xf32>
      %39 = arith.subf %22, %38 : vector<64x128xf32>
      %cst_24 = arith.constant 9.99999974E-6 : f32
      %40 = vector.broadcast %cst_24 : f32 to vector<64x1xf32>
      %41 = arith.addf %37, %40 : vector<64x1xf32>
      %42 = math.sqrt %41 : vector<64x1xf32>
      %43 = vector.broadcast %42 : vector<64x1xf32> to vector<64x128xf32>
      %44 = arith.divf %39, %43 : vector<64x128xf32>
      %45 = vector.shape_cast %24 : vector<128xf32> to vector<1x128xf32>
      %46 = vector.broadcast %45 : vector<1x128xf32> to vector<64x128xf32>
      %47 = arith.mulf %44, %46 : vector<64x128xf32>
      %48 = vector.shape_cast %26 : vector<128xf32> to vector<1x128xf32>
      %49 = vector.broadcast %48 : vector<1x128xf32> to vector<64x128xf32>
      %50 = arith.addf %47, %49 : vector<64x128xf32>
      %c0_25 = arith.constant 0 : index
      %c0_26 = arith.constant 0 : index
      %c0_27 = arith.constant 0 : index
      %51 = vector.load %arg8[%c0_25, %c0_26, %c0_27] : memref<1x128x32xf32, #tpu.memory_space<vmem>>, vector<1x128x32xf32>
      %52 = vector.shape_cast %51 : vector<1x128x32xf32> to vector<128x32xf32>
      %cst_28 = arith.constant dense<0.000000e+00> : vector<64x32xf32>
      %53 = tpu.matmul %50, %52, %cst_28 {dimension_numbers = #tpu.dot_dimension_numbers<[1], [0], [0], [1], [0, 0, 1, 1], [], []>} : vector<64x128xf32>, vector<128x32xf32>, vector<64x32xf32> -> vector<64x32xf32>
      %cst_29 = arith.constant 0.176776692 : f32
      %54 = vector.broadcast %cst_29 : f32 to vector<64x32xf32>
      %55 = arith.mulf %53, %54 : vector<64x32xf32>
      %c0_30 = arith.constant 0 : index
      %c0_31 = arith.constant 0 : index
      %56 = vector.load %arg12[%c0_30, %c0_31] : memref<64x32xf32, #tpu.memory_space<vmem>>, vector<64x32xf32>
      tpu.vector_store %arg12[%c0_30, %c0_31], %55 {strides = array<i32>} : memref<64x32xf32, #tpu.memory_space<vmem>>, vector<64x32xf32>,
    } else {
    }
    %c64_i32 = arith.constant 64 : i32
    %6 = arith.muli %arg3, %c64_i32 : i32
    %c64_i32_3 = arith.constant 64 : i32
    %7 = arith.muli %arg2, %c64_i32_3 : i32
    %c63_i32 = arith.constant 63 : i32
    %8 = arith.addi %7, %c63_i32 : i32
    %9 = arith.cmpi sle, %6, %8 : i32
    %10 = arith.extui %9 : i1 to i32
    %c0_i32_4 = arith.constant 0 : i32
    %11 = arith.cmpi ne, %10, %c0_i32_4 : i32
    scf.if %11 {
      %c64_i32_6 = arith.constant 64 : i32
      %15 = arith.muli %arg3, %c64_i32_6 : i32
      %16 = tpu.assume_multiple %15, 64 : i32
      %17 = arith.index_cast %16 : i32 to index
      %c0 = arith.constant 0 : index
      %18 = vector.load %arg13[%17, %c0] : memref<128x32xf32, #tpu.memory_space<vmem>>, vector<64x32xf32>
      %19 = arith.index_cast %16 : i32 to index
      %c0_7 = arith.constant 0 : index
      %20 = vector.load %arg14[%19, %c0_7] : memref<128x32xf32, #tpu.memory_space<vmem>>, vector<64x32xf32>
      %c0_8 = arith.constant 0 : index
      %c0_9 = arith.constant 0 : index
      %21 = vector.load %arg12[%c0_8, %c0_9] : memref<64x32xf32, #tpu.memory_space<vmem>>, vector<64x32xf32>
      %cst = arith.constant dense<0.000000e+00> : vector<64x64xf32>
      %22 = tpu.matmul %21, %18, %cst {dimension_numbers = #tpu.dot_dimension_numbers<[1], [1], [0], [0], [0, 0, 1, 0], [], []>} : vector<64x32xf32>, vector<64x32xf32>, vector<64x64xf32> -> vector<64x64xf32>
      %c64_i32_10 = arith.constant 64 : i32
      %23 = arith.muli %arg2, %c64_i32_10 : i32
      %24 = tpu.iota {dimensions = array<i32: 0>} : vector<64x64xi32>
      %25 = vector.broadcast %23 : i32 to vector<64x64xi32>
      %26 = arith.addi %25, %24 : vector<64x64xi32>
      %c64_i32_11 = arith.constant 64 : i32
      %27 = arith.muli %arg3, %c64_i32_11 : i32
      %28 = tpu.iota {dimensions = array<i32: 1>} : vector<64x64xi32>
      %29 = vector.broadcast %27 : i32 to vector<64x64xi32>
      %30 = arith.addi %29, %28 : vector<64x64xi32>
      %31 = arith.cmpi sgt, %30, %26 : vector<64x64xi32>
      %cst_12 = arith.constant -1.000000e+30 : f32
      %32 = vector.broadcast %cst_12 : f32 to vector<64x64xf32>
      %33 = arith.select %31, %32, %22 : vector<64x64xi1>, vector<64x64xf32>
      %c0_13 = arith.constant 0 : index
      %c0_14 = arith.constant 0 : index
      %34 = vector.load %arg15[%c0_13, %c0_14] : memref<64x1xf32, #tpu.memory_space<vmem>>, vector<64x1xf32>
      %cst_15 = arith.constant dense<0xFF800000> : vector<64xf32>
      %35 = vector.multi_reduction <maximumf>, %33, %cst_15 [1] : vector<64x64xf32> to vector<64xf32>
      %36 = vector.shape_cast %35 : vector<64xf32> to vector<64x1xf32>
      %37 = arith.maximumf %34, %36 : vector<64x1xf32>
      %38 = arith.subf %34, %37 : vector<64x1xf32>
      %39 = math.exp %38 : vector<64x1xf32>
      %40 = vector.broadcast %37 : vector<64x1xf32> to vector<64x64xf32>
      %41 = arith.subf %33, %40 : vector<64x64xf32>
      %42 = math.exp %41 : vector<64x64xf32>
      %c0_16 = arith.constant 0 : index
      %c0_17 = arith.constant 0 : index
      %43 = vector.load %arg16[%c0_16, %c0_17] : memref<64x1xf32, #tpu.memory_space<vmem>>, vector<64x1xf32>
      %44 = arith.mulf %39, %43 : vector<64x1xf32>
      %cst_18 = arith.constant dense<0.000000e+00> : vector<64xf32>
      %45 = vector.multi_reduction <add>, %42, %cst_18 [1] : vector<64x64xf32> to vector<64xf32>
      %46 = vector.shape_cast %45 : vector<64xf32> to vector<64x1xf32>
      %47 = arith.addf %44, %46 : vector<64x1xf32>
      %c0_19 = arith.constant 0 : index
      %c0_20 = arith.constant 0 : index
      %48 = vector.load %arg16[%c0_19, %c0_20] : memref<64x1xf32, #tpu.memory_space<vmem>>, vector<64x1xf32>
      tpu.vector_store %arg16[%c0_19, %c0_20], %47 {strides = array<i32>} : memref<64x1xf32, #tpu.memory_space<vmem>>, vector<64x1xf32>,
      %c0_21 = arith.constant 0 : index
      %c0_22 = arith.constant 0 : index
      %49 = vector.load %arg17[%c0_21, %c0_22] : memref<64x32xf32, #tpu.memory_space<vmem>>, vector<64x32xf32>
      %50 = vector.broadcast %39 : vector<64x1xf32> to vector<64x32xf32>
      %51 = arith.mulf %50, %49 : vector<64x32xf32>
      %cst_23 = arith.constant dense<0.000000e+00> : vector<64x32xf32>
      %52 = tpu.matmul %42, %20, %cst_23 {dimension_numbers = #tpu.dot_dimension_numbers<[1], [0], [0], [1], [0, 0, 1, 1], [], []>} : vector<64x64xf32>, vector<64x32xf32>, vector<64x32xf32> -> vector<64x32xf32>
      %53 = arith.addf %51, %52 : vector<64x32xf32>
      %c0_24 = arith.constant 0 : index
      %c0_25 = arith.constant 0 : index
      %54 = vector.load %arg17[%c0_24, %c0_25] : memref<64x32xf32, #tpu.memory_space<vmem>>, vector<64x32xf32>
      tpu.vector_store %arg17[%c0_24, %c0_25], %53 {strides = array<i32>} : memref<64x32xf32, #tpu.memory_space<vmem>>, vector<64x32xf32>,
      %c0_26 = arith.constant 0 : index
      %c0_27 = arith.constant 0 : index
      %55 = vector.load %arg15[%c0_26, %c0_27] : memref<64x1xf32, #tpu.memory_space<vmem>>, vector<64x1xf32>
      tpu.vector_store %arg15[%c0_26, %c0_27], %37 {strides = array<i32>} : memref<64x1xf32, #tpu.memory_space<vmem>>, vector<64x1xf32>,
    } else {
    }
    %c1_i32 = arith.constant 1 : i32
    %12 = arith.cmpi eq, %arg3, %c1_i32 : i32
    %13 = arith.extui %12 : i1 to i32
    %c0_i32_5 = arith.constant 0 : i32
    %14 = arith.cmpi ne, %13, %c0_i32_5 : i32
    scf.if %14 {
      %c0 = arith.constant 0 : index
      %c0_6 = arith.constant 0 : index
      %15 = vector.load %arg17[%c0, %c0_6] : memref<64x32xf32, #tpu.memory_space<vmem>>, vector<64x32xf32>
      %c0_7 = arith.constant 0 : index
      %c0_8 = arith.constant 0 : index
      %16 = vector.load %arg16[%c0_7, %c0_8] : memref<64x1xf32, #tpu.memory_space<vmem>>, vector<64x1xf32>
      %17 = tpu.reciprocal %16 {approx = true} : vector<64x1xf32> -> vector<64x1xf32>
      %18 = vector.broadcast %17 : vector<64x1xf32> to vector<64x32xf32>
      %19 = arith.mulf %15, %18 : vector<64x32xf32>
      %c0_9 = arith.constant 0 : index
      %c0_10 = arith.constant 0 : index
      %c0_11 = arith.constant 0 : index
      %c0_12 = arith.constant 0 : index
      %20 = vector.load %arg11[%c0_9, %c0_10, %c0_11, %c0_12] : memref<1x1x64x32xf32, #tpu.memory_space<vmem>>, vector<1x1x64x32xf32>
      %21 = vector.shape_cast %20 : vector<1x1x64x32xf32> to vector<64x32xf32>
      %22 = vector.shape_cast %19 : vector<64x32xf32> to vector<1x1x64x32xf32>
      tpu.vector_store %arg11[%c0_9, %c0_10, %c0_11, %c0_12], %22 {strides = array<i32>} : memref<1x1x64x32xf32, #tpu.memory_space<vmem>>, vector<1x1x64x32xf32>,
    } else {
    }
    return
  }
  func.func @transform_0(%arg0: i32, %arg1: i32, %arg2: i32, %arg3: i32) -> (i32, i32, i32) {
    %c0_i32 = arith.constant 0 : i32
    %c0_i32_0 = arith.constant 0 : i32
    return %arg0, %arg2, %c0_i32 : i32, i32, i32
  }
  func.func @transform_1(%arg0: i32, %arg1: i32, %arg2: i32, %arg3: i32) -> (i32, i32, i32) {
    %c0_i32 = arith.constant 0 : i32
    %0 = arith.cmpi eq, %arg2, %c0_i32 : i32
    %c0_i32_0 = arith.constant 0 : i32
    %1 = arith.select %0, %arg3, %c0_i32_0 : i32
    %c0_i32_1 = arith.constant 0 : i32
    %c0_i32_2 = arith.constant 0 : i32
    return %arg0, %1, %c0_i32_1 : i32, i32, i32
  }
  func.func @transform_2(%arg0: i32, %arg1: i32, %arg2: i32, %arg3: i32) -> (i32, i32) {
    %c0_i32 = arith.constant 0 : i32
    %c0_i32_0 = arith.constant 0 : i32
    %c0_i32_1 = arith.constant 0 : i32
    return %c0_i32, %c0_i32_0 : i32, i32
  }
  func.func @transform_3(%arg0: i32, %arg1: i32, %arg2: i32, %arg3: i32) -> (i32, i32) {
    %c0_i32 = arith.constant 0 : i32
    %c0_i32_0 = arith.constant 0 : i32
    %c0_i32_1 = arith.constant 0 : i32
    return %c0_i32, %c0_i32_0 : i32, i32
  }
  func.func @transform_4(%arg0: i32, %arg1: i32, %arg2: i32, %arg3: i32) -> (i32, i32, i32) {
    %c0_i32 = arith.constant 0 : i32
    %c0_i32_0 = arith.constant 0 : i32
    %c0_i32_1 = arith.constant 0 : i32
    return %arg1, %c0_i32, %c0_i32_0 : i32, i32, i32
  }
  func.func @transform_5(%arg0: i32, %arg1: i32, %arg2: i32, %arg3: i32) -> (i32, i32, i32) {
    %c0_i32 = arith.constant 0 : i32
    %c0_i32_0 = arith.constant 0 : i32
    %c0_i32_1 = arith.constant 0 : i32
    return %arg1, %c0_i32, %c0_i32_0 : i32, i32, i32
  }
  func.func @transform_6(%arg0: i32, %arg1: i32, %arg2: i32, %arg3: i32) -> (i32, i32, i32) {
    %c0_i32 = arith.constant 0 : i32
    %c0_i32_0 = arith.constant 0 : i32
    %c0_i32_1 = arith.constant 0 : i32
    return %arg1, %c0_i32, %c0_i32_0 : i32, i32, i32
  }
  func.func @transform_7(%arg0: i32, %arg1: i32, %arg2: i32, %arg3: i32) -> (i32, i32, i32, i32) {
    %c0_i32 = arith.constant 0 : i32
    %c0_i32_0 = arith.constant 0 : i32
    return %arg0, %arg1, %arg2, %c0_i32 : i32, i32, i32, i32
  }
}

</mosaic_0001>

<bundles_post_ra>
// kernel: tpu_custom_call.1
= control target key start
LH: loop header
LB: loop body
LE: loop exit
PB: predicated region body
PF: predicated region fallthrough
CT: control target
= control target key end

     0   :  { %s4725_s0 = inlined_call_operand.hbm [shape: f32[2,128,128], index: 0, kind: input, shape index: {}]   ;;  %s4726_s1 = inlined_call_operand.hbm [shape: f32[2,128,128], index: 1, kind: input, shape index: {}]   ;;  %s4727_s2 = inlined_call_operand.hbm [shape: f32[1,128], index: 2, kind: input, shape index: {}]   ;;  %s4728_s3 = inlined_call_operand.hbm [shape: f32[1,128], index: 3, kind: input, shape index: {}]   ;;  %s4729_s4 = inlined_call_operand.hbm [shape: f32[4,128,32], index: 4, kind: input, shape index: {}]   ;;  %s4730_s5 = inlined_call_operand.hbm [shape: f32[4,128,32], index: 5, kind: input, shape index: {}]   ;;  %s4731_s6 = inlined_call_operand.hbm [shape: f32[4,128,32], index: 6, kind: input, shape index: {}]   ;;  %s4732_s7 = inlined_call_operand.hbm [shape: f32[2,4,128,32], index: 7, kind: output, shape index: {}]  }
   0x1   :  { %4787 = sst [smem:[#allocation56_spill]] %s4725_s0 }
   0x2   :  { %4788 = sst [smem:[#allocation57_spill]] %s4726_s1 }
   0x3   :  { %4789 = sst [smem:[#allocation58_spill]] %s4727_s2 }
   0x4   :  { %4790 = sst [smem:[#allocation59_spill]] %s4728_s3 }
   0x5   :  { %4791 = sst [smem:[#allocation60_spill]] %s4729_s4 }
   0x6   :  { %4792 = sst [smem:[#allocation61_spill]] %s4730_s5 }
   0x7   :  { %4793 = sst [smem:[#allocation62_spill]] %s4731_s6 }
   0x8   :  { %4794 = sst [smem:[#allocation63_spill]] %s4732_s7 }
   0x9   :  { %12 = vsyncpa [#allocation9], 0 }
   0xa   :  { %14 = vsyncpa [#allocation9 + $0x1], 0 }
   0xb   :  { %15 = vsyncpa [#allocation12], 0 }
   0xc   :  { %17 = vsyncpa [#allocation12 + $0x1], 0 }
   0xd   :  { %18 = vsyncpa [#allocation15], 0 }
   0xe   :  { %19 = vsyncpa [#allocation10], 0 }
   0xf   :  { %21 = vsyncpa [#allocation10 + $0x1], 0  ;;  %s3619_s24 = smov 0   ;;  %s3621_s25 = smov 0  }
  0x10   :  { %s3623_s26 = smov 0   ;;  %s3625_s27 = smov 0  }
  0x11   :  { %s3627_s28 = smov 0   ;;  %s3629_s29 = smov 0  }
  0x12   :  { %s3631_s30 = smov 0   ;;  %s3633_s8 = smov 0  }
  0x13   :  { %s3635_s9 = smov 0   ;;  %s3637_s10 = smov 0  }
  0x14   :  { %s3639_s11 = smov 0   ;;  %s3641_s12 = smov 0  }
  0x15   :  { %s3643_s13 = smov 0   ;;  %s3645_s14 = smov 0  }
  0x16   :  { %s3647_s15 = smov 0   ;;  %s3649_s16 = smov 0  }
  0x17   :  { %s3651_s17 = smov 0   ;;  %s3653_s18 = smov 0  }
  0x18   :  { %s3655_s19 = smov 0   ;;  %s3657_s20 = smov 0  }
  0x19   :  { %s3659_s21 = smov 0  }
  0x1a LB: > { %4795 = sst [smem:[#allocation28_spill]] %s3481_s24  ;;  %s3721_s22 = sadd.s32 4294967295, %s3561_s21   ;;  %s3561_s21 = sphi %s3659_s21, %s27_s21   ;;  %s3557_s20 = sphi %s3657_s20, %s4927_s20   ;;  %s3553_s19 = sphi %s3655_s19, %s4917_s19   ;;  %s3549_s18 = sphi %s3653_s18, %s4926_s18   ;;  %s3545_s17 = sphi %s3651_s17, %s4913_s17   ;;  %s3541_s16 = sphi %s3649_s16, %s4925_s16   ;;  %s3537_s15 = sphi %s3647_s15, %s4911_s15   ;;  %s3533_s14 = sphi %s3645_s14, %s4910_s14   ;;  %s3529_s13 = sphi %s3643_s13, %s4909_s13   ;;  %s3525_s12 = sphi %s3641_s12, %s4908_s12   ;;  %s3521_s11 = sphi %s3639_s11, %s4907_s11   ;;  %s3517_s10 = sphi %s3637_s10, %s4906_s10   ;;  %s3513_s9 = sphi %s3635_s9, %s4905_s9   ;;  %s3509_s8 = sphi %s3633_s8, %s4924_s8   ;;  %s3505_s30 = sphi %s3631_s30, %s4923_s30   ;;  %s3501_s29 = sphi %s3629_s29, %s4921_s29   ;;  %s3497_s28 = sphi %s3627_s28, %s4920_s28   ;;  %s3493_s27 = sphi %s3625_s27, %s4918_s27   ;;  %s3489_s26 = sphi %s3623_s26, %s4916_s26   ;;  %s3485_s25 = sphi %s3621_s25, %s4914_s25   ;;  %s3481_s24 = sphi %s3619_s24, %s4902_s24  }
  0x1b   : > { %4796 = sst [smem:[#allocation29_spill]] %s3485_s25  ;;  %s2262_s23 = sadd.s32 4294967294, %s3561_s21  }
  0x1c   : > { %4797 = sst [smem:[#allocation30_spill]] %s3513_s9  ;;  %p4745_p0 = scmp.eq.s32.totalorder %s3721_s22, 0 }
  0x1d   : > { %4798 = sst [smem:[#allocation31_spill]] %s3521_s11  ;;  %p107_p1 = scmp.ne.s32.totalorder %s3509_s8, %s3505_s30 }
  0x1e   : > { %4799 = sst [smem:[#allocation32_spill]] %s3525_s12  ;;  %p175_p2 = scmp.ne.s32.totalorder %s3497_s28, %s3493_s27 }
  0x1f   : > { %4800 = sst [smem:[#allocation33_spill]] %s3529_s13  ;;  %p3730_p3 = por %p107_p1, %p4745_p0 }
  0x20   : > { %4801 = sst [smem:[#allocation34_spill]] %s3533_s14  ;;  %p254_p4 = scmp.ne.s32.totalorder %s3489_s26, %s3485_s25 }
  0x21   : > { %4802 = sst [smem:[#allocation35_spill]] %s3537_s15  ;;  %p3738_p5 = por %p175_p2, %p4745_p0 }
  0x22   : > { %4803 = sst [smem:[#allocation36_spill]] %s3541_s16  ;;  %p255_p6 = scmp.eq.s32.totalorder %s3721_s22, 31 }
  0x23   : > { %4804 = sst [smem:[#allocation37_spill]] %s3545_s17  ;;  %p260_p7 = scmp.ne.s32.totalorder %s3485_s25, %s3481_s24 }
  0x24   : > { %4805 = sst [smem:[#allocation38_spill]] %s3549_s18  ;;  %p261_p8 = scmp.eq.s32.totalorder %s2262_s23, 31 }
  0x25   : > { %4806 = sst [smem:[#allocation39_spill]] %s3553_s19  ;;  %p3745_p9 = por %p255_p6, %p254_p4 }
  0x26   : > { %4807 = sst [smem:[#allocation40_spill]] %s3557_s20  ;;  %p2263_p10 = scmp.ge.s32.totalorder %s3561_s21, 1 }
  0x27   : > { %4808 = sst [smem:[#allocation41_spill]] %s3721_s22  ;;  %p3750_p11 = por %p261_p8, %p260_p7 }
  0x28   : > { %s4809_s16 = scalar_select %p3730_p3, 1, 0 }
  0x29   : > { %s4811_s15 = scalar_select %p3738_p5, 1, 0 }
  0x2a   : > { %4810 = sst [smem:[#allocation42_spill]] %s4809_s16  ;;  %p268_p12 = scmp.lt.s32.totalorder %s3561_s21, 33 }
  0x2b   : > { %4812 = sst [smem:[#allocation43_spill]] %s4811_s15  ;;  %s3563_s7 = smov [#allocation13]  }
  0x2c   : > { %s4813_s13 = scalar_select %p3745_p9, 1, 0 }
  0x2d   : > { %s4815_s27 = scalar_select %p3750_p11, 1, 0 }
  0x2e   : > { %4814 = sst [smem:[#allocation44_spill]] %s4813_s13  ;;  %p3755_p13 = pnand %p2263_p10, %p268_p12 }
  0x2f   : > { %4816 = sst [smem:[#allocation45_spill]] %s4815_s27  ;;  %s281_s14 = sshll.u32 %s3563_s7, 4  ;;  %s282_s14 = int_to_ptr.vmem [resolvable:$true] %s281_s14 }
  0x30   : > { %s4817_s30 = scalar_select %p3755_p13, 1, 0 }
  0x31   : > { %p2802_p1 = pneg %p3755_p13  ;;  %s4821_s2 = sld [smem:[#allocation58_spill]] }
  0x32   : > { %4818 = sst [smem:[#allocation46_spill]] %s4817_s30 }
  0x33   : > { %p3763_p2 = pnand %p2802_p1, %p4745_p0 }
  0x35   : > { %s4819_s23 = scalar_select %p3763_p2, 1, 0 }
  0x36   : > { %p4767_p6 = pneg %p3763_p2 }
  0x37   : > { %4820 = sst [smem:[#allocation47_spill]] %s4819_s23  ;;  %s3129_s27 = scalar_lea.hbm %s4821_s2, 16 }
  0x38   : > { %p3130_p4 = scmp.ne.s32.totalorder %s4821_s2, %s3129_s27  ;;  %p3136_p10 = scmp.lt.u32.totalorder %s3129_s27, %s4821_s2 }
  0x3a   : > { %p3132_p7 = pnand %p4767_p6, %p3130_p4 }
  0x3c   : > { %p3133_p8 = pneg %p3132_p7 }
  0x3e   : > { %p3138_p12 = pnand %p3136_p10, %p3133_p8 }
  0x40   : > { %3141 = shalt.err (!%p3138_p12)
}
  0x41   : > { %s3142_s24 = scalar_lea.vmem %s282_s14, 16  ;;  %s3149_s25 = scalar_lea.vmem %s282_s14, 32 }
  0x42   : > { %p3143_p1 = scmp.ne.s32.totalorder %s282_s14, %s3142_s24  ;;  %p3150_p9 = scmp.lt.s32.totalorder %s282_s14, %s282_s14 }
  0x43   : > { %p3151_p5 = scmp.lt.s32.totalorder %s3149_s25, %s3142_s24 }
  0x44   : > { %p3145_p0 = pnand %p3143_p1, %p4767_p6 }
  0x45   : > { %p3152_p3 = por %p3151_p5, %p3150_p9 }
  0x46   : > { %p3146_p11 = pneg %p3145_p0 }
  0x48   : > { %p3153_p13 = pnand %p3152_p3, %p3146_p11 }
  0x4a   : > { %3156 = shalt.err (!%p3153_p13)
}
  0x4b   : > { %2805 = dma.hbm_to_vmem [thread:$0]  (!%p3763_p2), %s4821_s2, 16, %s282_s14, [#allocation12]  }
  0x4c   : > { %s42_s16 = sadd.s32 1, %s3545_s17  ;;  %s45_s27 = sadd.s32 1, %s3549_s18 }
  0x4d   : > { %p43_p0 = scmp.ge.s32.totalorder %s42_s16, 2  ;;  %s49_s7 = sadd.s32 1, %s3553_s19 }
  0x4e   : > { %s53_s24 = sadd.s32 1, %s3557_s20  ;;  %p69_p3 = scmp.ne.s32.totalorder %s3525_s12, %s3521_s11 }
  0x4f   : > { %s4929_s16 = smov (%p43_p0, %s42_s16), 0  ;;  %s4931_s27 = smov (!%p43_p0, %s45_s27), %s3549_s18 }
  0x50   : > { %4822 = sst [smem:[#allocation48_spill]] %s4929_s16  ;;  %p47_p5 = scmp.ge.s32.totalorder %s4931_s27, 2 }
  0x51   : > { %p4769_p9 = scmp.eq.s32.totalorder %s3561_s21, 0  ;;  %p75_p11 = scmp.ne.s32.totalorder %s3521_s11, %s3517_s10 }
  0x52   : > { %p85_p13 = scmp.eq.s32.totalorder %s3549_s18, 0  ;;  %s4933_s27 = smov (%p47_p5, %s4931_s27), 0 }
  0x53   : > { %4823 = sst [smem:[#allocation49_spill]] %s4933_s27  ;;  %s4935_s7 = smov (!%p47_p5, %s49_s7), %s3553_s19 }
  0x54   : > { %s58_s14 = ssub.s32 %s3549_s18, %s4933_s27  ;;  %p3810_p4 = por %p4769_p9, %p69_p3 }
  0x55   : > { %p51_p7 = scmp.ge.s32.totalorder %s4935_s7, 4  ;;  %p4825_p8 = scmp.eq.s32.totalorder %s3721_s22, 0 }
  0x56   : > { %s3821_s10 = scalar_select %p85_p13, %s3545_s17, 0 }
  0x57   : > { %p3816_p10 = por %p4825_p8, %p75_p11  ;;  %s4937_s7 = smov (%p51_p7, %s4935_s7), 0 }
  0x58   : > { %4828 = sst [smem:[#allocation51_spill]] %s4937_s7  ;;  %s4939_s24 = smov (!%p51_p7, %s53_s24), %s3557_s20 }
  0x59   : > { %s4826_s15 = scalar_select %p3816_p10, 1, 0 }
  0x5a   : > { %p87_p12 = scmp.eq.s32.totalorder %s4933_s27, 0  ;;  %s3829_s25 = ssub.s32 %s3553_s19, %s4937_s7 }
  0x5b   : > { %4827 = sst [smem:[#allocation50_spill]] %s4826_s15  ;;  %p55_p1 = scmp.ge.s32.totalorder %s4939_s24, 2 }
  0x5c   : > { %s88_s2 = scalar_select %p87_p12, %s4929_s16, 0 }
  0x5d   : > { %s4941_s24 = smov (%p55_p1, %s4939_s24), 0  ;;  %p4768_p3 = scmp.lt.s32.totalorder %s3561_s21, 32 }
  0x5e   : > { %4829 = sst [smem:[#allocation52_spill]] %s4941_s24  ;;  %s4830_s17 = smov %s4941_s24 }
  0x5f   : > { %s90_s15 = ssub.s32 %s3821_s10, %s88_s2  ;;  %s57_s11 = ssub.s32 %s3557_s20, %s4830_s17 }
  0x60   : > { %s59_s7 = sor.u32 %s58_s14, %s57_s11  ;;  %s3840_s27 = sor.u32 %s90_s15, %s57_s11 }
  0x61   : > { %p60_p5 = scmp.eq.s32.totalorder %s59_s7, 0  ;;  %s239_s16 = sor.u32 %s3829_s25, %s57_s11 }
  0x62   : > { %s4831_s30 = sadd.s32 1, %s3525_s12  ;;  %s241_s6 = sor.u32 %s239_s16, %s58_s14 }
  0x63   : > { %s3847_s24 = scalar_select %p60_p5, %s3525_s12, %s4831_s30  }
  0x64   : > { %s305_s2 = sand.u32 1, %s3525_s12   ;;  %p242_p13 = scmp.eq.s32.totalorder %s241_s6, 0 }
  0x65   : > { %4832 = sst [smem:[#allocation53_spill]] %s3847_s24  ;;  %s2267_s3 = sshll.u32 %s305_s2, 6 }
  0x66   : > { %s2268_s17 = sshll.u32 %s3549_s18, 3  ;;  %s4833_s22 = sadd.s32 1, %s3489_s26 }
  0x67   : > { %s3854_s5 = scalar_select %p242_p13, %s3489_s26, %s4833_s22  }
  0x68   : > { %s2269_s15 = sshll.u32 %s3557_s20, 4  ;;  %s307_s23 = scalar_lea.vmem [#allocation8], %s2267_s3 }
  0x69   : > { %s316_s4 = sshll.u32 %s307_s23, 4  ;;  %s313_s7 = sadd.s32 %s2269_s15, %s2268_s17  ;;  %s3859_s4 = int_to_ptr.vmem [resolvable:$true] %s316_s4 }
  0x6a   : > { %s2270_s11 = sshll.u32 %s313_s7, 7  ;;  %p3865_p7 = pnand %p4768_p3, %p3810_p4 }
  0x6b   : > { %s4835_s0 = sld [smem:[#allocation56_spill]]  ;;  %s4836_s3 = sand.u32 1, %s3561_s21  }
  0x6c   : > { %s3876_s17 = scalar_lea.sflag [#allocation9], %s4836_s3  ;;  %p3159_p4 = pneg %p3865_p7 }
  0x71   : > { %s3872_s22 = scalar_lea.hbm %s4835_s0, %s2270_s11  ;;  %s3162_s2 = scalar_lea.hbm %s4835_s0, 4096 }
  0x72   : > { %s3157_s23 = scalar_lea.hbm %s3872_s22, 1024  ;;  %p3163_p5 = scmp.lt.u32.totalorder %s3872_s22, %s4835_s0 }
  0x73   : > { %p3158_p8 = scmp.ne.s32.totalorder %s3872_s22, %s3157_s23  ;;  %p3164_p13 = scmp.lt.u32.totalorder %s3162_s2, %s3157_s23 }
  0x74   : > { %p3166_p0 = scmp.lt.u32.totalorder %s3157_s23, %s3872_s22 }
  0x75   : > { %p3160_p12 = pnand %p3159_p4, %p3158_p8  ;;  %p3165_p6 = por %p3164_p13, %p3163_p5 }
  0x77   : > { %p3161_p1 = pneg %p3160_p12  ;;  %p3167_p3 = por %p3166_p0, %p3165_p6 }
  0x79   : > { %p3168_p9 = pnand %p3167_p3, %p3161_p1 }
  0x7b   : > { %3171 = shalt.err (!%p3168_p9)
}
  0x7c   : > { %s3172_s6 = scalar_lea.vmem %s3859_s4, 1024  ;;  %s3564_s16 = smov [#allocation8]  }
  0x7d   : > { %p3173_p8 = scmp.ne.s32.totalorder %s3859_s4, %s3172_s6  ;;  %s3177_s3 = sshll.u32 %s3564_s16, 4  ;;  %s3178_s3 = int_to_ptr.vmem [resolvable:$false] %s3177_s3 }
  0x7e   : > { %s3179_s14 = scalar_lea.vmem %s3178_s3, 2048  ;;  %p3180_p10 = scmp.lt.s32.totalorder %s3859_s4, %s3178_s3 }
  0x7f   : > { %p3175_p12 = pnand %p3173_p8, %p3159_p4  ;;  %p3181_p5 = scmp.lt.s32.totalorder %s3179_s14, %s3172_s6 }
  0x81   : > { %p3176_p11 = pneg %p3175_p12  ;;  %p3182_p13 = por %p3181_p5, %p3180_p10 }
  0x83   : > { %p3183_p6 = pnand %p3182_p13, %p3176_p11 }
  0x85   : > { %3186 = shalt.err (!%p3183_p6)
}
  0x86   : > { %s4771_s23 = smov 128   ;;  %s4773_s13 = smov 8  }
  0x87   : > { %2812 = dma.hbm_to_vmem [thread:$0]  (!%p3865_p7), %s3872_s22, 1024, %s3859_s4, %s3876_s17, %s4771_s23, %s4771_s23, %s4773_s13  }
  0x88   : > { %s2272_s2 = sshll.u32 %s3821_s10, 3  ;;  %s4837_s1 = sld [smem:[#allocation57_spill]] }
  0x89   : > { %s338_s7 = sadd.s32 %s2272_s2, %s2269_s15  ;;  %s94_s30 = sadd.s32 1, %s3513_s9 }
  0x8a   : > { %s2274_s11 = sshll.u32 %s338_s7, 7  ;;  %p4838_p9 = scmp.eq.s32.totalorder %s3840_s27, 0 }
  0x8b   : > { %p101_p10 = scmp.ne.s32.totalorder %s3513_s9, %s3509_s8  ;;  %s328_s4 = sand.u32 1, %s3513_s9  }
  0x8c   : > { %s3919_s14 = scalar_select %p4838_p9, %s3513_s9, %s94_s30  }
  0x8d   : > { %s2271_s22 = sshll.u32 %s328_s4, 6  ;;  %p4840_p0 = scmp.eq.s32.totalorder %s3561_s21, 0 }
  0x8e   : > { %s3913_s3 = scalar_lea.hbm %s4837_s1, %s2274_s11  ;;  %4839 = sst [smem:[#allocation54_spill]] %s3919_s14 }
  0x8f   : > { %p103_p3 = por %p101_p10, %p4840_p0  ;;  %s330_s10 = scalar_lea.vmem [#allocation11], %s2271_s22 }
  0x90   : > { %s341_s15 = sshll.u32 %s330_s10, 4  ;;  %p4841_p11 = scmp.lt.s32.totalorder %s3561_s21, 32  ;;  %s3926_s15 = int_to_ptr.vmem [resolvable:$true] %s341_s15 }
  0x91   : > { %s162_s27 = sadd.s32 1, %s3501_s29  ;;  %s353_s7 = sand.u32 1, %s3501_s29  }
  0x92   : > { %p3930_p7 = pnand %p4841_p11, %p103_p3  ;;  %s4843_s11 = sand.u32 1, %s3561_s21  }
  0x93   : > { %s3940_s6 = scalar_lea.sflag [#allocation12], %s4843_s11  ;;  %s3187_s16 = scalar_lea.hbm %s3913_s3, 1024 }
  0x94   : > { %p3188_p1 = scmp.ne.s32.totalorder %s3913_s3, %s3187_s16  ;;  %p3189_p8 = pneg %p3930_p7 }
  0x95   : > { %s3192_s22 = scalar_lea.hbm %s4837_s1, 4096  ;;  %p3193_p13 = scmp.lt.u32.totalorder %s3913_s3, %s4837_s1 }
  0x96   : > { %p3190_p12 = pnand %p3189_p8, %p3188_p1  ;;  %p3194_p6 = scmp.lt.u32.totalorder %s3192_s22, %s3187_s16 }
  0x97   : > { %p3196_p10 = scmp.lt.u32.totalorder %s3187_s16, %s3913_s3 }
  0x98   : > { %p3191_p5 = pneg %p3190_p12  ;;  %p3195_p9 = por %p3194_p6, %p3193_p13 }
  0x9a   : > { %p3197_p0 = por %p3196_p10, %p3195_p9 }
  0x9c   : > { %p3198_p3 = pnand %p3197_p0, %p3191_p5 }
  0x9e   : > { %3201 = shalt.err (!%p3198_p3)
}
  0x9f   : > { %s3202_s11 = scalar_lea.vmem %s3926_s15, 1024  ;;  %s3567_s30 = smov [#allocation11]  }
  0xa0   : > { %p3203_p11 = scmp.ne.s32.totalorder %s3926_s15, %s3202_s11  ;;  %s3207_s4 = sshll.u32 %s3567_s30, 4  ;;  %s3208_s4 = int_to_ptr.vmem [resolvable:$false] %s3207_s4 }
  0xa1   : > { %s3209_s23 = scalar_lea.vmem %s3208_s4, 2048  ;;  %p3210_p4 = scmp.lt.s32.totalorder %s3926_s15, %s3208_s4 }
  0xa2   : > { %p3205_p1 = pnand %p3203_p11, %p3189_p8  ;;  %p3211_p13 = scmp.lt.s32.totalorder %s3209_s23, %s3202_s11 }
  0xa4   : > { %p3206_p12 = pneg %p3205_p1  ;;  %p3212_p6 = por %p3211_p13, %p3210_p4 }
  0xa6   : > { %p3213_p9 = pnand %p3212_p6, %p3206_p12 }
  0xa8   : > { %3216 = shalt.err (!%p3213_p9)
}
  0xa9   : > { %s4844_s16 = smov 128   ;;  %p4845_p4 = scmp.eq.s32.totalorder %s3829_s25, 0 }
  0xaa   : > { %2815 = dma.hbm_to_vmem [thread:$0]  (!%p3930_p7), %s3913_s3, 1024, %s3926_s15, %s3940_s6, %s4844_s16, %s4844_s16, %s4773_s13  }
  0xab   : > { %s3976_s22 = scalar_select %p4845_p4, %s3501_s29, %s162_s27  }
  0xac   : > { %p4847_p8 = scmp.eq.s32.totalorder %s3561_s21, 0  ;;  %p4848_p5 = scmp.ne.s32.totalorder %s3501_s29, %s3497_s28 }
  0xad   : > { %4846 = sst [smem:[#allocation55_spill]] %s3976_s22  ;;  %s3985_s2 = sshll.u32 %s353_s7, 7 }
  0xae   : > { %p171_p10 = por %p4848_p5, %p4847_p8  ;;  %s3988_s10 = sshll.u32 %s3553_s19, 11 }
  0xaf   : > { %s4849_s4 = sld [smem:[#allocation60_spill]]  ;;  %s355_s25 = scalar_lea.vmem [#allocation16], %s3985_s2 }
  0xb0   : > { %s362_s3 = sshll.u32 %s355_s25, 4  ;;  %p4850_p7 = scmp.lt.s32.totalorder %s3561_s21, 32  ;;  %s3997_s3 = int_to_ptr.vmem [resolvable:$true] %s362_s3 }
  0xb1   : > { %s3568_s27 = smov [#allocation14]  }
  0xb2   : > { %p4001_p0 = pnand %p4850_p7, %p171_p10  ;;  %s4005_s7 = sshll.u32 %s3568_s27, 4  ;;  %s293_s7 = int_to_ptr.vmem [resolvable:$true] %s4005_s7 }
  0xb4   : > { %s4851_s15 = scalar_select %p4001_p0, 1, 0 }
  0xb5   : > { %s3994_s23 = scalar_lea.hbm %s4849_s4, %s3988_s10  ;;  %p4011_p11 = pneg %p4001_p0 }
  0xb6   : > { %s3217_s11 = scalar_lea.hbm %s3994_s23, 2048  ;;  %s3222_s0 = scalar_lea.hbm %s4849_s4, 8192 }
  0xb7   : > { %p3218_p3 = scmp.ne.s32.totalorder %s3994_s23, %s3217_s11  ;;  %p3223_p13 = scmp.lt.u32.totalorder %s3994_s23, %s4849_s4 }
  0xb8   : > { %s4852_s30 = scalar_select %p4011_p11, 1, 0 }
  0xb9   : > { %p3220_p1 = pnand %p4011_p11, %p3218_p3  ;;  %p3224_p6 = scmp.lt.u32.totalorder %s3222_s0, %s3217_s11 }
  0xba   : > { %p3226_p4 = scmp.lt.u32.totalorder %s3217_s11, %s3994_s23 }
  0xbb   : > { %p3221_p12 = pneg %p3220_p1  ;;  %p3225_p9 = por %p3224_p6, %p3223_p13 }
  0xbd   : > { %p3227_p8 = por %p3226_p4, %p3225_p9 }
  0xbf   : > { %p3228_p5 = pnand %p3227_p8, %p3221_p12 }
  0xc1   : > { %3231 = shalt.err (!%p3228_p5)
}
  0xc2   : > { %s3232_s27 = scalar_lea.vmem %s3997_s3, 2048  ;;  %s3569_s13 = smov [#allocation16]  }
  0xc3   : > { %p3233_p10 = scmp.ne.s32.totalorder %s3997_s3, %s3232_s27  ;;  %s3237_s25 = sshll.u32 %s3569_s13, 4  ;;  %s3238_s25 = int_to_ptr.vmem [resolvable:$false] %s3237_s25 }
  0xc4   : > { %s3239_s1 = scalar_lea.vmem %s3238_s25, 4096  ;;  %p3240_p1 = scmp.lt.s32.totalorder %s3997_s3, %s3238_s25 }
  0xc5   : > { %p3235_p7 = pnand %p3233_p10, %p4011_p11  ;;  %p3241_p2 = scmp.lt.s32.totalorder %s3239_s1, %s3232_s27 }
  0xc7   : > { %p3236_p3 = pneg %p3235_p7  ;;  %p3242_p13 = por %p3241_p2, %p3240_p1 }
  0xc9   : > { %p3243_p6 = pnand %p3242_p13, %p3236_p3 }
  0xcb   : > { %3246 = shalt.err (!%p3243_p6)
}
  0xcc   : > { %s4853_s0 = smov 8   ;;  %s4854_s20 = sld [smem:[#allocation47_spill]] }
  0xcd   : > { %2818 = dma.hbm_to_vmem [thread:$0]  (!%p4001_p0), %s3994_s23, 2048, %s3997_s3, %s3876_s17, %s4844_s16, %s4844_s16, %s4853_s0  }
  0xce   : > { %s4855_s25 = sld [smem:[#allocation61_spill]]  ;;  %s4857_s18 = sld [smem:[#allocation59_spill]] }
  0xd2   : > { %p4859_p12 = scmp.ne.s32.totalorder %s4854_s20, 0 }
  0xd4   : > { %s4856_s4 = smov %s4855_s25  ;;  %s4043_s27 = scalar_lea.hbm %s4855_s25, %s3988_s10 }
  0xd5   : > { %s4858_s22 = smov %s4857_s18  ;;  %s3247_s24 = scalar_lea.hbm %s4857_s18, 16 }
  0xd6   : > { %p3248_p2 = scmp.ne.s32.totalorder %s4858_s22, %s3247_s24  ;;  %p4860_p9 = pneg %p4859_p12 }
  0xd7   : > { %p3254_p5 = scmp.lt.u32.totalorder %s3247_s24, %s4858_s22 }
  0xd8   : > { %p3250_p4 = pnand %p3248_p2, %p4860_p9 }
  0xda   : > { %p3251_p8 = pneg %p3250_p4 }
  0xdc   : > { %p3256_p10 = pnand %p3254_p5, %p3251_p8 }
  0xde   : > { %3259 = shalt.err (!%p3256_p10)
}
  0xdf   : > { %s3260_s3 = scalar_lea.vmem %s293_s7, 16  ;;  %p4861_p3 = pmov %p4860_p9 }
  0xe0   : > { %p3261_p7 = scmp.ne.s32.totalorder %s293_s7, %s3260_s3  ;;  %s3267_s18 = scalar_lea.vmem %s293_s7, 32 }
  0xe1   : > { %p3268_p6 = scmp.lt.s32.totalorder %s293_s7, %s293_s7  ;;  %p3269_p0 = scmp.lt.s32.totalorder %s3267_s18, %s3260_s3 }
  0xe2   : > { %p3263_p1 = pnand %p3261_p7, %p4861_p3 }
  0xe3   : > { %p3270_p11 = por %p3269_p0, %p3268_p6 }
  0xe4   : > { %p3264_p13 = pneg %p3263_p1 }
  0xe6   : > { %p3271_p2 = pnand %p3270_p11, %p3264_p13 }
  0xe8   : > { %3274 = shalt.err (!%p3271_p2)
}
  0xe9   : > { %2808 = dma.hbm_to_vmem [thread:$0]  (!%p4859_p12), %s4858_s22, 16, %s293_s7, [#allocation15]  }
  0xea   : > { %s376_s19 = scalar_lea.vmem [#allocation17], %s3985_s2  ;;  %s4862_s13 = sld [smem:[#allocation62_spill]] }
  0xeb   : > { %s383_s24 = sshll.u32 %s376_s19, 4  ;;  %s3275_s20 = scalar_lea.hbm %s4043_s27, 2048  ;;  %s4066_s24 = int_to_ptr.vmem [resolvable:$true] %s383_s24 }
  0xec   : > { %p3276_p0 = scmp.ne.s32.totalorder %s4043_s27, %s3275_s20  ;;  %p4864_p11 = scmp.ne.s32.totalorder %s4852_s30, 0 }
  0xed   : > { %s3280_s18 = scalar_lea.hbm %s4856_s4, 8192  ;;  %p3281_p12 = scmp.lt.u32.totalorder %s4043_s27, %s4856_s4 }
  0xee   : > { %p3278_p9 = pnand %p3276_p0, %p4864_p11  ;;  %p3282_p8 = scmp.lt.u32.totalorder %s3280_s18, %s3275_s20 }
  0xef   : > { %p3284_p10 = scmp.lt.u32.totalorder %s3275_s20, %s4043_s27 }
  0xf0   : > { %s4863_s1 = smov %s4862_s13  ;;  %s4072_s25 = scalar_lea.hbm %s4862_s13, %s3988_s10 }
  0xf1   : > { %p3279_p4 = pneg %p3278_p9  ;;  %p3283_p5 = por %p3282_p8, %p3281_p12 }
  0xf3   : > { %p3285_p7 = por %p3284_p10, %p3283_p5 }
  0xf5   : > { %p3286_p3 = pnand %p3285_p7, %p3279_p4 }
  0xf7   : > { %3289 = shalt.err (!%p3286_p3)
}
  0xf8   : > { %s3290_s10 = scalar_lea.vmem %s4066_s24, 2048  ;;  %s3570_s9 = smov [#allocation17]  }
  0xf9   : > { %p3291_p1 = scmp.ne.s32.totalorder %s4066_s24, %s3290_s10  ;;  %s3295_s19 = sshll.u32 %s3570_s9, 4  ;;  %s3296_s19 = int_to_ptr.vmem [resolvable:$false] %s3295_s19 }
  0xfa   : > { %s3297_s14 = scalar_lea.vmem %s3296_s19, 4096  ;;  %p3298_p2 = scmp.lt.s32.totalorder %s4066_s24, %s3296_s19 }
  0xfb   : > { %p3293_p13 = pnand %p3291_p1, %p4864_p11  ;;  %p3299_p0 = scmp.lt.s32.totalorder %s3297_s14, %s3290_s10 }
  0xfd   : > { %p3294_p6 = pneg %p3293_p13  ;;  %p3300_p9 = por %p3299_p0, %p3298_p2 }
  0xff   : > { %p3301_p12 = pnand %p3300_p9, %p3294_p6 }
 0x101   : > { %3304 = shalt.err (!%p3301_p12)
}
 0x102   : > { %p4865_p4 = scmp.ne.s32.totalorder %s4851_s15, 0  ;;  %s397_s11 = scalar_lea.vmem [#allocation18], %s3985_s2 }
 0x103   : > { %s404_s13 = sshll.u32 %s397_s11, 4  ;;  %s3305_s20 = scalar_lea.hbm %s4072_s25, 2048  ;;  %s4100_s13 = int_to_ptr.vmem [resolvable:$true] %s404_s13 }
 0x104   : > { %2821 = dma.hbm_to_vmem [thread:$0]  (!%p4865_p4), %s4043_s27, 2048, %s4066_s24, %s3940_s6, %s4844_s16, %s4844_s16, %s4853_s0  }
 0x105   : > { %p3306_p8 = scmp.ne.s32.totalorder %s4072_s25, %s3305_s20  ;;  %s3310_s18 = scalar_lea.hbm %s4863_s1, 8192 }
 0x106   : > { %p3311_p7 = scmp.lt.u32.totalorder %s4072_s25, %s4863_s1  ;;  %p3312_p3 = scmp.lt.u32.totalorder %s3310_s18, %s3305_s20 }
 0x107   : > { %p3308_p5 = pnand %p3306_p8, %p4864_p11  ;;  %p3314_p13 = scmp.lt.u32.totalorder %s3305_s20, %s4072_s25 }
 0x108   : > { %p3313_p1 = por %p3312_p3, %p3311_p7 }
 0x109   : > { %p3309_p10 = pneg %p3308_p5 }
 0x10a   : > { %p3315_p6 = por %p3314_p13, %p3313_p1 }
 0x10c   : > { %p3316_p2 = pnand %p3315_p6, %p3309_p10 }
 0x10e   : > { %3319 = shalt.err (!%p3316_p2)
}
 0x10f   : > { %s3320_s6 = scalar_lea.vmem %s4100_s13, 2048  ;;  %s3571_s2 = smov [#allocation18]  }
 0x110   : > { %p3321_p0 = scmp.ne.s32.totalorder %s4100_s13, %s3320_s6  ;;  %s3325_s27 = sshll.u32 %s3571_s2, 4  ;;  %s3326_s27 = int_to_ptr.vmem [resolvable:$false] %s3325_s27 }
 0x111   : > { %s3327_s24 = scalar_lea.vmem %s3326_s27, 4096  ;;  %p3328_p8 = scmp.lt.s32.totalorder %s4100_s13, %s3326_s27 }
 0x112   : > { %p3323_p9 = pnand %p3321_p0, %p4864_p11  ;;  %p3329_p5 = scmp.lt.s32.totalorder %s3327_s24, %s3320_s6 }
 0x114   : > { %p3324_p12 = pneg %p3323_p9  ;;  %p3330_p7 = por %p3329_p5, %p3328_p8 }
 0x116   : > { %p3331_p3 = pnand %p3330_p7, %p3324_p12 }
 0x118   : > { %3334 = shalt.err (!%p3331_p3)
}
 0x119   : > { %2824 = dma.hbm_to_vmem [thread:$0]  (!%p4865_p4), %s4072_s25, 2048, %s4100_s13, %s3876_s17, %s4844_s16, %s4844_s16, %s4853_s0  }
 0x11a   : > { %s4866_s30 = sld [smem:[#allocation46_spill]] }
 0x120   : > { %p4867_p11 = scmp.ne.s32.totalorder %s4866_s30, 0 }
 0x121   : > { %s4868_s10 = sld [smem:[#allocation41_spill]] (!%p4867_p11)  ;;  %s4869_s9 = sld [smem:[#allocation31_spill]] (!%p4867_p11) }
 0x122   : > { %416 = sbr.rel (%p4867_p11) target bundleno = 2444 (0x98c), region = 48  ;;  %s4870_s19 = sld [smem:[#allocation50_spill]] (!%p4867_p11) }
 0x127   : > { %s418_s14 = sand.u32 (!%p4867_p11), 1, %s4868_s10   ;;  %s420_s11 = sand.u32 (!%p4867_p11), 1, %s4869_s9  }
 0x128   : > { %s2285_s20 = sshll.u32 (!%p4867_p11), %s420_s11, 6  ;;  %s419_s23 = scalar_lea.sflag (!%p4867_p11), [#allocation9], %s418_s14 }
 0x129   : > { %s4131_s3 = scalar_lea.vmem [#allocation8], %s2285_s20  ;;  %p4871_p10 = scmp.ne.s32.totalorder %s4870_s19, 0 }
 0x12b   : > { %3448 = dma.done.wait (%p4871_p10), %s419_s23, 1024  }
 0x12c   : > { %3450 = vsyncadd (%p4871_p10), %s419_s23, 4294966272  ;;  %s4872_s15 = sld [smem:[#allocation42_spill]]  ;;  %s429_s17 = sand.u32 1, %s3509_s8  }
 0x12d   : > { %s2286_s16 = sshll.u32 %s429_s17, 6  ;;  %s428_s0 = scalar_lea.sflag [#allocation12], %s418_s14 }
 0x12e   : > { %s4138_s25 = scalar_lea.vmem [#allocation11], %s2286_s16 }
 0x132   : > { %p4873_p4 = scmp.ne.s32.totalorder %s4872_s15, 0 }
 0x134   : > { %3452 = dma.done.wait (%p4873_p4), %s428_s0, 1024  }
 0x135   : > { %3454 = vsyncadd (%p4873_p4), %s428_s0, 4294966272  ;;  %p4874_p1 = scmp.eq.s32.totalorder %s4868_s10, 0 }
 0x137   : > { %3456 = dma.done.wait (%p4874_p1), [#allocation12], 16   ;;  %p4875_p13 = pmov %p4874_p1 }
 0x138   : > { %p4876_p6 = pmov %p4874_p1 }
 0x139   : > { %3458 = vsyncadd (%p4875_p13), [#allocation12], 4294967280 }
 0x13a   : > { %3460 = dma.done.wait (%p4876_p6), [#allocation15], 16   ;;  %p4877_p2 = pmov %p4874_p1 }
 0x13b   : > { %s4878_s13 = sld [smem:[#allocation43_spill]]  ;;  %s446_s18 = sand.u32 1, %s3497_s28  }
 0x13c   : > { %3462 = vsyncadd (%p4877_p2), [#allocation15], 4294967280  ;;  %s2289_s12 = sshll.u32 %s446_s18, 7 }
 0x13d   : > { %s4153_s7 = scalar_lea.vmem [#allocation16], %s2289_s12 }
 0x141   : > { %p4879_p0 = scmp.ne.s32.totalorder %s4878_s13, 0 }
 0x143   : > { %3464 = dma.done.wait (%p4879_p0), %s419_s23, 2048  }
 0x144   : > { %3466 = vsyncadd (%p4879_p0), %s419_s23, 4294965248  ;;  %s4159_s6 = scalar_lea.vmem [#allocation17], %s2289_s12 }
 0x145   : > { %3468 = dma.done.wait (%p4879_p0), %s428_s0, 2048  }
 0x146   : > { %3470 = vsyncadd (%p4879_p0), %s428_s0, 4294965248  ;;  %s4165_s2 = scalar_lea.vmem [#allocation18], %s2289_s12 }
 0x147   : > { %3472 = dma.done.wait (%p4879_p0), %s419_s23, 2048  }
 0x148   : > { %3474 = vsyncadd (%p4879_p0), %s419_s23, 4294965248  ;;  %s4880_s27 = sld [smem:[#allocation29_spill]]  ;;  %s4881_s9 = sld [smem:[#allocation34_spill]] }
 0x14e   : > { %s514_s24 = sand.u32 1, %s4880_s27   ;;  %p2293_p9 = scmp.ne.s32.totalorder %s4881_s9, 0 }
 0x14f   : > { %s2292_s30 = sshll.u32 %s514_s24, 6  ;;  %v526_v0 = vld [vmem:[%s4138_s25] sm:$0xff] (!%p2293_p9)  ;;  %v528_v1 = vld [vmem:[%s4138_s25 + $0x10] sm:$0xff] (!%p2293_p9)  ;;  %v527_v2 = vld [vmem:[%s4138_s25 + $0x8] sm:$0xff] (!%p2293_p9)  ;;  %s4882_s19 = sld [smem:[#allocation33_spill]] (!%p2293_p9) }
 0x150   : > { %s4174_s10 = scalar_lea.vmem [#allocation19], %s2292_s30  ;;  %525 = sbr.rel (%p2293_p9) target bundleno = 892 (0x37c), region = 80  ;;  %536 = vadd.xlane.f32.xlu0 (!%p2293_p9), %v526_v0  ;;  %540 = vadd.xlane.f32.xlu1 (!%p2293_p9), %v528_v1  ;;  %v529_v3 = vld [vmem:[%s4138_s25 + $0x18] sm:$0xff] (!%p2293_p9)  ;;  %v530_v4 = vld [vmem:[%s4138_s25 + $0x20] sm:$0xff] (!%p2293_p9)  ;;  %v531_v5 = vld [vmem:[%s4138_s25 + $0x28] sm:$0xff] (!%p2293_p9) }
 0x151   : > { %v532_v6 = vld [vmem:[%s4138_s25 + $0x30] sm:$0xff] (!%p2293_p9)  ;;  %v533_v7 = vld [vmem:[%s4138_s25 + $0x38] sm:$0xff] (!%p2293_p9)  ;;  %v710_v40 = vld [vmem:[%s4159_s6] sm:$0xff] (!%p2293_p9) }
 0x152   : > { %v711_v41 = vld [vmem:[%s4159_s6 + $0x8] sm:$0xff] (!%p2293_p9)  ;;  %v841_v42 = vld [vmem:[%s4165_s2] sm:$0xff] (!%p2293_p9)  ;;  %v712_v46 = vld [vmem:[%s4159_s6 + $0x10] sm:$0xff] (!%p2293_p9) }
 0x153   : > { %v2630_v43 = vpack.c.bf16 (!%p2293_p9), %v711_v41, %v710_v40  ;;  %v842_v44 = vld [vmem:[%s4165_s2 + $0x8] sm:$0xff] (!%p2293_p9)  ;;  %v713_v47 = vld [vmem:[%s4159_s6 + $0x18] sm:$0xff] (!%p2293_p9)  ;;  %v843_v48 = vld [vmem:[%s4165_s2 + $0x10] sm:$0xff] (!%p2293_p9) }
 0x154   : > { %538 = vadd.xlane.f32.xlu0 (!%p2293_p9), %v527_v2  ;;  %542 = vadd.xlane.f32.xlu1 (!%p2293_p9), %v529_v3  ;;  %v2662_v45 = vpack.c.bf16 (!%p2293_p9), %v842_v44, %v841_v42  ;;  %v2634_v49 = vpack.c.bf16 (!%p2293_p9), %v713_v47, %v712_v46  ;;  %v844_v50 = vld [vmem:[%s4165_s2 + $0x18] sm:$0xff] (!%p2293_p9)  ;;  %v714_v52 = vld [vmem:[%s4159_s6 + $0x20] sm:$0xff] (!%p2293_p9)  ;;  %v715_v53 = vld [vmem:[%s4159_s6 + $0x28] sm:$0xff] (!%p2293_p9) }
 0x155   : > { %2631 = vmatprep.subr.bf16.mxu0 (!%p2293_p9), %v2630_v43  ;;  %v2666_v51 = vpack.c.bf16 (!%p2293_p9), %v844_v50, %v843_v48  ;;  %v845_v54 = vld [vmem:[%s4165_s2 + $0x20] sm:$0xff] (!%p2293_p9)  ;;  %v2638_v55 = vpack.c.bf16 (!%p2293_p9), %v715_v53, %v714_v52  ;;  %v846_v56 = vld [vmem:[%s4165_s2 + $0x28] sm:$0xff] (!%p2293_p9)  ;;  %v716_v58 = vld [vmem:[%s4159_s6 + $0x30] sm:$0xff] (!%p2293_p9)  ;;  %s2296_s14 = sshll.u32 (!%p2293_p9), %s4882_s19, 6 }
 0x156   : > { %2663 = vmatprep.subr.bf16.mxu1 (!%p2293_p9), %v2662_v45  ;;  %2633 = vmatpush3.bf16.msra.mxu0 (!%p2293_p9), %v2630_v43  ;;  %v2670_v57 = vpack.c.bf16 (!%p2293_p9), %v846_v56, %v845_v54  ;;  %v717_v59 = vld [vmem:[%s4159_s6 + $0x38] sm:$0xff] (!%p2293_p9)  ;;  %v847_v60 = vld [vmem:[%s4165_s2 + $0x30] sm:$0xff] (!%p2293_p9)  ;;  %s831_s11 = scalar_lea.vmem (!%p2293_p9), [#allocation3], %s2296_s14  ;;  %s962_s20 = scalar_lea.vmem (!%p2293_p9), [#allocation4], %s2296_s14 }
 0x157   : > { %2665 = vmatpush3.bf16.msra.mxu1 %v2662_v45  ;;  %2635 = vmatprep.subr.bf16.mxu0 %v2634_v49  ;;  %v2642_v61 = vpack.c.bf16 %v717_v59, %v716_v58  ;;  %v848_v62 = vld [vmem:[%s4165_s2 + $0x38] sm:$0xff] }
 0x158   : > { %544 = vadd.xlane.f32.xlu0 %v530_v4  ;;  %546 = vadd.xlane.f32.xlu1 %v531_v5  ;;  %v2674_v63 = vpack.c.bf16 %v848_v62, %v847_v60 }
 0x159   : > { %2667 = vmatprep.subr.bf16.mxu1 %v2666_v51 }
 0x15a   : > { %2637 = vmatpush3.bf16.msra.mxu0 %v2634_v49 }
 0x15b   : > { %2669 = vmatpush3.bf16.msra.mxu1 %v2666_v51  ;;  %2639 = vmatprep.subr.bf16.mxu0 %v2638_v55 }
 0x15c   : > { %548 = vadd.xlane.f32.xlu0 %v532_v6  ;;  %550 = vadd.xlane.f32.xlu1 %v533_v7 }
 0x15d   : > { %2671 = vmatprep.subr.bf16.mxu1 %v2670_v57 }
 0x15e   : > { %2641 = vmatpush3.bf16.msra.mxu0 %v2638_v55 }
 0x15f   : > { %2673 = vmatpush3.bf16.msra.mxu1 %v2670_v57  ;;  %2643 = vmatprep.subr.bf16.mxu0 %v2642_v61 }
 0x160   : > { %2675 = vmatprep.subr.bf16.mxu1 %v2674_v63 }
 0x162   : > { %2645 = vmatpush3.bf16.msra.mxu0 %v2642_v61 }
 0x163   : > { %2677 = vmatpush3.bf16.msra.mxu1 %v2674_v63 }
 0x1dd   : > { %v537_v8 = vpop.xlane.xlu0 %536  ;;  %v541_v9 = vpop.xlane.xlu1 %540 }
 0x1de   : > { %v553_v10 = vmul.f32 0.0078125, %v537_v8  ;;  %v555_v11 = vmul.f32 0.0078125, %v541_v9  ;;  %v851_v8 = vld [vmem:[%s4165_s2 + $0x50] sm:$0xff] }
 0x1e0   : > { %v4185_v12 = vsub.f32 %v526_v0, %v553_v10  ;;  %v4187_v13 = vsub.f32 %v528_v1, %v555_v11  ;;  %v718_v0 = vld [vmem:[%s4159_s6 + $0x40] sm:$0xff]  ;;  %v719_v1 = vld [vmem:[%s4159_s6 + $0x48] sm:$0xff]  ;;  %v852_v10 = vld [vmem:[%s4165_s2 + $0x58] sm:$0xff] }
 0x1e1   : > { %v539_v14 = vpop.xlane.xlu0 %538  ;;  %v543_v15 = vpop.xlane.xlu1 %542  ;;  %v2682_v11 = vpack.c.bf16 %v852_v10, %v851_v8 }
 0x1e2   : > { %v554_v16 = vmul.f32 0.0078125, %v539_v14  ;;  %v569_v17 = vmul.f32 %v4185_v12, %v4185_v12  ;;  %v556_v18 = vmul.f32 0.0078125, %v543_v15  ;;  %v571_v21 = vmul.f32 %v4187_v13, %v4187_v13  ;;  %v722_v14 = vld [vmem:[%s4159_s6 + $0x60] sm:$0xff]  ;;  %v723_v15 = vld [vmem:[%s4159_s6 + $0x68] sm:$0xff] }
 0x1e4   : > { %v4191_v19 = vsub.f32 %v527_v2, %v554_v16  ;;  %577 = vadd.xlane.f32.xlu0 %v569_v17  ;;  %v4193_v20 = vsub.f32 %v529_v3, %v556_v18  ;;  %v849_v2 = vld [vmem:[%s4165_s2 + $0x40] sm:$0xff]  ;;  %v2646_v3 = vpack.c.bf16 %v719_v1, %v718_v0  ;;  %v2654_v17 = vpack.c.bf16 %v723_v15, %v722_v14  ;;  %v854_v18 = vld [vmem:[%s4165_s2 + $0x68] sm:$0xff] }
 0x1e5   : > { %v545_v22 = vpop.xlane.xlu0 %544  ;;  %v547_v23 = vpop.xlane.xlu1 %546  ;;  %v853_v16 = vld [vmem:[%s4165_s2 + $0x60] sm:$0xff] }
 0x1e6   : > { %v557_v24 = vmul.f32 0.0078125, %v545_v22  ;;  %v570_v25 = vmul.f32 %v4191_v19, %v4191_v19  ;;  %v558_v26 = vmul.f32 0.0078125, %v547_v23  ;;  %v572_v29 = vmul.f32 %v4193_v20, %v4193_v20  ;;  %2647 = vmatprep.subr.bf16.mxu0 %v2646_v3  ;;  %v724_v22 = vld [vmem:[%s4159_s6 + $0x70] sm:$0xff]  ;;  %v725_v23 = vld [vmem:[%s4159_s6 + $0x78] sm:$0xff] }
 0x1e7   : > { %2649 = vmatpush3.bf16.msra.mxu0 %v2646_v3 }
 0x1e8   : > { %v4199_v27 = vsub.f32 %v530_v4, %v557_v24  ;;  %581 = vadd.xlane.f32.xlu0 %v571_v21  ;;  %579 = vadd.xlane.f32.xlu1 %v570_v25  ;;  %v4201_v28 = vsub.f32 %v531_v5, %v558_v26  ;;  %v850_v4 = vld [vmem:[%s4165_s2 + $0x48] sm:$0xff]  ;;  %v2686_v21 = vpack.c.bf16 %v854_v18, %v853_v16  ;;  %v855_v25 = vld [vmem:[%s4165_s2 + $0x70] sm:$0xff]  ;;  %v856_v26 = vld [vmem:[%s4165_s2 + $0x78] sm:$0xff] }
 0x1e9   : > { %v549_v30 = vpop.xlane.xlu0 %548  ;;  %v551_v31 = vpop.xlane.xlu1 %550  ;;  %v2678_v5 = vpack.c.bf16 %v850_v4, %v849_v2  ;;  %v2658_v24 = vpack.c.bf16 %v725_v23, %v724_v22 }
 0x1ea   : > { %v559_v32 = vmul.f32 0.0078125, %v549_v30  ;;  %v573_v33 = vmul.f32 %v4199_v27, %v4199_v27  ;;  %v560_v34 = vmul.f32 0.0078125, %v551_v31  ;;  %v574_v37 = vmul.f32 %v4201_v28, %v4201_v28 }
 0x1eb   : > { %2679 = vmatprep.subr.bf16.mxu1 %v2678_v5 }
 0x1ec   : > { %v4207_v35 = vsub.f32 %v532_v6, %v559_v32  ;;  %583 = vadd.xlane.f32.xlu1 %v572_v29  ;;  %585 = vadd.xlane.f32.xlu0 %v573_v33  ;;  %v4209_v36 = vsub.f32 %v533_v7, %v560_v34  ;;  %v720_v6 = vld [vmem:[%s4159_s6 + $0x50] sm:$0xff]  ;;  %v721_v7 = vld [vmem:[%s4159_s6 + $0x58] sm:$0xff]  ;;  %v2690_v29 = vpack.c.bf16 %v856_v26, %v855_v25 }
 0x1ed   : > { %2681 = vmatpush3.bf16.msra.mxu1 %v2678_v5  ;;  %v2650_v9 = vpack.c.bf16 %v721_v7, %v720_v6 }
 0x1ee   : > { %v575_v38 = vmul.f32 %v4207_v35, %v4207_v35  ;;  %v576_v39 = vmul.f32 %v4209_v36, %v4209_v36  ;;  %2683 = vmatprep.subr.bf16.mxu1 %v2682_v11 }
 0x1ef   : > { %2651 = vmatprep.subr.bf16.mxu0 %v2650_v9 }
 0x1f0   : > { %587 = vadd.xlane.f32.xlu1 %v574_v37  ;;  %589 = vadd.xlane.f32.xlu0 %v575_v38 }
 0x1f1   : > { %2653 = vmatpush3.bf16.msra.mxu0 %v2650_v9  ;;  %2685 = vmatpush3.bf16.msra.mxu1 %v2682_v11 }
 0x1f2   : > { %2655 = vmatprep.subr.bf16.mxu0 %v2654_v17  ;;  %2687 = vmatprep.subr.bf16.mxu1 %v2686_v21 }
 0x1f4   : > { %591 = vadd.xlane.f32.xlu1 %v576_v39 }
 0x1f5   : > { %2657 = vmatpush3.bf16.msra.mxu0 %v2654_v17  ;;  %2689 = vmatpush3.bf16.msra.mxu1 %v2686_v21 }
 0x1f6   : > { %2659 = vmatprep.subr.bf16.mxu0 %v2658_v24  ;;  %2691 = vmatprep.subr.bf16.mxu1 %v2690_v29 }
 0x1f9   : > { %2661 = vmatpush3.bf16.msra.mxu0 %v2658_v24  ;;  %2693 = vmatpush3.bf16.msra.mxu1 %v2690_v29 }
 0x271   : > { %v578_v30 = vpop.xlane.xlu0 %577 }
 0x272   : > { %v593_v31 = vmul.f32 0.0078125, %v578_v30 }
 0x274   : > { %v601_v32 = vadd.f32 1e-05, %v593_v31  ;;  %v2294_v31 = vld [vmem:[#allocation13] ss:$0 sm:$0xff] }
 0x275   : > { %v580_v33 = vpop.xlane.xlu1 %579  ;;  %v582_v34 = vpop.xlane.xlu0 %581 }
 0x276   : > { %3013 = vrsqrt.f32 %v601_v32  ;;  %v594_v37 = vmul.f32 0.0078125, %v580_v33  ;;  %v595_v38 = vmul.f32 0.0078125, %v582_v34  ;;  %vm611_vm0 = vcmp.eq.f32.partialorder %v601_v32, inf }
 0x277   : > { %v614_v59 = vand.u32 2147483648, %v601_v32  ;;  %vm613_vm2 = vcmp.eq.f32.partialorder %v601_v32, 0.0 }
 0x278   : > { %v602_v39 = vadd.f32 1e-05, %v594_v37  ;;  %v603_v40 = vadd.f32 1e-05, %v595_v38 }
 0x279   : > { %v584_v41 = vpop.xlane.xlu1 %583  ;;  %v586_v42 = vpop.xlane.xlu0 %585 }
 0x27a   : > { %3015 = vrsqrt.f32 %v602_v39  ;;  %v596_v43 = vmul.f32 0.0078125, %v584_v41  ;;  %v597_v44 = vmul.f32 0.0078125, %v586_v42  ;;  %vm618_vm1 = vcmp.eq.f32.partialorder %v602_v39, inf }
 0x27b   : > { %3017 = vrsqrt.f32 %v603_v40  ;;  %v621_v62 = vand.u32 2147483648, %v602_v39  ;;  %vm625_vm3 = vcmp.eq.f32.partialorder %v603_v40, inf  ;;  %v628_v3 = vand.u32 2147483648, %v603_v40 }
 0x27c   : > { %v604_v47 = vadd.f32 1e-05, %v596_v43  ;;  %v605_v48 = vadd.f32 1e-05, %v597_v44  ;;  %vm620_vm4 = vcmp.eq.f32.partialorder %v602_v39, 0.0  ;;  %vm627_vm5 = vcmp.eq.f32.partialorder %v603_v40, 0.0 }
 0x27d   : > { %v588_v45 = vpop.xlane.xlu1 %587  ;;  %v590_v46 = vpop.xlane.xlu0 %589 }
 0x27e   : > { %v598_v49 = vmul.f32 0.0078125, %v588_v45  ;;  %v599_v50 = vmul.f32 0.0078125, %v590_v46  ;;  %3019 = vrsqrt.f32 %v604_v47  ;;  %vm632_vm6 = vcmp.eq.f32.partialorder %v604_v47, inf }
 0x27f   : > { %3021 = vrsqrt.f32 %v605_v48  ;;  %v635_v10 = vand.u32 2147483648, %v604_v47  ;;  %vm634_vm7 = vcmp.eq.f32.partialorder %v604_v47, 0.0  ;;  %vm639_vm8 = vcmp.eq.f32.partialorder %v605_v48, inf }
 0x280   : > { %v3014_v51 = vpop.eup %3013  ;;  %v606_v54 = vadd.f32 1e-05, %v598_v49  ;;  %v4249_v55 = vadd.f32 1e-05, %v599_v50  ;;  %v642_v15 = vand.u32 2147483648, %v605_v48  ;;  %vm641_vm9 = vcmp.eq.f32.partialorder %v605_v48, 0.0 }
 0x281   : > { %v610_v52 = vmul.f32 %v3014_v51, %v601_v32  ;;  %v592_v53 = vpop.xlane.xlu1 %591 }
 0x282   : > { %v600_v56 = vmul.f32 0.0078125, %v592_v53  ;;  %3023 = vrsqrt.f32 %v606_v54  ;;  %vm646_vm10 = vcmp.eq.f32.partialorder %v606_v54, inf  ;;  %v649_v24 = vand.u32 2147483648, %v606_v54 }
 0x283   : > { %v612_v57 = vsel %vm611_vm0, %v601_v32, %v610_v52  ;;  %3025 = vrsqrt.f32 %v4249_v55  ;;  %vm648_vm11 = vcmp.eq.f32.partialorder %v606_v54, 0.0  ;;  %vm653_vm12 = vcmp.eq.f32.partialorder %v4249_v55, inf }
 0x284   : > { %v3016_v58 = vpop.eup %3015  ;;  %v4252_v0 = vadd.f32 1e-05, %v600_v56  ;;  %v615_v1 = vsel %vm613_vm2, %v614_v59, %v612_v57  ;;  %v656_v30 = vand.u32 2147483648, %v4249_v55  ;;  %vm655_vm13 = vcmp.eq.f32.partialorder %v4249_v55, 0.0 }
 0x285   : > { %v3018_v60 = vpop.eup %3017  ;;  %v617_v61 = vmul.f32 %v3016_v58, %v602_v39  ;;  %3027 = vrcp.f32 %v615_v1  ;;  %vm832_vm0 = vcmask 261120  }
 0x286   : > { %v624_v63 = vmul.f32 %v3018_v60, %v603_v40  ;;  %3029 = vrsqrt.f32 %v4252_v0  ;;  %vm660_vm14 = vcmp.eq.f32.partialorder %v4252_v0, inf  ;;  %v663_v42 = vand.u32 2147483648, %v4252_v0 }
 0x287   : > { %v619_v2 = vsel %vm618_vm1, %v602_v39, %v617_v61  ;;  %v2295_v39 = vld [vmem:[#allocation14] ss:$0 sm:$0xff]  ;;  %vm662_vm15 = vcmp.eq.f32.partialorder %v4252_v0, 0.0 }
 0x288   : > { %v626_v4 = vsel %vm625_vm3, %v603_v40, %v624_v63  ;;  %v622_v5 = vsel %vm620_vm4, %v621_v62, %v619_v2  ;;  %v3020_v7 = vpop.eup %3019 }
 0x289   : > { %v629_v6 = vsel %vm627_vm5, %v628_v3, %v626_v4  ;;  %3031 = vrcp.f32 %v622_v5  ;;  %v3022_v8 = vpop.eup %3021  ;;  %v631_v9 = vmul.f32 %v3020_v7, %v604_v47 }
 0x28a   : > { %3033 = vrcp.f32 %v629_v6  ;;  %v638_v11 = vmul.f32 %v3022_v8, %v605_v48 }
 0x28b   : > { %v633_v14 = vsel %vm632_vm6, %v604_v47, %v631_v9 }
 0x28c   : > { %v3024_v16 = vpop.eup %3023  ;;  %v640_v17 = vsel %vm639_vm8, %v605_v48, %v638_v11  ;;  %v636_v18 = vsel %vm634_vm7, %v635_v10, %v633_v14 }
 0x28d   : > { %v3026_v21 = vpop.eup %3025  ;;  %v645_v22 = vmul.f32 %v3024_v16, %v606_v54  ;;  %3035 = vrcp.f32 %v636_v18  ;;  %v643_v23 = vsel %vm641_vm9, %v642_v15, %v640_v17 }
 0x28e   : > { %v652_v25 = vmul.f32 %v3026_v21, %v4249_v55  ;;  %3037 = vrcp.f32 %v643_v23 }
 0x28f   : > { %v3028_v26 = vpop.eup %3027  ;;  %v647_v29 = vsel %vm646_vm10, %v606_v54, %v645_v22 }
 0x290   : > { %v3030_v32 = vpop.eup %3029  ;;  %v654_v33 = vsel %vm653_vm12, %v4249_v55, %v652_v25  ;;  %v666_v34 = vmul.f32 %v3028_v26, %v4185_v12  ;;  %v650_v37 = vsel %vm648_vm11, %v649_v24, %v647_v29 }
 0x291   : > { %v659_v38 = vmul.f32 %v3030_v32, %v4252_v0  ;;  %3039 = vrcp.f32 %v650_v37  ;;  %v657_v40 = vsel %vm655_vm13, %v656_v30, %v654_v33 }
 0x292   : > { %v687_v43 = vmul.f32 %v2294_v31, %v666_v34  ;;  %3041 = vrcp.f32 %v657_v40 }
 0x293   : > { %v3032_v41 = vpop.eup %3031  ;;  %v661_v45 = vsel %vm660_vm14, %v4252_v0, %v659_v38 }
 0x294   : > { %v3034_v44 = vpop.eup %3033  ;;  %v668_v12 = vmul.f32 %v3032_v41, %v4191_v19  ;;  %v701_v46 = vadd.f32 %v2295_v39, %v687_v43  ;;  %v664_v48 = vsel %vm662_vm15, %v663_v42, %v661_v45 }
 0x295   : > { %v670_v47 = vmul.f32 %v3034_v44, %v4187_v13  ;;  %3043 = vrcp.f32 %v664_v48 }
 0x296   : > { %v688_v49 = vmul.f32 %v2294_v31, %v668_v12  ;;  %2474 = vmatprep.mubr.f32.mxu0 %v701_v46  ;;  %2518 = vmatprep.mubr.f32.mxu1 %v701_v46 }
 0x297   : > { %v689_v50 = vmul.f32 %v2294_v31, %v670_v47  ;;  %v3036_v51 = vpop.eup %3035 }
 0x298   : > { %v702_v52 = vadd.f32 %v2295_v39, %v688_v49  ;;  %v3038_v53 = vpop.eup %3037  ;;  %v672_v55 = vmul.f32 %v3036_v51, %v4193_v20 }
 0x299   : > { %v703_v54 = vadd.f32 %v2295_v39, %v689_v50  ;;  %v674_v56 = vmul.f32 %v3038_v53, %v4199_v27 }
 0x29a   : > { %2475 = vmatmul.mubr.f32.vlgmr.msra.gmra.mrb[0].mxu0 %v702_v52  ;;  %2519 = vmatmul.mubr.f32.vlgmr.msra.gmra.mrb[0].mxu1 %v702_v52  ;;  %v690_v19 = vmul.f32 %v2294_v31, %v672_v55 }
 0x29b   : > { %2477 = vmatprep.mubr.f32.mxu0 %v703_v54  ;;  %2521 = vmatprep.mubr.f32.mxu1 %v703_v54  ;;  %v3040_v13 = vpop.eup %3039  ;;  %v691_v57 = vmul.f32 %v2294_v31, %v674_v56 }
 0x29c   : > { %v3042_v58 = vpop.eup %3041  ;;  %v704_v59 = vadd.f32 %v2295_v39, %v690_v19  ;;  %v676_v60 = vmul.f32 %v3040_v13, %v4201_v28 }
 0x29d   : > { %v705_v61 = vadd.f32 %v2295_v39, %v691_v57  ;;  %v678_v62 = vmul.f32 %v3042_v58, %v4207_v35 }
 0x29e   : > { %2478 = vmatmul.mubr.f32.gmra.mrb[2].mxu0 %v704_v59  ;;  %2522 = vmatmul.mubr.f32.gmra.mrb[2].mxu1 %v704_v59  ;;  %v692_v63 = vmul.f32 %v2294_v31, %v676_v60 }
 0x29f   : > { %v3044_v20 = vpop.eup %3043  ;;  %2480 = vmatprep.mubr.f32.mxu0 %v705_v61  ;;  %2524 = vmatprep.mubr.f32.mxu1 %v705_v61  ;;  %v693_v27 = vmul.f32 %v2294_v31, %v678_v62 }
 0x2a0   : > { %v706_v0 = vadd.f32 %v2295_v39, %v692_v63  ;;  %v680_v1 = vmul.f32 %v3044_v20, %v4209_v36 }
 0x2a1   : > { %v707_v2 = vadd.f32 %v2295_v39, %v693_v27 }
 0x2a2   : > { %2481 = vmatmul.mubr.f32.gmra.mrb[4].mxu0 %v706_v0  ;;  %2525 = vmatmul.mubr.f32.gmra.mrb[4].mxu1 %v706_v0  ;;  %v694_v3 = vmul.f32 %v2294_v31, %v680_v1 }
 0x2a3   : > { %2483 = vmatprep.mubr.f32.mxu0 %v707_v2  ;;  %2527 = vmatprep.mubr.f32.mxu1 %v707_v2 }
 0x2a4   : > { %v708_v28 = vadd.f32 %v2295_v39, %v694_v3 }
 0x2a6   : > { %2484 = vmatmul.mubr.f32.gmra.mrb[6].mxu0 %v708_v28  ;;  %2528 = vmatmul.mubr.f32.gmra.mrb[6].mxu1 %v708_v28 }
 0x36d   : > { %v2476_v35 = vpop.f32.mrb[0].mxu0  ;;  %v2520_v4 = vpop.f32.mrb[0].mxu1 }
 0x36e   : > { %834 = vst.msk [vmem:[%s831_s11 + $0x8] sm:$0xff] %vm832_vm0, %v2476_v35  ;;  %964 = vst.msk [vmem:[%s962_s20 + $0x8] sm:$0xff] %vm832_vm0, %v2520_v4  ;;  %v792_v36 = vpop.f32.mrb[1].mxu0  ;;  %v923_v5 = vpop.f32.mrb[1].mxu1 }
 0x36f   : > { %833 = vst.msk [vmem:[%s831_s11] sm:$0xff] %vm832_vm0, %v792_v36  ;;  %963 = vst.msk [vmem:[%s962_s20] sm:$0xff] %vm832_vm0, %v923_v5 }
 0x371   : > { %v2479_v6 = vpop.f32.mrb[2].mxu0  ;;  %v2523_v7 = vpop.f32.mrb[2].mxu1 }
 0x372   : > { %836 = vst.msk [vmem:[%s831_s11 + $0x18] sm:$0xff] %vm832_vm0, %v2479_v6  ;;  %966 = vst.msk [vmem:[%s962_s20 + $0x18] sm:$0xff] %vm832_vm0, %v2523_v7  ;;  %v802_v8 = vpop.f32.mrb[3].mxu0  ;;  %v933_v9 = vpop.f32.mrb[3].mxu1 }
 0x373   : > { %835 = vst.msk [vmem:[%s831_s11 + $0x10] sm:$0xff] %vm832_vm0, %v802_v8  ;;  %965 = vst.msk [vmem:[%s962_s20 + $0x10] sm:$0xff] %vm832_vm0, %v933_v9 }
 0x375   : > { %v2482_v10 = vpop.f32.mrb[4].mxu0  ;;  %v2526_v11 = vpop.f32.mrb[4].mxu1 }
 0x376   : > { %838 = vst.msk [vmem:[%s831_s11 + $0x28] sm:$0xff] %vm832_vm0, %v2482_v10  ;;  %968 = vst.msk [vmem:[%s962_s20 + $0x28] sm:$0xff] %vm832_vm0, %v2526_v11  ;;  %v812_v14 = vpop.f32.mrb[5].mxu0  ;;  %v943_v15 = vpop.f32.mrb[5].mxu1 }
 0x377   : > { %837 = vst.msk [vmem:[%s831_s11 + $0x20] sm:$0xff] %vm832_vm0, %v812_v14  ;;  %967 = vst.msk [vmem:[%s962_s20 + $0x20] sm:$0xff] %vm832_vm0, %v943_v15 }
 0x379   : > { %v2485_v16 = vpop.f32.mrb[6].mxu0  ;;  %v2529_v17 = vpop.f32.mrb[6].mxu1 }
 0x37a   : > { %840 = vst.msk [vmem:[%s831_s11 + $0x38] sm:$0xff] %vm832_vm0, %v2485_v16  ;;  %970 = vst.msk [vmem:[%s962_s20 + $0x38] sm:$0xff] %vm832_vm0, %v2529_v17  ;;  %v822_v18 = vpop.f32.mrb[7].mxu0  ;;  %v953_v21 = vpop.f32.mrb[7].mxu1 }
 0x37b   : > { %839 = vst.msk [vmem:[%s831_s11 + $0x30] sm:$0xff] %vm832_vm0, %v822_v18  ;;  %969 = vst.msk [vmem:[%s962_s20 + $0x30] sm:$0xff] %vm832_vm0, %v953_v21 }
 0x37c PF: > { %s4883_s23 = sld [smem:[#allocation33_spill]] }
 0x382   : > { %p2297_p12 = scmp.ne.s32.totalorder %s4883_s23, 0 }
 0x383   : > { %v1001_v22 = vld [vmem:[%s4131_s3] sm:$0xff] (!%p2297_p12)  ;;  %v1002_v23 = vld [vmem:[%s4131_s3 + $0x8] sm:$0xff] (!%p2297_p12)  ;;  %v1003_v26 = vld [vmem:[%s4131_s3 + $0x10] sm:$0xff] (!%p2297_p12)  ;;  %vm975_vm1 = vcmask (!%p2297_p12), 7168   ;;  %vm992_vm2 = vcmask (!%p2297_p12), 261120  }
 0x384   : > { %974 = sbr.rel (%p2297_p12) target bundleno = 1458 (0x5b2), region = 84  ;;  %1011 = vadd.xlane.f32.xlu0 (!%p2297_p12), %v1001_v22  ;;  %1013 = vadd.xlane.f32.xlu1 (!%p2297_p12), %v1002_v23  ;;  %v1005_v24 = vld [vmem:[%s4131_s3 + $0x20] sm:$0xff] (!%p2297_p12)  ;;  %v1006_v25 = vld [vmem:[%s4131_s3 + $0x28] sm:$0xff] (!%p2297_p12)  ;;  %v1007_v29 = vld [vmem:[%s4131_s3 + $0x30] sm:$0xff] (!%p2297_p12) }
 0x385   : > { %v1004_v30 = vld [vmem:[%s4131_s3 + $0x18] sm:$0xff] (!%p2297_p12)  ;;  %v1184_v63 = vld [vmem:[%s4153_s7] sm:$0xff] (!%p2297_p12)  ;;  %v1185_v20 = vld [vmem:[%s4153_s7 + $0x8] sm:$0xff] (!%p2297_p12) }
 0x386   : > { %v1008_v31 = vld [vmem:[%s4131_s3 + $0x38] sm:$0xff] (!%p2297_p12)  ;;  %v2694_v27 = vpack.c.bf16 (!%p2297_p12), %v1185_v20, %v1184_v63  ;;  %v1188_v3 = vld [vmem:[%s4153_s7 + $0x20] sm:$0xff] (!%p2297_p12)  ;;  %v1189_v28 = vld [vmem:[%s4153_s7 + $0x28] sm:$0xff] (!%p2297_p12) }
 0x387   : > { %v1186_v0 = vld [vmem:[%s4153_s7 + $0x10] sm:$0xff] (!%p2297_p12)  ;;  %v1187_v1 = vld [vmem:[%s4153_s7 + $0x18] sm:$0xff] (!%p2297_p12)  ;;  %v2702_v35 = vpack.c.bf16 (!%p2297_p12), %v1189_v28, %v1188_v3  ;;  %v1192_v6 = vld [vmem:[%s4153_s7 + $0x40] sm:$0xff] (!%p2297_p12) }
 0x388   : > { %1019 = vadd.xlane.f32.xlu0 (!%p2297_p12), %v1005_v24  ;;  %1021 = vadd.xlane.f32.xlu1 (!%p2297_p12), %v1006_v25  ;;  %v2698_v2 = vpack.c.bf16 (!%p2297_p12), %v1187_v1, %v1186_v0  ;;  %v1190_v4 = vld [vmem:[%s4153_s7 + $0x30] sm:$0xff] (!%p2297_p12)  ;;  %v1191_v36 = vld [vmem:[%s4153_s7 + $0x38] sm:$0xff] (!%p2297_p12)  ;;  %v1193_v7 = vld [vmem:[%s4153_s7 + $0x48] sm:$0xff] (!%p2297_p12) }
 0x389   : > { %2695 = vmatprep.subr.bf16.mxu0 (!%p2297_p12), %v2694_v27  ;;  %2766 = vmatprep.subr.bf16.mxu1 (!%p2297_p12), %v2694_v27  ;;  %v2706_v5 = vpack.c.bf16 (!%p2297_p12), %v1191_v36, %v1190_v4  ;;  %v2710_v8 = vpack.c.bf16 (!%p2297_p12), %v1193_v7, %v1192_v6  ;;  %v1194_v9 = vld [vmem:[%s4153_s7 + $0x50] sm:$0xff] (!%p2297_p12)  ;;  %v1195_v10 = vld [vmem:[%s4153_s7 + $0x58] sm:$0xff] (!%p2297_p12)  ;;  %v1196_v14 = vld [vmem:[%s4153_s7 + $0x60] sm:$0xff] (!%p2297_p12) }
 0x38a   : > { %2697 = vmatpush3.bf16.msra.mxu0 (!%p2297_p12), %v2694_v27  ;;  %2774 = vmatpush3.bf16.msra.mxu1 (!%p2297_p12), %v2694_v27  ;;  %v2714_v11 = vpack.c.bf16 (!%p2297_p12), %v1195_v10, %v1194_v9  ;;  %v1197_v15 = vld [vmem:[%s4153_s7 + $0x68] sm:$0xff] (!%p2297_p12)  ;;  %v1198_v17 = vld [vmem:[%s4153_s7 + $0x70] sm:$0xff] (!%p2297_p12)  ;;  %v1199_v18 = vld [vmem:[%s4153_s7 + $0x78] sm:$0xff] (!%p2297_p12) }
 0x38b   : > { %2699 = vmatprep.subr.bf16.mxu0 %v2698_v2  ;;  %2767 = vmatprep.subr.bf16.mxu1 %v2698_v2  ;;  %v2718_v16 = vpack.c.bf16 %v1197_v15, %v1196_v14  ;;  %v2722_v21 = vpack.c.bf16 %v1199_v18, %v1198_v17 }
 0x38c   : > { %1015 = vadd.xlane.f32.xlu0 %v1003_v26  ;;  %1023 = vadd.xlane.f32.xlu1 %v1007_v29 }
 0x38e   : > { %2701 = vmatpush3.bf16.msra.mxu0 %v2698_v2  ;;  %2775 = vmatpush3.bf16.msra.mxu1 %v2698_v2 }
 0x38f   : > { %2703 = vmatprep.subr.bf16.mxu0 %v2702_v35  ;;  %2768 = vmatprep.subr.bf16.mxu1 %v2702_v35 }
 0x390   : > { %1017 = vadd.xlane.f32.xlu0 %v1004_v30  ;;  %1025 = vadd.xlane.f32.xlu1 %v1008_v31 }
 0x392   : > { %2705 = vmatpush3.bf16.msra.mxu0 %v2702_v35  ;;  %2776 = vmatpush3.bf16.msra.mxu1 %v2702_v35 }
 0x393   : > { %2707 = vmatprep.subr.bf16.mxu0 %v2706_v5  ;;  %2769 = vmatprep.subr.bf16.mxu1 %v2706_v5 }
 0x396   : > { %2709 = vmatpush3.bf16.msra.mxu0 %v2706_v5  ;;  %2777 = vmatpush3.bf16.msra.mxu1 %v2706_v5 }
 0x397   : > { %2711 = vmatprep.subr.bf16.mxu0 %v2710_v8  ;;  %2770 = vmatprep.subr.bf16.mxu1 %v2710_v8 }
 0x39a   : > { %2713 = vmatpush3.bf16.msra.mxu0 %v2710_v8  ;;  %2778 = vmatpush3.bf16.msra.mxu1 %v2710_v8 }
 0x39b   : > { %2715 = vmatprep.subr.bf16.mxu0 %v2714_v11  ;;  %2771 = vmatprep.subr.bf16.mxu1 %v2714_v11 }
 0x39e   : > { %2717 = vmatpush3.bf16.msra.mxu0 %v2714_v11  ;;  %2779 = vmatpush3.bf16.msra.mxu1 %v2714_v11 }
 0x39f   : > { %2719 = vmatprep.subr.bf16.mxu0 %v2718_v16  ;;  %2772 = vmatprep.subr.bf16.mxu1 %v2718_v16 }
 0x3a2   : > { %2721 = vmatpush3.bf16.msra.mxu0 %v2718_v16  ;;  %2780 = vmatpush3.bf16.msra.mxu1 %v2718_v16 }
 0x3a3   : > { %2723 = vmatprep.subr.bf16.mxu0 %v2722_v21  ;;  %2773 = vmatprep.subr.bf16.mxu1 %v2722_v21 }
 0x3a6   : > { %2725 = vmatpush3.bf16.msra.mxu0 %v2722_v21  ;;  %2781 = vmatpush3.bf16.msra.mxu1 %v2722_v21 }
 0x411   : > { %v1012_v32 = vpop.xlane.xlu0 %1011  ;;  %v1014_v33 = vpop.xlane.xlu1 %1013 }
 0x412   : > { %v1028_v34 = vmul.f32 0.0078125, %v1012_v32  ;;  %v1029_v37 = vmul.f32 0.0078125, %v1014_v33 }
 0x414   : > { %v4299_v38 = vsub.f32 %v1001_v22, %v1028_v34  ;;  %v4301_v39 = vsub.f32 %v1002_v23, %v1029_v37  ;;  %v3572_v22 = vmov -1e+30   ;;  %v3573_v23 = vmov 0.0  }
 0x415   : > { %v1020_v40 = vpop.xlane.xlu0 %1019  ;;  %v1022_v41 = vpop.xlane.xlu1 %1021  ;;  %976 = vst.msk [vmem:[#allocation5] sm:$0xff] %vm975_vm1, %v3572_v22  ;;  %977 = vst.msk [vmem:[#allocation5 + $0x8] sm:$0xff] %vm975_vm1, %v3572_v22 }
 0x416   : > { %v1032_v42 = vmul.f32 0.0078125, %v1020_v40  ;;  %v1044_v43 = vmul.f32 %v4299_v38, %v4299_v38  ;;  %v1033_v44 = vmul.f32 0.0078125, %v1022_v41  ;;  %v1045_v46 = vmul.f32 %v4301_v39, %v4301_v39  ;;  %978 = vst.msk [vmem:[#allocation5 + $0x10] sm:$0xff] %vm975_vm1, %v3572_v22  ;;  %979 = vst.msk [vmem:[#allocation5 + $0x18] sm:$0xff] %vm975_vm1, %v3572_v22 }
 0x417   : > { %980 = vst.msk [vmem:[#allocation5 + $0x20] sm:$0xff] %vm975_vm1, %v3572_v22  ;;  %981 = vst.msk [vmem:[#allocation5 + $0x28] sm:$0xff] %vm975_vm1, %v3572_v22 }
 0x418   : > { %v4305_v45 = vsub.f32 %v1005_v24, %v1032_v42  ;;  %1052 = vadd.xlane.f32.xlu0 %v1044_v43  ;;  %v4307_v12 = vsub.f32 %v1006_v25, %v1033_v44  ;;  %982 = vst.msk [vmem:[#allocation5 + $0x30] sm:$0xff] %vm975_vm1, %v3572_v22  ;;  %983 = vst.msk [vmem:[#allocation5 + $0x38] sm:$0xff] %vm975_vm1, %v3572_v22 }
 0x419   : > { %v1016_v47 = vpop.xlane.xlu0 %1015  ;;  %v1024_v48 = vpop.xlane.xlu1 %1023  ;;  %984 = vst.msk [vmem:[#allocation6] sm:$0xff] %vm975_vm1, %v3573_v23  ;;  %985 = vst.msk [vmem:[#allocation6 + $0x8] sm:$0xff] %vm975_vm1, %v3573_v23 }
 0x41a   : > { %v1030_v49 = vmul.f32 0.0078125, %v1016_v47  ;;  %v1048_v50 = vmul.f32 %v4305_v45, %v4305_v45  ;;  %v1034_v51 = vmul.f32 0.0078125, %v1024_v48  ;;  %v1049_v54 = vmul.f32 %v4307_v12, %v4307_v12  ;;  %986 = vst.msk [vmem:[#allocation6 + $0x10] sm:$0xff] %vm975_vm1, %v3573_v23  ;;  %987 = vst.msk [vmem:[#allocation6 + $0x18] sm:$0xff] %vm975_vm1, %v3573_v23 }
 0x41b   : > { %988 = vst.msk [vmem:[#allocation6 + $0x20] sm:$0xff] %vm975_vm1, %v3573_v23  ;;  %989 = vst.msk [vmem:[#allocation6 + $0x28] sm:$0xff] %vm975_vm1, %v3573_v23 }
 0x41c   : > { %v4313_v52 = vsub.f32 %v1003_v26, %v1030_v49  ;;  %1054 = vadd.xlane.f32.xlu0 %v1045_v46  ;;  %1060 = vadd.xlane.f32.xlu1 %v1048_v50  ;;  %v4315_v53 = vsub.f32 %v1007_v29, %v1034_v51  ;;  %990 = vst.msk [vmem:[#allocation6 + $0x30] sm:$0xff] %vm975_vm1, %v3573_v23  ;;  %991 = vst.msk [vmem:[#allocation6 + $0x38] sm:$0xff] %vm975_vm1, %v3573_v23 }
 0x41d   : > { %v1018_v55 = vpop.xlane.xlu0 %1017  ;;  %v1026_v56 = vpop.xlane.xlu1 %1025  ;;  %993 = vst.msk [vmem:[#allocation7] sm:$0xff] %vm992_vm2, %v3573_v23  ;;  %994 = vst.msk [vmem:[#allocation7 + $0x8] sm:$0xff] %vm992_vm2, %v3573_v23 }
 0x41e   : > { %v1031_v19 = vmul.f32 0.0078125, %v1018_v55  ;;  %v1046_v13 = vmul.f32 %v4313_v52, %v4313_v52  ;;  %v1035_v57 = vmul.f32 0.0078125, %v1026_v56  ;;  %v1050_v60 = vmul.f32 %v4315_v53, %v4315_v53  ;;  %995 = vst.msk [vmem:[#allocation7 + $0x10] sm:$0xff] %vm992_vm2, %v3573_v23  ;;  %996 = vst.msk [vmem:[#allocation7 + $0x18] sm:$0xff] %vm992_vm2, %v3573_v23 }
 0x41f   : > { %997 = vst.msk [vmem:[#allocation7 + $0x20] sm:$0xff] %vm992_vm2, %v3573_v23  ;;  %998 = vst.msk [vmem:[#allocation7 + $0x28] sm:$0xff] %vm992_vm2, %v3573_v23 }
 0x420   : > { %v4321_v58 = vsub.f32 %v1004_v30, %v1031_v19  ;;  %1062 = vadd.xlane.f32.xlu1 %v1049_v54  ;;  %1056 = vadd.xlane.f32.xlu0 %v1046_v13  ;;  %v4323_v59 = vsub.f32 %v1008_v31, %v1035_v57  ;;  %999 = vst.msk [vmem:[#allocation7 + $0x30] sm:$0xff] %vm992_vm2, %v3573_v23  ;;  %1000 = vst.msk [vmem:[#allocation7 + $0x38] sm:$0xff] %vm992_vm2, %v3573_v23 }
 0x422   : > { %v1047_v61 = vmul.f32 %v4321_v58, %v4321_v58  ;;  %v1051_v62 = vmul.f32 %v4323_v59, %v4323_v59 }
 0x424   : > { %1064 = vadd.xlane.f32.xlu1 %v1050_v60  ;;  %1058 = vadd.xlane.f32.xlu0 %v1047_v61 }
 0x428   : > { %1066 = vadd.xlane.f32.xlu1 %v1051_v62 }
 0x4a5   : > { %v1053_v24 = vpop.xlane.xlu0 %1052 }
 0x4a6   : > { %v1068_v25 = vmul.f32 0.0078125, %v1053_v24 }
 0x4a8   : > { %v1076_v26 = vadd.f32 1e-05, %v1068_v25  ;;  %v2298_v25 = vld [vmem:[#allocation13] ss:$0 sm:$0xff] }
 0x4a9   : > { %v1061_v29 = vpop.xlane.xlu1 %1060  ;;  %v1055_v30 = vpop.xlane.xlu0 %1054 }
 0x4aa   : > { %3045 = vrsqrt.f32 %v1076_v26  ;;  %v1072_v31 = vmul.f32 0.0078125, %v1061_v29  ;;  %v1069_v32 = vmul.f32 0.0078125, %v1055_v30  ;;  %vm1086_vm3 = vcmp.eq.f32.partialorder %v1076_v26, inf }
 0x4ab   : > { %v1089_v60 = vand.u32 2147483648, %v1076_v26  ;;  %vm1088_vm5 = vcmp.eq.f32.partialorder %v1076_v26, 0.0 }
 0x4ac   : > { %v1080_v33 = vadd.f32 1e-05, %v1072_v31  ;;  %v1077_v34 = vadd.f32 1e-05, %v1069_v32 }
 0x4ad   : > { %v1063_v37 = vpop.xlane.xlu1 %1062  ;;  %v1057_v40 = vpop.xlane.xlu0 %1056 }
 0x4ae   : > { %3047 = vrsqrt.f32 %v1080_v33  ;;  %v1073_v41 = vmul.f32 0.0078125, %v1063_v37  ;;  %v1070_v43 = vmul.f32 0.0078125, %v1057_v40  ;;  %vm1114_vm4 = vcmp.eq.f32.partialorder %v1080_v33, inf }
 0x4af   : > { %3049 = vrsqrt.f32 %v1077_v34  ;;  %v1117_v63 = vand.u32 2147483648, %v1080_v33  ;;  %vm1093_vm6 = vcmp.eq.f32.partialorder %v1077_v34, inf  ;;  %v1096_v1 = vand.u32 2147483648, %v1077_v34 }
 0x4b0   : > { %v1081_v42 = vadd.f32 1e-05, %v1073_v41  ;;  %v1078_v47 = vadd.f32 1e-05, %v1070_v43  ;;  %vm1095_vm7 = vcmp.eq.f32.partialorder %v1077_v34, 0.0  ;;  %vm1116_vm8 = vcmp.eq.f32.partialorder %v1080_v33, 0.0 }
 0x4b1   : > { %v1065_v44 = vpop.xlane.xlu1 %1064  ;;  %v1059_v46 = vpop.xlane.xlu0 %1058 }
 0x4b2   : > { %3051 = vrsqrt.f32 %v1081_v42  ;;  %v1074_v48 = vmul.f32 0.0078125, %v1065_v44  ;;  %v1071_v49 = vmul.f32 0.0078125, %v1059_v46  ;;  %vm1121_vm9 = vcmp.eq.f32.partialorder %v1081_v42, inf }
 0x4b3   : > { %3053 = vrsqrt.f32 %v1078_v47  ;;  %v1124_v5 = vand.u32 2147483648, %v1081_v42  ;;  %vm1123_vm10 = vcmp.eq.f32.partialorder %v1081_v42, 0.0  ;;  %vm1100_vm11 = vcmp.eq.f32.partialorder %v1078_v47, inf }
 0x4b4   : > { %v3046_v50 = vpop.eup %3045  ;;  %v1082_v55 = vadd.f32 1e-05, %v1074_v48  ;;  %v4371_v56 = vadd.f32 1e-05, %v1071_v49  ;;  %v1103_v10 = vand.u32 2147483648, %v1078_v47  ;;  %vm1102_vm12 = vcmp.eq.f32.partialorder %v1078_v47, 0.0 }
 0x4b5   : > { %v1085_v51 = vmul.f32 %v3046_v50, %v1076_v26  ;;  %v1067_v54 = vpop.xlane.xlu1 %1066 }
 0x4b6   : > { %v1075_v19 = vmul.f32 0.0078125, %v1067_v54  ;;  %3055 = vrsqrt.f32 %v1082_v55  ;;  %vm1128_vm13 = vcmp.eq.f32.partialorder %v1082_v55, inf  ;;  %v1131_v18 = vand.u32 2147483648, %v1082_v55 }
 0x4b7   : > { %v1087_v13 = vsel %vm1086_vm3, %v1076_v26, %v1085_v51  ;;  %3057 = vrsqrt.f32 %v4371_v56  ;;  %vm1130_vm14 = vcmp.eq.f32.partialorder %v1082_v55, 0.0  ;;  %vm1107_vm15 = vcmp.eq.f32.partialorder %v4371_v56, inf }
 0x4b8   : > { %v3048_v57 = vpop.eup %3047  ;;  %v4374_v27 = vadd.f32 1e-05, %v1075_v19  ;;  %v1090_v0 = vsel %vm1088_vm5, %v1089_v60, %v1087_v13  ;;  %v1110_v24 = vand.u32 2147483648, %v4371_v56  ;;  %vm1109_vm0 = vcmp.eq.f32.partialorder %v4371_v56, 0.0 }
 0x4b9   : > { %v3050_v61 = vpop.eup %3049  ;;  %v1113_v62 = vmul.f32 %v3048_v57, %v1080_v33  ;;  %3059 = vrcp.f32 %v1090_v0 }
 0x4ba   : > { %v1092_v20 = vmul.f32 %v3050_v61, %v1077_v34  ;;  %3061 = vrsqrt.f32 %v4374_v27  ;;  %vm1135_vm1 = vcmp.eq.f32.partialorder %v4374_v27, inf  ;;  %v1138_v40 = vand.u32 2147483648, %v4374_v27 }
 0x4bb   : > { %v1115_v2 = vsel %vm1114_vm4, %v1080_v33, %v1113_v62  ;;  %v2299_v33 = vld [vmem:[#allocation14] ss:$0 sm:$0xff]  ;;  %vm1137_vm3 = vcmp.eq.f32.partialorder %v4374_v27, 0.0 }
 0x4bc   : > { %v3052_v3 = vpop.eup %3051  ;;  %v1094_v28 = vsel %vm1093_vm6, %v1077_v34, %v1092_v20  ;;  %v1118_v36 = vsel %vm1116_vm8, %v1117_v63, %v1115_v2 }
 0x4bd   : > { %v1120_v35 = vmul.f32 %v3052_v3, %v1081_v42  ;;  %v1097_v4 = vsel %vm1095_vm7, %v1096_v1, %v1094_v28  ;;  %v3054_v6 = vpop.eup %3053 }
 0x4be   : > { %3063 = vrcp.f32 %v1097_v4  ;;  %v1099_v8 = vmul.f32 %v3054_v6, %v1078_v47 }
 0x4bf   : > { %v1122_v7 = vsel %vm1121_vm9, %v1081_v42, %v1120_v35  ;;  %3065 = vrcp.f32 %v1118_v36 }
 0x4c0   : > { %v1125_v9 = vsel %vm1123_vm10, %v1124_v5, %v1122_v7  ;;  %v3056_v11 = vpop.eup %3055  ;;  %v1101_v14 = vsel %vm1100_vm11, %v1078_v47, %v1099_v8 }
 0x4c1   : > { %3067 = vrcp.f32 %v1125_v9  ;;  %v3058_v15 = vpop.eup %3057  ;;  %v1127_v16 = vmul.f32 %v3056_v11, %v1082_v55  ;;  %v1104_v17 = vsel %vm1102_vm12, %v1103_v10, %v1101_v14 }
 0x4c2   : > { %v1106_v21 = vmul.f32 %v3058_v15, %v4371_v56  ;;  %3069 = vrcp.f32 %v1104_v17 }
 0x4c3   : > { %v3060_v22 = vpop.eup %3059  ;;  %v1129_v23 = vsel %vm1128_vm13, %v1082_v55, %v1127_v16 }
 0x4c4   : > { %v3062_v26 = vpop.eup %3061  ;;  %v1108_v29 = vsel %vm1107_vm15, %v4371_v56, %v1106_v21  ;;  %v1141_v30 = vmul.f32 %v3060_v22, %v4299_v38  ;;  %v1132_v31 = vsel %vm1130_vm14, %v1131_v18, %v1129_v23 }
 0x4c5   : > { %v1134_v32 = vmul.f32 %v3062_v26, %v4374_v27  ;;  %v1111_v34 = vsel %vm1109_vm0, %v1110_v24, %v1108_v29  ;;  %3071 = vrcp.f32 %v1132_v31 }
 0x4c6   : > { %v1162_v41 = vmul.f32 %v2298_v25, %v1141_v30  ;;  %3073 = vrcp.f32 %v1111_v34 }
 0x4c7   : > { %v1136_v43 = vsel %vm1135_vm1, %v4374_v27, %v1134_v32 }
 0x4c8   : > { %v3064_v37 = vpop.eup %3063  ;;  %v1176_v44 = vadd.f32 %v2299_v33, %v1162_v41  ;;  %v1139_v47 = vsel %vm1137_vm3, %v1138_v40, %v1136_v43 }
 0x4c9   : > { %v3066_v42 = vpop.eup %3065  ;;  %v1143_v38 = vmul.f32 %v3064_v37, %v4301_v39  ;;  %3075 = vrcp.f32 %v1139_v47 }
 0x4ca   : > { %v1149_v46 = vmul.f32 %v3066_v42, %v4305_v45  ;;  %2562 = vmatprep.mubr.f32.mxu0 %v1176_v44 }
 0x4cb   : > { %v3068_v48 = vpop.eup %3067  ;;  %v1163_v49 = vmul.f32 %v2298_v25, %v1143_v38 }
 0x4cc   : > { %v1166_v50 = vmul.f32 %v2298_v25, %v1149_v46  ;;  %v1151_v51 = vmul.f32 %v3068_v48, %v4307_v12  ;;  %v3070_v55 = vpop.eup %3069 }
 0x4cd   : > { %v1177_v54 = vadd.f32 %v2299_v33, %v1163_v49  ;;  %v1145_v13 = vmul.f32 %v3070_v55, %v4313_v52 }
 0x4ce   : > { %v1180_v56 = vadd.f32 %v2299_v33, %v1166_v50  ;;  %v1167_v19 = vmul.f32 %v2298_v25, %v1151_v51 }
 0x4cf   : > { %2563 = vmatmul.mubr.f32.vlgmr.msra.gmra.mrb[0].mxu0 %v1177_v54  ;;  %v3072_v57 = vpop.eup %3071  ;;  %v1164_v60 = vmul.f32 %v2298_v25, %v1145_v13 }
 0x4d0   : > { %2568 = vmatprep.mubr.f32.mxu1 %v1180_v56  ;;  %v1181_v39 = vadd.f32 %v2299_v33, %v1167_v19  ;;  %v3074_v45 = vpop.eup %3073  ;;  %v1153_v61 = vmul.f32 %v3072_v57, %v4315_v53 }
 0x4d1   : > { %v1178_v62 = vadd.f32 %v2299_v33, %v1164_v60  ;;  %v1147_v63 = vmul.f32 %v3074_v45, %v4321_v58 }
 0x4d2   : > { %2569 = vmatmul.mubr.f32.vlgmr.msra.gmra.mrb[0].mxu1 %v1181_v39  ;;  %v1168_v20 = vmul.f32 %v2298_v25, %v1153_v61 }
 0x4d3   : > { %v3076_v12 = vpop.eup %3075  ;;  %2565 = vmatprep.mubr.f32.mxu0 %v1178_v62  ;;  %v1165_v27 = vmul.f32 %v2298_v25, %v1147_v63 }
 0x4d4   : > { %v1182_v0 = vadd.f32 %v2299_v33, %v1168_v20  ;;  %v1155_v1 = vmul.f32 %v3076_v12, %v4323_v59 }
 0x4d5   : > { %v1179_v2 = vadd.f32 %v2299_v33, %v1165_v27 }
 0x4d6   : > { %2571 = vmatprep.mubr.f32.mxu1 %v1182_v0  ;;  %v1169_v52 = vmul.f32 %v2298_v25, %v1155_v1 }
 0x4d7   : > { %2566 = vmatmul.mubr.f32.gmra.mrb[2].mxu0 %v1179_v2 }
 0x4d8   : > { %v1183_v3 = vadd.f32 %v2299_v33, %v1169_v52 }
 0x4da   : > { %2572 = vmatmul.mubr.f32.gmra.mrb[2].mxu1 %v1183_v3 }
 0x5a2   : > { %v2564_v28 = vpop.f32.mrb[0].mxu0 }
 0x5a3   : > { %v1306_v35 = vmul.f32 0.17677669, %v2564_v28  ;;  %v1266_v4 = vpop.f32.mrb[1].mxu0 }
 0x5a4   : > { %v1305_v53 = vmul.f32 0.17677669, %v1266_v4 }
 0x5a5   : > { %1314 = vst.msk [vmem:[#allocation2 + $0x8] sm:$0xff] %vm992_vm2, %v1306_v35  ;;  %v2570_v58 = vpop.f32.mrb[0].mxu1 }
 0x5a6   : > { %1313 = vst.msk [vmem:[#allocation2] sm:$0xff] %vm992_vm2, %v1305_v53  ;;  %v1310_v36 = vmul.f32 0.17677669, %v2570_v58  ;;  %v1286_v5 = vpop.f32.mrb[1].mxu1 }
 0x5a7   : > { %v1309_v6 = vmul.f32 0.17677669, %v1286_v5 }
 0x5a8   : > { %1318 = vst.msk [vmem:[#allocation2 + $0x28] sm:$0xff] %vm992_vm2, %v1310_v36 }
 0x5a9   : > { %1317 = vst.msk [vmem:[#allocation2 + $0x20] sm:$0xff] %vm992_vm2, %v1309_v6 }
 0x5aa   : > { %v2567_v59 = vpop.f32.mrb[2].mxu0 }
 0x5ab   : > { %v1308_v7 = vmul.f32 0.17677669, %v2567_v59  ;;  %v1276_v8 = vpop.f32.mrb[3].mxu0 }
 0x5ac   : > { %v1307_v9 = vmul.f32 0.17677669, %v1276_v8 }
 0x5ad   : > { %1316 = vst.msk [vmem:[#allocation2 + $0x18] sm:$0xff] %vm992_vm2, %v1308_v7  ;;  %v2573_v10 = vpop.f32.mrb[2].mxu1 }
 0x5ae   : > { %1315 = vst.msk [vmem:[#allocation2 + $0x10] sm:$0xff] %vm992_vm2, %v1307_v9  ;;  %v1312_v11 = vmul.f32 0.17677669, %v2573_v10  ;;  %v1296_v14 = vpop.f32.mrb[3].mxu1 }
 0x5af   : > { %v1311_v15 = vmul.f32 0.17677669, %v1296_v14 }
 0x5b0   : > { %1320 = vst.msk [vmem:[#allocation2 + $0x38] sm:$0xff] %vm992_vm2, %v1312_v11 }
 0x5b1   : > { %1319 = vst.msk [vmem:[#allocation2 + $0x30] sm:$0xff] %vm992_vm2, %v1311_v15 }
 0x5b2 PF: > { %s4884_s3 = sld [smem:[#allocation33_spill]]  ;;  %s4885_s15 = sld [smem:[#allocation34_spill]] }
 0x5b8   : > { %s4404_s17 = sshll.u32 %s4884_s3, 6  ;;  %s2301_s16 = sshll.u32 %s4885_s15, 6 }
 0x5b9   : > { %s1323_s0 = sadd.s32 63, %s2301_s16 }
 0x5ba   : > { %p2302_p8 = scmp.gt.s32.totalorder %s4404_s17, %s1323_s0 }
 0x5bb   : > { %vm1354_vm4 = vcmask (!%p2302_p8), 261120   ;;  %v1346_v16 = vld [vmem:[#allocation2] sm:$0xff] (!%p2302_p8)  ;;  %s1328_s25 = scalar_lea.vmem (!%p2302_p8), [#allocation3], %s4404_s17  ;;  %v1347_v34 = vld [vmem:[#allocation2 + $0x8] sm:$0xff] (!%p2302_p8)  ;;  %v1348_v37 = vld [vmem:[#allocation2 + $0x10] sm:$0xff] (!%p2302_p8)  ;;  %v1508_v44 = vlaneseq (!%p2302_p8)  ;;  %v1517_v48 = vstv (!%p2302_p8), %s2301_s16  ;;  %v1528_v49 = vstv (!%p2302_p8), %s4404_s17  ;;  %s4482_s18 = scalar_lea.vmem (!%p2302_p8), [#allocation4], %s4404_s17 }
 0x5bc   : > { %1327 = sbr.rel (%p2302_p8) target bundleno = 2249 (0x8c9), region = 88  ;;  %v1329_v17 = vld [vmem:[%s1328_s25] sm:$0xff] (!%p2302_p8)  ;;  %v1330_v18 = vld [vmem:[%s1328_s25 + $0x8] sm:$0xff] (!%p2302_p8)  ;;  %vm4413_vm2 = vmpackc.low (!%p2302_p8), %vm1354_vm4, %vm1354_vm4  ;;  %2590 = vmatprep.mubr.msk.f32.mxu0 (!%p2302_p8), %vm1354_vm4, %v1346_v16  ;;  %vm1554_vm6 = vcmask (!%p2302_p8), 523264   ;;  %vm1723_vm14 = vcmask (!%p2302_p8), 7168  }
 0x5bd   : > { %v2726_v22 = vpack.c.bf16 (!%p2302_p8), %v1330_v18, %v1329_v17  ;;  %v1331_v23 = vld [vmem:[%s1328_s25 + $0x10] sm:$0xff] (!%p2302_p8)  ;;  %v1332_v24 = vld [vmem:[%s1328_s25 + $0x18] sm:$0xff] (!%p2302_p8)  ;;  %v1333_v26 = vld [vmem:[%s1328_s25 + $0x20] sm:$0xff] (!%p2302_p8)  ;;  %v1509_v46 = vshrl.u32 (!%p2302_p8), %v1508_v44, 7  ;;  %v1527_v47 = vand.u32 (!%p2302_p8), 127, %v1508_v44  ;;  %v3574_v18 = vmov (!%p2302_p8), 0  }
 0x5be   : > { %v2732_v25 = vpack.c.bf16 (!%p2302_p8), %v1332_v24, %v1331_v23  ;;  %v1334_v29 = vld [vmem:[%s1328_s25 + $0x28] sm:$0xff] (!%p2302_p8)  ;;  %v1335_v31 = vld [vmem:[%s1328_s25 + $0x30] sm:$0xff] (!%p2302_p8)  ;;  %v1336_v32 = vld [vmem:[%s1328_s25 + $0x38] sm:$0xff] (!%p2302_p8)  ;;  %3077 = vset.pattern.permute.xlu0 (!%p2302_p8), %v3574_v18  ;;  %3078 = vset.pattern.permute.xlu1 (!%p2302_p8), %v3574_v18 }
 0x5bf   : > { %2728 = vmatprep.subr.msk.bf16.mxu0 (!%p2302_p8), %vm4413_vm2, %v2726_v22  ;;  %v2738_v30 = vpack.c.bf16 (!%p2302_p8), %v1334_v29, %v1333_v26  ;;  %v2744_v33 = vpack.c.bf16 (!%p2302_p8), %v1336_v32, %v1335_v31  ;;  %v1349_v40 = vld [vmem:[#allocation2 + $0x18] sm:$0xff] (!%p2302_p8)  ;;  %v1350_v41 = vld [vmem:[#allocation2 + $0x20] sm:$0xff] (!%p2302_p8)  ;;  %v1351_v42 = vld [vmem:[#allocation2 + $0x28] sm:$0xff] (!%p2302_p8)  ;;  %v1510_v50 = vadd.s32 (!%p2302_p8), 8, %v1509_v46  ;;  %v1529_v51 = vadd.s32 (!%p2302_p8), %v1528_v49, %v1527_v47 }
 0x5c0   : > { %2731 = vmatpush3.bf16.xpose.msk.msra.mxu0 (!%p2302_p8), %vm4413_vm2, %v2726_v22  ;;  %v1352_v43 = vld [vmem:[#allocation2 + $0x30] sm:$0xff] (!%p2302_p8)  ;;  %v1353_v38 = vld [vmem:[#allocation2 + $0x38] sm:$0xff] (!%p2302_p8)  ;;  %v1518_v54 = vadd.s32 (!%p2302_p8), %v1517_v48, %v1509_v46  ;;  %v1511_v55 = vadd.s32 (!%p2302_p8), 16, %v1509_v46  ;;  %v1512_v19 = vadd.s32 (!%p2302_p8), 24, %v1509_v46  ;;  %v1514_v13 = vadd.s32 (!%p2302_p8), 40, %v1509_v46  ;;  %v1546_v21 = vld [vmem:[#allocation5] sm:$0xff] (!%p2302_p8) }
 0x5c1   : > { %2734 = vmatprep.subr.msk.bf16.mxu0 (!%p2302_p8), %vm4413_vm2, %v2732_v25  ;;  %v1519_v56 = vadd.s32 (!%p2302_p8), %v1517_v48, %v1510_v50  ;;  %v1513_v39 = vadd.s32 (!%p2302_p8), 32, %v1509_v46  ;;  %v1516_v27 = vadd.s32 (!%p2302_p8), 56, %v1509_v46  ;;  %v1515_v0 = vadd.s32 (!%p2302_p8), 48, %v1509_v46  ;;  %v4476_v24 = vld [vmem:[#allocation5 + $0x8] sm:$0xff] (!%p2302_p8)  ;;  %v1338_v31 = vld [vmem:[%s4482_s18] sm:$0xff] (!%p2302_p8)  ;;  %v1340_v44 = vld [vmem:[%s4482_s18 + $0x10] sm:$0xff] (!%p2302_p8) }
 0x5c2   : > { %vm1530_vm5 = vcmp.gt.s32.totalorder (!%p2302_p8), %v1529_v51, %v1518_v54  ;;  %v1520_v57 = vadd.s32 (!%p2302_p8), %v1517_v48, %v1511_v55  ;;  %v1521_v61 = vadd.s32 (!%p2302_p8), %v1517_v48, %v1512_v19  ;;  %v1523_v63 = vadd.s32 (!%p2302_p8), %v1517_v48, %v1514_v13  ;;  %v1339_v32 = vld [vmem:[%s4482_s18 + $0x8] sm:$0xff] (!%p2302_p8)  ;;  %v1341_v46 = vld [vmem:[%s4482_s18 + $0x18] sm:$0xff] (!%p2302_p8)  ;;  %v4495_v50 = vld [vmem:[#allocation5 + $0x30] sm:$0xff] (!%p2302_p8) }
 0x5c3   : > { %vm1531_vm7 = vcmp.gt.s32.totalorder %v1529_v51, %v1519_v56  ;;  %v1522_v20 = vadd.s32 %v1517_v48, %v1513_v39  ;;  %v1525_v4 = vadd.s32 %v1517_v48, %v1516_v27  ;;  %v1524_v53 = vadd.s32 %v1517_v48, %v1515_v0  ;;  %v1551_v49 = vld [vmem:[#allocation5 + $0x28] sm:$0xff]  ;;  %v1342_v19 = vld [vmem:[%s4482_s18 + $0x20] sm:$0xff]  ;;  %v1344_v0 = vld [vmem:[%s4482_s18 + $0x30] sm:$0xff] }
 0x5c4   : > { %vm1532_vm8 = vcmp.gt.s32.totalorder %v1529_v51, %v1520_v57  ;;  %vm1533_vm9 = vcmp.gt.s32.totalorder %v1529_v51, %v1521_v61  ;;  %vm1535_vm10 = vcmp.gt.s32.totalorder %v1529_v51, %v1523_v63  ;;  %v1343_v13 = vld [vmem:[%s4482_s18 + $0x28] sm:$0xff] }
 0x5c5   : > { %vm1534_vm11 = vcmp.gt.s32.totalorder %v1529_v51, %v1522_v20  ;;  %vm1537_vm12 = vcmp.gt.s32.totalorder %v1529_v51, %v1525_v4  ;;  %vm1536_vm13 = vcmp.gt.s32.totalorder %v1529_v51, %v1524_v53  ;;  %v2754_v51 = vpack.c.bf16 %v1341_v46, %v1340_v44 }
 0x5c6   : > { %v2758_v61 = vpack.c.bf16 %v1343_v13, %v1342_v19 }
 0x5c8   : > { %2737 = vmatpush3.bf16.xpose.msk.msra.mxu0 %vm4413_vm2, %v2732_v25  ;;  %v4478_v25 = vld [vmem:[#allocation5 + $0x10] sm:$0xff] }
 0x5c9   : > { %2740 = vmatprep.subr.msk.bf16.mxu0 %vm4413_vm2, %v2738_v30 }
 0x5d0   : > { %2743 = vmatpush3.bf16.xpose.msk.msra.mxu0 %vm4413_vm2, %v2738_v30 }
 0x5d1   : > { %2746 = vmatprep.subr.msk.bf16.mxu0 %vm4413_vm2, %v2744_v33 }
 0x5d8   : > { %2749 = vmatpush3.bf16.xpose.msk.msra.mxu0 %vm4413_vm2, %v2744_v33 }
 0x5df   : > { %2591 = vmatmul.mubr.msk.f32.vlgmr.msra.gmra.mrb[0].mxu0 %vm1354_vm4, %v1347_v34 }
 0x5e0   : > { %2593 = vmatprep.mubr.msk.f32.mxu0 %vm1354_vm4, %v1348_v37 }
 0x5e3   : > { %2594 = vmatmul.mubr.msk.f32.gmra.mrb[2].mxu0 %vm1354_vm4, %v1349_v40  ;;  %v2750_v40 = vpack.c.bf16 %v1339_v32, %v1338_v31 }
 0x5e4   : > { %2596 = vmatprep.mubr.msk.f32.mxu0 %vm1354_vm4, %v1350_v41  ;;  %v1549_v41 = vld [vmem:[#allocation5 + $0x18] sm:$0xff] }
 0x5e5   : > { %2751 = vmatprep.subr.bf16.mxu1 %v2750_v40 }
 0x5e6   : > { %2753 = vmatpush3.bf16.msra.mxu1 %v2750_v40 }
 0x5e7   : > { %2597 = vmatmul.mubr.msk.f32.gmra.mrb[4].mxu0 %vm1354_vm4, %v1351_v42  ;;  %v4488_v42 = vld [vmem:[#allocation5 + $0x20] sm:$0xff]  ;;  %2755 = vmatprep.subr.bf16.mxu1 %v2754_v51 }
 0x5e8   : > { %2599 = vmatprep.mubr.msk.f32.mxu0 %vm1354_vm4, %v1352_v43 }
 0x5ea   : > { %2757 = vmatpush3.bf16.msra.mxu1 %v2754_v51 }
 0x5eb   : > { %2600 = vmatmul.mubr.msk.f32.gmra.mrb[6].mxu0 %vm1354_vm4, %v1353_v38  ;;  %2759 = vmatprep.subr.bf16.mxu1 %v2758_v61 }
 0x5ee   : > { %2761 = vmatpush3.bf16.msra.mxu1 %v2758_v61 }
 0x6b2   : > { %v2592_v60 = vpop.f32.mrb[0].mxu0 }
 0x6b3   : > { %v1469_v45 = vpop.f32.mrb[1].mxu0  ;;  %v4448_v1 = vsel %vm1531_vm7, -1e+30, %v2592_v60 }
 0x6b4   : > { %v4444_v62 = vsel %vm1530_vm5, -1e+30, %v1469_v45  ;;  %v1558_v28 = vsel %vm1554_vm6, %v4448_v1, -inf  ;;  %v4504_v45 = vld [vmem:[#allocation5 + $0x38] sm:$0xff] }
 0x6b5   : > { %v1555_v12 = vsel %vm1554_vm6, %v4444_v62, -inf }
 0x6b6   : > { %1556 = vmax.xlane.f32.xlu0 %v1555_v12  ;;  %v2595_v2 = vpop.f32.mrb[2].mxu0 }
 0x6b7   : > { %v1479_v52 = vpop.f32.mrb[3].mxu0  ;;  %v4456_v58 = vsel %vm1533_vm9, -1e+30, %v2595_v2  ;;  %v1345_v2 = vld [vmem:[%s4482_s18 + $0x38] sm:$0xff] }
 0x6b8   : > { %v4450_v3 = vsel %vm1532_vm8, -1e+30, %v1479_v52  ;;  %v1564_v7 = vsel %vm1554_vm6, %v4456_v58, -inf  ;;  %v2762_v4 = vpack.c.bf16 %v1345_v2, %v1344_v0 }
 0x6b9   : > { %v1561_v35 = vsel %vm1554_vm6, %v4450_v3, -inf }
 0x6ba   : > { %1559 = vmax.xlane.f32.xlu0 %v1558_v28  ;;  %1562 = vmax.xlane.f32.xlu1 %v1561_v35  ;;  %v2598_v36 = vpop.f32.mrb[4].mxu0 }
 0x6bb   : > { %v1489_v5 = vpop.f32.mrb[5].mxu0  ;;  %v4458_v6 = vsel %vm1535_vm10, -1e+30, %v2598_v36  ;;  %2763 = vmatprep.subr.bf16.mxu1 %v2762_v4 }
 0x6bc   : > { %v4460_v59 = vsel %vm1534_vm11, -1e+30, %v1489_v5  ;;  %v1570_v10 = vsel %vm1554_vm6, %v4458_v6, -inf  ;;  %2765 = vmatpush3.bf16.msra.mxu1 %v2762_v4 }
 0x6bd   : > { %v1567_v8 = vsel %vm1554_vm6, %v4460_v59, -inf }
 0x6be   : > { %1565 = vmax.xlane.f32.xlu1 %v1564_v7  ;;  %1568 = vmax.xlane.f32.xlu0 %v1567_v8  ;;  %v2601_v9 = vpop.f32.mrb[6].mxu0 }
 0x6bf   : > { %v1499_v11 = vpop.f32.mrb[7].mxu0  ;;  %v4468_v14 = vsel %vm1537_vm12, -1e+30, %v2601_v9 }
 0x6c0   : > { %v4470_v15 = vsel %vm1536_vm13, -1e+30, %v1499_v11  ;;  %v1576_v17 = vsel %vm1554_vm6, %v4468_v14, -inf }
 0x6c1   : > { %v1573_v16 = vsel %vm1554_vm6, %v4470_v15, -inf }
 0x6c2   : > { %1571 = vmax.xlane.f32.xlu1 %v1570_v10  ;;  %1574 = vmax.xlane.f32.xlu0 %v1573_v16 }
 0x6c6   : > { %1577 = vmax.xlane.f32.xlu1 %v1576_v17 }
 0x743   : > { %v1557_v22 = vpop.xlane.xlu0 %1556 }
 0x744   : > { %v1579_v23 = vmax.f32 %v1546_v21, %v1557_v22 }
 0x746   : > { %v1587_v26 = vsub.f32 %v1546_v21, %v1579_v23  ;;  %1933 = vst.msk [vmem:[#allocation5] sm:$0xff] %vm1723_vm14, %v1579_v23  ;;  %1613 = vperm.xlu0 %3077, %v1579_v23  }
 0x747   : > { %v1560_v29 = vpop.xlane.xlu0 %1559  ;;  %v1563_v30 = vpop.xlane.xlu1 %1562 }
 0x748   : > { %v1595_v33 = vmul.f32 1.442695, %v1587_v26  ;;  %v1580_v34 = vmax.f32 %v4476_v24, %v1560_v29  ;;  %v1581_v37 = vmax.f32 %v4478_v25, %v1563_v30 }
 0x74a   : > { %3079 = vpow2.f32 %v1595_v33  ;;  %1934 = vst.msk [vmem:[#allocation5 + $0x8] sm:$0xff] %vm1723_vm14, %v1580_v34  ;;  %1935 = vst.msk [vmem:[#allocation5 + $0x10] sm:$0xff] %vm1723_vm14, %v1581_v37  ;;  %1618 = vperm.xlu1 %3078, %v1580_v34   ;;  %v1588_v12 = vsub.f32 %v4476_v24, %v1580_v34  ;;  %v1589_v5 = vsub.f32 %v4478_v25, %v1581_v37 }
 0x74b   : > { %v1566_v43 = vpop.xlane.xlu1 %1565  ;;  %v1569_v38 = vpop.xlane.xlu0 %1568 }
 0x74c   : > { %v1582_v47 = vmax.f32 %v1549_v41, %v1566_v43  ;;  %v1583_v48 = vmax.f32 %v4488_v42, %v1569_v38  ;;  %v1597_v36 = vmul.f32 1.442695, %v1588_v12  ;;  %v1599_v7 = vmul.f32 1.442695, %v1589_v5 }
 0x74e   : > { %v1590_v54 = vsub.f32 %v1549_v41, %v1582_v47  ;;  %1936 = vst.msk [vmem:[#allocation5 + $0x18] sm:$0xff] %vm1723_vm14, %v1582_v47  ;;  %1628 = vperm.xlu1 %3078, %v1582_v47   ;;  %1937 = vst.msk [vmem:[#allocation5 + $0x20] sm:$0xff] %vm1723_vm14, %v1583_v48  ;;  %v1591_v8 = vsub.f32 %v4488_v42, %v1583_v48 }
 0x74f   : > { %v1572_v55 = vpop.xlane.xlu1 %1571  ;;  %v1575_v56 = vpop.xlane.xlu0 %1574 }
 0x750   : > { %v1601_v39 = vmul.f32 1.442695, %v1590_v54  ;;  %v1584_v57 = vmax.f32 %v1551_v49, %v1572_v55  ;;  %v4502_v60 = vmax.f32 %v4495_v50, %v1575_v56  ;;  %v1603_v10 = vmul.f32 1.442695, %v1591_v8  ;;  %v1676_v8 = vld [vmem:[#allocation6 + $0x8] sm:$0xff] }
 0x752   : > { %3081 = vpow2.f32 %v1601_v39  ;;  %v1592_v63 = vsub.f32 %v1551_v49, %v1584_v57  ;;  %1938 = vst.msk [vmem:[#allocation5 + $0x28] sm:$0xff] %vm1723_vm14, %v1584_v57  ;;  %1623 = vperm.xlu1 %3078, %v1581_v37   ;;  %v1593_v20 = vsub.f32 %v4495_v50, %v4502_v60  ;;  %1939 = vst.msk [vmem:[#allocation5 + $0x30] sm:$0xff] %vm1723_vm14, %v4502_v60 }
 0x753   : > { %v1578_v27 = vpop.xlane.xlu1 %1577 }
 0x754   : > { %v4514_v52 = vpop.eup %3079  ;;  %v1605_v28 = vmul.f32 1.442695, %v1592_v63  ;;  %v4517_v35 = vmax.f32 %v4504_v45, %v1578_v27  ;;  %v1607_v63 = vmul.f32 1.442695, %v1593_v20 }
 0x755   : > { %1742 = vperm.xlu0 %3077, %v4514_v52  }
 0x756   : > { %3083 = vpow2.f32 %v1605_v28  ;;  %1638 = vperm.xlu1 %3078, %v1584_v57   ;;  %v1594_v53 = vsub.f32 %v4504_v45, %v4517_v35  ;;  %1940 = vst.msk [vmem:[#allocation5 + $0x38] sm:$0xff] %vm1723_vm14, %v4517_v35 }
 0x757   : > { %3085 = vpow2.f32 %v1597_v36 }
 0x758   : > { %3087 = vpow2.f32 %v1599_v7  ;;  %v1609_v12 = vmul.f32 1.442695, %v1594_v53  ;;  %v1675_v7 = vld [vmem:[#allocation6] sm:$0xff] }
 0x759   : > { %3089 = vpow2.f32 %v1603_v10  ;;  %v1683_v50 = vmul.f32 %v4514_v52, %v1675_v7  ;;  %v1678_v10 = vld [vmem:[#allocation6 + $0x18] sm:$0xff] }
 0x75a   : > { %1633 = vperm.xlu1 %3078, %v1583_v48  }
 0x75c   : > { %v4526_v9 = vpop.eup %3081 }
 0x75d   : > { %1757 = vperm.xlu0 %3077, %v4526_v9  }
 0x75e   : > { %1643 = vperm.xlu1 %3078, %v4502_v60  }
 0x760   : > { %v4530_v11 = vpop.eup %3083 }
 0x761   : > { %1767 = vperm.xlu0 %3077, %v4530_v11   ;;  %v4534_v16 = vpop.eup %3085 }
 0x762   : > { %1648 = vperm.xlu1 %3078, %v4517_v35   ;;  %v4537_v17 = vpop.eup %3087  ;;  %v1684_v35 = vmul.f32 %v4534_v16, %v1676_v8 }
 0x763   : > { %v4540_v18 = vpop.eup %3089 }
 0x766   : > { %1747 = vperm.xlu1 %3078, %v4534_v16  }
 0x76a   : > { %1752 = vperm.xlu1 %3078, %v4537_v17  }
 0x76e   : > { %1762 = vperm.xlu1 %3078, %v4540_v18  }
 0x7c5   : > { %v1614_v21 = vpop.permute.xlu0 %1613 }
 0x7c6   : > { %v1651_v22 = vsub.f32 %v4444_v62, %v1614_v21 }
 0x7c8   : > { %v1659_v23 = vmul.f32 1.442695, %v1651_v22  ;;  %v1686_v22 = vmul.f32 %v4526_v9, %v1678_v10 }
 0x7c9   : > { %v1619_v24 = vpop.permute.xlu1 %1618 }
 0x7ca   : > { %3091 = vpow2.f32 %v1659_v23  ;;  %v1652_v25 = vsub.f32 %v4448_v1, %v1619_v24  ;;  %v1677_v24 = vld [vmem:[#allocation6 + $0x10] sm:$0xff] }
 0x7cb   : > { %v1685_v52 = vmul.f32 %v4537_v17, %v1677_v24 }
 0x7cc   : > { %v1661_v26 = vmul.f32 1.442695, %v1652_v25 }
 0x7cd   : > { %v1629_v29 = vpop.permute.xlu1 %1628 }
 0x7ce   : > { %3093 = vpow2.f32 %v1661_v26  ;;  %v1654_v30 = vsub.f32 %v4456_v58, %v1629_v29  ;;  %v1680_v29 = vld [vmem:[#allocation6 + $0x28] sm:$0xff] }
 0x7cf   : > { %v1688_v16 = vmul.f32 %v4530_v11, %v1680_v29 }
 0x7d0   : > { %v1665_v31 = vmul.f32 1.442695, %v1654_v30 }
 0x7d1   : > { %v1624_v32 = vpop.permute.xlu1 %1623 }
 0x7d2   : > { %3095 = vpow2.f32 %v1665_v31  ;;  %v1653_v33 = vsub.f32 %v4450_v3, %v1624_v32  ;;  %v1679_v32 = vld [vmem:[#allocation6 + $0x20] sm:$0xff] }
 0x7d3   : > { %v1687_v9 = vmul.f32 %v4540_v18, %v1679_v32 }
 0x7d4   : > { %v3092_v34 = vpop.eup %3091  ;;  %v1663_v37 = vmul.f32 1.442695, %v1653_v33  ;;  %v1743_v28 = vpop.permute.xlu0 %1742 }
 0x7d5   : > { %v1639_v40 = vpop.permute.xlu1 %1638  ;;  %2618 = vmatprep.mubr.msk.f32.mxu1 %vm1554_vm6, %v3092_v34  ;;  %v1691_v62 = vsel %vm1554_vm6, %v3092_v34, 0.0 }
 0x7d6   : > { %3097 = vpow2.f32 %v1663_v37  ;;  %v1656_v1 = vsub.f32 %v4458_v6, %v1639_v40  ;;  %1692 = vadd.xlane.f32.xlu1 %v1691_v62  ;;  %v1681_v37 = vld [vmem:[#allocation6 + $0x30] sm:$0xff] }
 0x7d8   : > { %v3094_v41 = vpop.eup %3093  ;;  %v1669_v42 = vmul.f32 1.442695, %v1656_v1  ;;  %v1682_v1 = vld [vmem:[#allocation6 + $0x38] sm:$0xff] }
 0x7d9   : > { %v1634_v43 = vpop.permute.xlu1 %1633  ;;  %2619 = vmatmul.mubr.msk.f32.vlgmr.msra.gmra.mrb[0].mxu1 %vm1554_vm6, %v3094_v41  ;;  %v1694_v58 = vsel %vm1554_vm6, %v3094_v41, 0.0 }
 0x7da   : > { %3099 = vpow2.f32 %v1669_v42  ;;  %v1655_v3 = vsub.f32 %v4460_v59, %v1634_v43  ;;  %1695 = vadd.xlane.f32.xlu0 %v1694_v58  ;;  %v1733_v58 = vld [vmem:[#allocation7 + $0x8] sm:$0xff] }
 0x7dc   : > { %v3096_v38 = vpop.eup %3095  ;;  %v1667_v44 = vmul.f32 1.442695, %v1655_v3  ;;  %v1758_v36 = vpop.permute.xlu0 %1757  ;;  %v1732_v3 = vld [vmem:[#allocation7] sm:$0xff] }
 0x7dd   : > { %v1644_v46 = vpop.permute.xlu1 %1643  ;;  %v1700_v47 = vsel %vm1554_vm6, %v3096_v38, 0.0  ;;  %v1780_v18 = vmul.f32 %v1743_v28, %v1732_v3 }
 0x7de   : > { %3101 = vpow2.f32 %v1667_v44  ;;  %v1657_v6 = vsub.f32 %v4470_v15, %v1644_v46  ;;  %1701 = vadd.xlane.f32.xlu1 %v1700_v47 }
 0x7e0   : > { %v3098_v48 = vpop.eup %3097  ;;  %v1671_v49 = vmul.f32 1.442695, %v1657_v6  ;;  %v1768_v60 = vpop.permute.xlu0 %1767 }
 0x7e1   : > { %v1649_v51 = vpop.permute.xlu1 %1648  ;;  %2621 = vmatprep.mubr.msk.f32.mxu1 %vm1554_vm6, %v3098_v48  ;;  %v1697_v54 = vsel %vm1554_vm6, %v3098_v48, 0.0  ;;  %v1735_v48 = vld [vmem:[#allocation7 + $0x18] sm:$0xff] }
 0x7e2   : > { %3103 = vpow2.f32 %v1671_v49  ;;  %v1658_v59 = vsub.f32 %v4468_v14, %v1649_v51  ;;  %1698 = vadd.xlane.f32.xlu0 %v1697_v54  ;;  %2622 = vmatmul.mubr.msk.f32.gmra.mrb[2].mxu1 %vm1554_vm6, %v3096_v38  ;;  %v1734_v49 = vld [vmem:[#allocation7 + $0x10] sm:$0xff]  ;;  %v1783_v51 = vmul.f32 %v1758_v36, %v1735_v48 }
 0x7e4   : > { %v3100_v55 = vpop.eup %3099  ;;  %v1673_v56 = vmul.f32 1.442695, %v1658_v59 }
 0x7e5   : > { %v1706_v19 = vsel %vm1554_vm6, %v3100_v55, 0.0  ;;  %v1748_v2 = vpop.permute.xlu1 %1747 }
 0x7e6   : > { %3105 = vpow2.f32 %v1673_v56  ;;  %1707 = vadd.xlane.f32.xlu1 %v1706_v19  ;;  %v1781_v38 = vmul.f32 %v1748_v2, %v1733_v58  ;;  %v1738_v2 = vld [vmem:[#allocation7 + $0x30] sm:$0xff] }
 0x7e7   : > { %3107 = vpow2.f32 %v1607_v63 }
 0x7e8   : > { %v3102_v15 = vpop.eup %3101  ;;  %3109 = vpow2.f32 %v1609_v12 }
 0x7e9   : > { %2624 = vmatprep.mubr.msk.f32.mxu1 %vm1554_vm6, %v3102_v15  ;;  %v1703_v13 = vsel %vm1554_vm6, %v3102_v15, 0.0  ;;  %v1753_v4 = vpop.permute.xlu1 %1752  ;;  %v1737_v15 = vld [vmem:[#allocation7 + $0x28] sm:$0xff] }
 0x7ea   : > { %1704 = vadd.xlane.f32.xlu0 %v1703_v13  ;;  %2625 = vmatmul.mubr.msk.f32.gmra.mrb[4].mxu1 %vm1554_vm6, %v3100_v55  ;;  %v1782_v54 = vmul.f32 %v1753_v4, %v1734_v49  ;;  %v1736_v13 = vld [vmem:[#allocation7 + $0x20] sm:$0xff] }
 0x7ec   : > { %v3104_v39 = vpop.eup %3103 }
 0x7ed   : > { %2627 = vmatprep.mubr.msk.f32.mxu1 %vm1554_vm6, %v3104_v39  ;;  %v1709_v14 = vsel %vm1554_vm6, %v3104_v39, 0.0  ;;  %v4573_v5 = vpop.permute.xlu1 %1762  ;;  %v1785_v39 = vmul.f32 %v1768_v60, %v1737_v15 }
 0x7ee   : > { %1710 = vadd.xlane.f32.xlu0 %v1709_v14  ;;  %v1784_v14 = vmul.f32 %v4573_v5, %v1736_v13 }
 0x7f0   : > { %v3106_v57 = vpop.eup %3105 }
 0x7f1   : > { %2628 = vmatmul.mubr.msk.f32.gmra.mrb[6].mxu1 %vm1554_vm6, %v3106_v57  ;;  %v1712_v61 = vsel %vm1554_vm6, %v3106_v57, 0.0  ;;  %v3108_v27 = vpop.eup %3107 }
 0x7f2   : > { %1713 = vadd.xlane.f32.xlu1 %v1712_v61  ;;  %v3110_v0 = vpop.eup %3109  ;;  %v1689_v17 = vmul.f32 %v3108_v27, %v1681_v37 }
 0x7f3   : > { %v1690_v42 = vmul.f32 %v3110_v0, %v1682_v1 }
 0x803   : > { %1772 = vperm.xlu1 %3078, %v3108_v27   ;;  %v1739_v27 = vld [vmem:[#allocation7 + $0x38] sm:$0xff] }
 0x804   : > { %1777 = vperm.xlu0 %3077, %v3110_v0  }
 0x863   : > { %v1693_v20 = vpop.xlane.xlu1 %1692 }
 0x864   : > { %v1715_v45 = vadd.f32 %v1693_v20, %v1683_v50 }
 0x866   : > { %1724 = vst.msk [vmem:[#allocation6] sm:$0xff] %vm1723_vm14, %v1715_v45 }
 0x867   : > { %v1696_v53 = vpop.xlane.xlu0 %1695 }
 0x868   : > { %v1716_v21 = vadd.f32 %v1696_v53, %v1684_v35 }
 0x86a   : > { %1725 = vst.msk [vmem:[#allocation6 + $0x8] sm:$0xff] %vm1723_vm14, %v1716_v21 }
 0x86b   : > { %v1702_v23 = vpop.xlane.xlu1 %1701 }
 0x86c   : > { %v1718_v25 = vadd.f32 %v1702_v23, %v1686_v22 }
 0x86e   : > { %1727 = vst.msk [vmem:[#allocation6 + $0x18] sm:$0xff] %vm1723_vm14, %v1718_v25 }
 0x86f   : > { %v1699_v26 = vpop.xlane.xlu0 %1698 }
 0x870   : > { %v1717_v30 = vadd.f32 %v1699_v26, %v1685_v52 }
 0x872   : > { %1726 = vst.msk [vmem:[#allocation6 + $0x10] sm:$0xff] %vm1723_vm14, %v1717_v30 }
 0x873   : > { %v1708_v31 = vpop.xlane.xlu1 %1707 }
 0x874   : > { %v1720_v33 = vadd.f32 %v1708_v31, %v1688_v16 }
 0x876   : > { %1729 = vst.msk [vmem:[#allocation6 + $0x28] sm:$0xff] %vm1723_vm14, %v1720_v33 }
 0x877   : > { %v1705_v34 = vpop.xlane.xlu0 %1704 }
 0x878   : > { %v1719_v40 = vadd.f32 %v1705_v34, %v1687_v9 }
 0x87a   : > { %1728 = vst.msk [vmem:[#allocation6 + $0x20] sm:$0xff] %vm1723_vm14, %v1719_v40 }
 0x87b   : > { %v1711_v62 = vpop.xlane.xlu0 %1710 }
 0x87c   : > { %v1721_v41 = vadd.f32 %v1711_v62, %v1689_v17 }
 0x87e   : > { %1730 = vst.msk [vmem:[#allocation6 + $0x30] sm:$0xff] %vm1723_vm14, %v1721_v41 }
 0x87f   : > { %v1714_v11 = vpop.xlane.xlu1 %1713 }
 0x880   : > { %v1722_v43 = vadd.f32 %v1714_v11, %v1690_v42 }
 0x882   : > { %1731 = vst.msk [vmem:[#allocation6 + $0x38] sm:$0xff] %vm1723_vm14, %v1722_v43 }
 0x883   : > { %v1778_v0 = vpop.permute.xlu0 %1777  ;;  %v1773_v28 = vpop.permute.xlu1 %1772 }
 0x884   : > { %v1787_v4 = vmul.f32 %v1778_v0, %v1739_v27  ;;  %v1786_v36 = vmul.f32 %v1773_v28, %v1738_v2 }
 0x8ac   : > { %v2620_v44 = vpop.f32.mrb[0].mxu1 }
 0x8ad   : > { %v1918_v46 = vadd.f32 %v2620_v44, %v1781_v38  ;;  %v1878_v47 = vpop.f32.mrb[1].mxu1 }
 0x8ae   : > { %v1917_v6 = vadd.f32 %v1878_v47, %v1780_v18 }
 0x8af   : > { %1926 = vst.msk [vmem:[#allocation7 + $0x8] sm:$0xff] %vm1354_vm4, %v1918_v46 }
 0x8b0   : > { %1925 = vst.msk [vmem:[#allocation7] sm:$0xff] %vm1354_vm4, %v1917_v6 }
 0x8b5   : > { %v2623_v59 = vpop.f32.mrb[2].mxu1 }
 0x8b6   : > { %v1920_v55 = vadd.f32 %v2623_v59, %v1783_v51  ;;  %v1888_v56 = vpop.f32.mrb[3].mxu1 }
 0x8b7   : > { %v1919_v19 = vadd.f32 %v1888_v56, %v1782_v54 }
 0x8b8   : > { %1928 = vst.msk [vmem:[#allocation7 + $0x18] sm:$0xff] %vm1354_vm4, %v1920_v55 }
 0x8b9   : > { %1927 = vst.msk [vmem:[#allocation7 + $0x10] sm:$0xff] %vm1354_vm4, %v1919_v19 }
 0x8bd   : > { %v2626_v57 = vpop.f32.mrb[4].mxu1 }
 0x8be   : > { %v1922_v61 = vadd.f32 %v2626_v57, %v1785_v39  ;;  %v1898_v63 = vpop.f32.mrb[5].mxu1 }
 0x8bf   : > { %v1921_v12 = vadd.f32 %v1898_v63, %v1784_v14 }
 0x8c0   : > { %1930 = vst.msk [vmem:[#allocation7 + $0x28] sm:$0xff] %vm1354_vm4, %v1922_v61 }
 0x8c1   : > { %1929 = vst.msk [vmem:[#allocation7 + $0x20] sm:$0xff] %vm1354_vm4, %v1921_v12 }
 0x8c4   : > { %v2629_v7 = vpop.f32.mrb[6].mxu1 }
 0x8c5   : > { %v1924_v50 = vadd.f32 %v2629_v7, %v1787_v4  ;;  %v1908_v20 = vpop.f32.mrb[7].mxu1 }
 0x8c6   : > { %v1923_v60 = vadd.f32 %v1908_v20, %v1786_v36 }
 0x8c7   : > { %1932 = vst.msk [vmem:[#allocation7 + $0x38] sm:$0xff] %vm1354_vm4, %v1924_v50 }
 0x8c8   : > { %1931 = vst.msk [vmem:[#allocation7 + $0x30] sm:$0xff] %vm1354_vm4, %v1923_v60 }
 0x8c9 PF: > { %s4889_s12 = sld [smem:[#allocation33_spill]] }
 0x8cf   : > { %p2327_p5 = scmp.ne.s32.totalorder %s4889_s12, 1 }
 0x8d0   : > { %v1955_v5 = vld [vmem:[#allocation6 + $0x10] sm:$0xff] (!%p2327_p5)  ;;  %v1953_v8 = vld [vmem:[#allocation6] sm:$0xff] (!%p2327_p5)  ;;  %v1956_v45 = vld [vmem:[#allocation6 + $0x18] sm:$0xff] (!%p2327_p5)  ;;  %v3575_v35 = vmov (!%p2327_p5), 0   ;;  %vm2017_vm15 = vcmask (!%p2327_p5), 261120  }
 0x8d1   : > { %1944 = sbr.rel (%p2327_p5) target bundleno = 2412 (0x96c), region = 92  ;;  %3112 = vset.pattern.permute.xlu1 (!%p2327_p5), %v3575_v35  ;;  %3111 = vset.pattern.permute.xlu0 (!%p2327_p5), %v3575_v35  ;;  %3113 = vrcp.f32 (!%p2327_p5), %v1955_v5  ;;  %v1954_v53 = vld [vmem:[#allocation6 + $0x8] sm:$0xff] (!%p2327_p5)  ;;  %v1957_v21 = vld [vmem:[#allocation6 + $0x20] sm:$0xff] (!%p2327_p5)  ;;  %v1960_v22 = vld [vmem:[#allocation6 + $0x38] sm:$0xff] (!%p2327_p5) }
 0x8d2   : > { %3115 = vrcp.f32 (!%p2327_p5), %v1953_v8  ;;  %v1958_v10 = vld [vmem:[#allocation6 + $0x28] sm:$0xff] (!%p2327_p5)  ;;  %v1959_v23 = vld [vmem:[#allocation6 + $0x30] sm:$0xff] (!%p2327_p5)  ;;  %v1945_v33 = vld [vmem:[#allocation7] sm:$0xff] (!%p2327_p5) }
 0x8d3   : > { %3117 = vrcp.f32 (!%p2327_p5), %v1956_v45  ;;  %v1947_v32 = vld [vmem:[#allocation7 + $0x10] sm:$0xff] (!%p2327_p5)  ;;  %v1948_v17 = vld [vmem:[#allocation7 + $0x18] sm:$0xff] (!%p2327_p5)  ;;  %v1946_v62 = vld [vmem:[#allocation7 + $0x8] sm:$0xff] (!%p2327_p5) }
 0x8d4   : > { %3119 = vrcp.f32 (!%p2327_p5), %v1954_v53  ;;  %v1950_v43 = vld [vmem:[#allocation7 + $0x28] sm:$0xff] (!%p2327_p5)  ;;  %v1949_v58 = vld [vmem:[#allocation7 + $0x20] sm:$0xff] (!%p2327_p5)  ;;  %v1952_v46 = vld [vmem:[#allocation7 + $0x38] sm:$0xff] (!%p2327_p5) }
 0x8d5   : > { %3121 = vrcp.f32 (!%p2327_p5), %v1958_v10  ;;  %v1951_v47 = vld [vmem:[#allocation7 + $0x30] sm:$0xff] (!%p2327_p5) }
 0x8d6   : > { %3123 = vrcp.f32 (!%p2327_p5), %v1957_v21 }
 0x8d7   : > { %3125 = vrcp.f32 (!%p2327_p5), %v1960_v22 }
 0x8d8   : > { %3127 = vrcp.f32 %v1959_v23 }
 0x8db   : > { %v3114_v24 = vpop.eup %3113 }
 0x8dc   : > { %v3116_v25 = vpop.eup %3115  ;;  %1981 = vperm.xlu1 %3112, %v3114_v24  }
 0x8dd   : > { %v3118_v52 = vpop.eup %3117  ;;  %1971 = vperm.xlu0 %3111, %v3116_v25  }
 0x8de   : > { %v3120_v26 = vpop.eup %3119 }
 0x8df   : > { %v3122_v29 = vpop.eup %3121 }
 0x8e0   : > { %1986 = vperm.xlu1 %3112, %v3118_v52   ;;  %v3124_v30 = vpop.eup %3123 }
 0x8e1   : > { %1976 = vperm.xlu0 %3111, %v3120_v26   ;;  %v3126_v16 = vpop.eup %3125 }
 0x8e2   : > { %v3128_v31 = vpop.eup %3127 }
 0x8e4   : > { %1996 = vperm.xlu1 %3112, %v3122_v29  }
 0x8e5   : > { %1991 = vperm.xlu0 %3111, %v3124_v30  }
 0x8e8   : > { %2006 = vperm.xlu1 %3112, %v3126_v16  }
 0x8e9   : > { %2001 = vperm.xlu0 %3111, %v3128_v31  }
 0x95b   : > { %v1982_v9 = vpop.permute.xlu1 %1981 }
 0x95c   : > { %v2011_v34 = vmul.f32 %v1982_v9, %v1947_v32  ;;  %v1972_v37 = vpop.permute.xlu0 %1971 }
 0x95d   : > { %v2009_v40 = vmul.f32 %v1972_v37, %v1945_v33 }
 0x95e   : > { %2020 = vst.msk [vmem:[%s4174_s10 + $0x10] sm:$0xff] %vm2017_vm15, %v2011_v34 }
 0x95f   : > { %2018 = vst.msk [vmem:[%s4174_s10] sm:$0xff] %vm2017_vm15, %v2009_v40  ;;  %v1987_v1 = vpop.permute.xlu1 %1986 }
 0x960   : > { %v2012_v41 = vmul.f32 %v1987_v1, %v1948_v17  ;;  %v1977_v42 = vpop.permute.xlu0 %1976 }
 0x961   : > { %v2010_v11 = vmul.f32 %v1977_v42, %v1946_v62 }
 0x962   : > { %2021 = vst.msk [vmem:[%s4174_s10 + $0x18] sm:$0xff] %vm2017_vm15, %v2012_v41 }
 0x963   : > { %2019 = vst.msk [vmem:[%s4174_s10 + $0x8] sm:$0xff] %vm2017_vm15, %v2010_v11  ;;  %v1997_v3 = vpop.permute.xlu1 %1996 }
 0x964   : > { %v2014_v38 = vmul.f32 %v1997_v3, %v1950_v43  ;;  %v1992_v18 = vpop.permute.xlu0 %1991 }
 0x965   : > { %v2013_v44 = vmul.f32 %v1992_v18, %v1949_v58 }
 0x966   : > { %2023 = vst.msk [vmem:[%s4174_s10 + $0x28] sm:$0xff] %vm2017_vm15, %v2014_v38 }
 0x967   : > { %2022 = vst.msk [vmem:[%s4174_s10 + $0x20] sm:$0xff] %vm2017_vm15, %v2013_v44  ;;  %v2007_v6 = vpop.permute.xlu1 %2006 }
 0x968   : > { %v2016_v48 = vmul.f32 %v2007_v6, %v1952_v46  ;;  %v2002_v49 = vpop.permute.xlu0 %2001 }
 0x969   : > { %v2015_v51 = vmul.f32 %v2002_v49, %v1951_v47 }
 0x96a   : > { %2025 = vst.msk [vmem:[%s4174_s10 + $0x38] sm:$0xff] %vm2017_vm15, %v2016_v48 }
 0x96b   : > { %2024 = vst.msk [vmem:[%s4174_s10 + $0x30] sm:$0xff] %vm2017_vm15, %v2015_v51 }
 0x96c PF: > { %s4890_s7 = sld [smem:[#allocation34_spill]]  ;;  %s4891_s6 = sld [smem:[#allocation35_spill]] }
 0x96d   : > { %s4892_s2 = sld [smem:[#allocation36_spill]]  ;;  %s4894_s30 = sld [smem:[#allocation44_spill]] }
 0x96e   : > { %s2044_s20 = sshll.u32 %s4174_s10, 4  ;;  %s4895_s16 = sld [smem:[#allocation63_spill]]  ;;  %s4619_s20 = int_to_ptr.vmem [resolvable:$true] %s2044_s20 }
 0x96f   : > { %s4628_s13 = scalar_lea.sflag [#allocation10], %s514_s24  ;;  %s3335_s18 = scalar_lea.vmem %s4619_s20, 1024 }
 0x970   : > { %p3336_p7 = scmp.ne.s32.totalorder %s4619_s20, %s3335_s18  ;;  %s3576_s10 = smov [#allocation19]  }
 0x971   : > { %s3339_s12 = sshll.u32 %s3576_s10, 4  ;;  %s3340_s12 = int_to_ptr.vmem [resolvable:$false] %s3339_s12 }
 0x972   : > { %s2329_s9 = sshll.u32 %s4890_s7, 3  ;;  %s2330_s19 = sshll.u32 %s4891_s6, 4 }
 0x973   : > { %s2331_s14 = sshll.u32 %s4892_s2, 6  ;;  %s2039_s11 = sadd.s32 %s2330_s19, %s2329_s9 }
 0x974   : > { %s2041_s23 = sadd.s32 %s2331_s14, %s2039_s11  ;;  %s4896_s0 = smov %s4895_s16 }
 0x975   : > { %s2332_s3 = sshll.u32 %s2041_s23, 7  ;;  %p4897_p3 = scmp.ne.s32.totalorder %s4894_s30, 0 }
 0x976   : > { %s4624_s25 = scalar_lea.hbm %s4895_s16, %s2332_s3  ;;  %s3341_s7 = scalar_lea.vmem %s3340_s12, 2048 }
 0x977   : > { %p3337_p11 = pnand %p3336_p7, %p4897_p3  ;;  %p3342_p4 = scmp.lt.s32.totalorder %s4619_s20, %s3340_s12 }
 0x978   : > { %p3343_p1 = scmp.lt.s32.totalorder %s3341_s7, %s3335_s18 }
 0x979   : > { %p3338_p10 = pneg %p3337_p11 }
 0x97a   : > { %p3344_p13 = por %p3343_p1, %p3342_p4 }
 0x97c   : > { %p3345_p6 = pnand %p3344_p13, %p3338_p10 }
 0x97e   : > { %3348 = shalt.err (!%p3345_p6)
}
 0x97f   : > { %s3349_s24 = scalar_lea.hbm %s4624_s25, 1024  ;;  %s3353_s27 = scalar_lea.hbm %s4896_s0, 16384 }
 0x980   : > { %p3350_p2 = scmp.ne.s32.totalorder %s4624_s25, %s3349_s24  ;;  %p3354_p12 = scmp.lt.u32.totalorder %s4624_s25, %s4896_s0 }
 0x981   : > { %p3355_p8 = scmp.lt.u32.totalorder %s3353_s27, %s3349_s24  ;;  %p3357_p7 = scmp.lt.u32.totalorder %s3349_s24, %s4624_s25 }
 0x982   : > { %p3351_p0 = pnand %p3350_p2, %p4897_p3 }
 0x983   : > { %p3356_p5 = por %p3355_p8, %p3354_p12 }
 0x984   : > { %p3352_p9 = pneg %p3351_p0 }
 0x985   : > { %p3358_p11 = por %p3357_p7, %p3356_p5 }
 0x987   : > { %p3359_p10 = pnand %p3358_p11, %p3352_p9 }
 0x989   : > { %3362 = shalt.err (!%p3359_p10)
}
 0x98a   : > { %s3577_s14 = smov 128   ;;  %s3578_s11 = smov 8  }
 0x98b   : > { %2800 = dma.vmem_to_hbm [thread:$0]  (%p4897_p3), %s4619_s20, 1024, %s4624_s25, %s4628_s13, %s3577_s14, %s3577_s14, %s3578_s11  }
 0x98c PF: > { %s4898_s23 = sld [smem:[#allocation28_spill]]  ;;  %s4899_s3 = sld [smem:[#allocation45_spill]] }
 0x98d   : > { %p2834_p4 = scmp.ge.s32.totalorder %s3561_s21, 2 }
 0x992   : > { %s2059_s15 = sand.u32 1, %s4898_s23   ;;  %p4900_p1 = scmp.ne.s32.totalorder %s4899_s3, 0 }
 0x993   : > { %s2060_s17 = scalar_lea.sflag [#allocation10], %s2059_s15 }
 0x994   : > { %p2826_p13 = pnand %p2834_p4, %p4900_p1 }
 0x996   : > { %3476 = dma.done.wait (!%p2826_p13), %s2060_s17, 1024  }
 0x997   : > { %3478 = vsyncadd (!%p2826_p13), %s2060_s17, 4294966272  ;;  %s27_s21 = sadd.s32 1, %s3561_s21   ;;  %s4902_s24 = sld [smem:[#allocation29_spill]] }
 0x998   : > { %p4657_p6 = scmp.ge.s32.totalorder %s27_s21, 34   ;;  %s4903_s30 = sld [smem:[#allocation55_spill]] }
 0x999   : > { %s4904_s20 = sld [smem:[#allocation30_spill]]  ;;  %s4905_s9 = sld [smem:[#allocation54_spill]] }
 0x99a   : > { %s4906_s10 = sld [smem:[#allocation31_spill]]  ;;  %s4907_s11 = sld [smem:[#allocation32_spill]] }
 0x99b   : > { %s4908_s12 = sld [smem:[#allocation53_spill]]  ;;  %s4910_s14 = sld [smem:[#allocation38_spill]] }
 0x99c   : > { %s4909_s13 = sld [smem:[#allocation37_spill]]  ;;  %s4911_s15 = sld [smem:[#allocation39_spill]] }
 0x99d   : > { %s4912_s18 = sld [smem:[#allocation40_spill]]  ;;  %s4913_s17 = sld [smem:[#allocation48_spill]] }
 0x99e   : > { %s4914_s25 = smov %s3489_s26  ;;  %s4915_s7 = sld [smem:[#allocation49_spill]] }
 0x99f   : > { %s4916_s26 = smov %s3854_s5  ;;  %s4917_s19 = sld [smem:[#allocation51_spill]] }
 0x9a0   : > { %s4918_s27 = smov %s3497_s28  ;;  %s4919_s6 = sld [smem:[#allocation52_spill]] }
 0x9a1   : > { %s4920_s28 = smov %s3501_s29  ;;  %s4921_s29 = smov %s4903_s30 }
 0x9a2   : > { %s4923_s30 = smov %s3509_s8  ;;  %s4924_s8 = smov %s4904_s20 }
 0x9a3   : > { %s4925_s16 = smov %s4912_s18  ;;  %26 = sbr.rel (!%p4657_p6) target bundleno = 26 (0x1a), region = 167 }
 0x9a4   : > { %s4926_s18 = smov %s4915_s7 }
 0x9a6   : > { %s4927_s20 = smov %s4919_s6 }
 0x9aa   :  { %2065 = vsyncpa [#allocation9], 1 }
 0x9ab   :  { %2067 = vsyncpa [#allocation9 + $0x1], 1 }
 0x9ac   :  { %2068 = vsyncpa [#allocation12], 1 }
 0x9ad   :  { %2070 = vsyncpa [#allocation12 + $0x1], 1 }
 0x9ae   :  { %2071 = vsyncpa [#allocation15], 1 }
 0x9af   :  { %2072 = vsyncpa [#allocation10], 1 }
 0x9b0   :  { %2074 = vsyncpa [#allocation10 + $0x1], 1 }

// kernel: tpu_custom_call.1
= control target key start
LH: loop header
LB: loop body
LE: loop exit
PB: predicated region body
PF: predicated region fallthrough
CT: control target
= control target key end

     0   :  { %s4725_s0 = inlined_call_operand.hbm [shape: f32[2,128,128], index: 0, kind: input, shape index: {}]   ;;  %s4726_s1 = inlined_call_operand.hbm [shape: f32[2,128,128], index: 1, kind: input, shape index: {}]   ;;  %s4727_s2 = inlined_call_operand.hbm [shape: f32[1,128], index: 2, kind: input, shape index: {}]   ;;  %s4728_s3 = inlined_call_operand.hbm [shape: f32[1,128], index: 3, kind: input, shape index: {}]   ;;  %s4729_s4 = inlined_call_operand.hbm [shape: f32[4,128,32], index: 4, kind: input, shape index: {}]   ;;  %s4730_s5 = inlined_call_operand.hbm [shape: f32[4,128,32], index: 5, kind: input, shape index: {}]   ;;  %s4731_s6 = inlined_call_operand.hbm [shape: f32[4,128,32], index: 6, kind: input, shape index: {}]   ;;  %s4732_s7 = inlined_call_operand.hbm [shape: f32[2,4,128,32], index: 7, kind: output, shape index: {}]  }
   0x1   :  { %4787 = sst [smem:[#allocation56_spill]] %s4725_s0 }
   0x2   :  { %4788 = sst [smem:[#allocation57_spill]] %s4726_s1 }
   0x3   :  { %4789 = sst [smem:[#allocation58_spill]] %s4727_s2 }
   0x4   :  { %4790 = sst [smem:[#allocation59_spill]] %s4728_s3 }
   0x5   :  { %4791 = sst [smem:[#allocation60_spill]] %s4729_s4 }
   0x6   :  { %4792 = sst [smem:[#allocation61_spill]] %s4730_s5 }
   0x7   :  { %4793 = sst [smem:[#allocation62_spill]] %s4731_s6 }
   0x8   :  { %4794 = sst [smem:[#allocation63_spill]] %s4732_s7 }
   0x9   :  { %12 = vsyncpa [#allocation9], 0 }
   0xa   :  { %14 = vsyncpa [#allocation9 + $0x1], 0 }
   0xb   :  { %15 = vsyncpa [#allocation12], 0 }
   0xc   :  { %17 = vsyncpa [#allocation12 + $0x1], 0 }
   0xd   :  { %18 = vsyncpa [#allocation15], 0 }
   0xe   :  { %19 = vsyncpa [#allocation10], 0 }
   0xf   :  { %21 = vsyncpa [#allocation10 + $0x1], 0  ;;  %s3619_s24 = smov 0   ;;  %s3621_s25 = smov 0  }
  0x10   :  { %s3623_s26 = smov 0   ;;  %s3625_s27 = smov 0  }
  0x11   :  { %s3627_s28 = smov 0   ;;  %s3629_s29 = smov 0  }
  0x12   :  { %s3631_s30 = smov 0   ;;  %s3633_s8 = smov 0  }
  0x13   :  { %s3635_s9 = smov 0   ;;  %s3637_s10 = smov 0  }
  0x14   :  { %s3639_s11 = smov 0   ;;  %s3641_s12 = smov 0  }
  0x15   :  { %s3643_s13 = smov 0   ;;  %s3645_s14 = smov 0  }
  0x16   :  { %s3647_s15 = smov 0   ;;  %s3649_s16 = smov 0  }
  0x17   :  { %s3651_s17 = smov 0   ;;  %s3653_s18 = smov 0  }
  0x18   :  { %s3655_s19 = smov 0   ;;  %s3657_s20 = smov 0  }
  0x19   :  { %s3659_s21 = smov 0  }
  0x1a LB: > { %4795 = sst [smem:[#allocation28_spill]] %s3481_s24  ;;  %s3721_s22 = sadd.s32 4294967295, %s3561_s21   ;;  %s3561_s21 = sphi %s3659_s21, %s27_s21   ;;  %s3557_s20 = sphi %s3657_s20, %s4927_s20   ;;  %s3553_s19 = sphi %s3655_s19, %s4917_s19   ;;  %s3549_s18 = sphi %s3653_s18, %s4926_s18   ;;  %s3545_s17 = sphi %s3651_s17, %s4913_s17   ;;  %s3541_s16 = sphi %s3649_s16, %s4925_s16   ;;  %s3537_s15 = sphi %s3647_s15, %s4911_s15   ;;  %s3533_s14 = sphi %s3645_s14, %s4910_s14   ;;  %s3529_s13 = sphi %s3643_s13, %s4909_s13   ;;  %s3525_s12 = sphi %s3641_s12, %s4908_s12   ;;  %s3521_s11 = sphi %s3639_s11, %s4907_s11   ;;  %s3517_s10 = sphi %s3637_s10, %s4906_s10   ;;  %s3513_s9 = sphi %s3635_s9, %s4905_s9   ;;  %s3509_s8 = sphi %s3633_s8, %s4924_s8   ;;  %s3505_s30 = sphi %s3631_s30, %s4923_s30   ;;  %s3501_s29 = sphi %s3629_s29, %s4921_s29   ;;  %s3497_s28 = sphi %s3627_s28, %s4920_s28   ;;  %s3493_s27 = sphi %s3625_s27, %s4918_s27   ;;  %s3489_s26 = sphi %s3623_s26, %s4916_s26   ;;  %s3485_s25 = sphi %s3621_s25, %s4914_s25   ;;  %s3481_s24 = sphi %s3619_s24, %s4902_s24  }
  0x1b   : > { %4796 = sst [smem:[#allocation29_spill]] %s3485_s25  ;;  %s2262_s23 = sadd.s32 4294967294, %s3561_s21  }
  0x1c   : > { %4797 = sst [smem:[#allocation30_spill]] %s3513_s9  ;;  %p4745_p0 = scmp.eq.s32.totalorder %s3721_s22, 0 }
  0x1d   : > { %4798 = sst [smem:[#allocation31_spill]] %s3521_s11  ;;  %p107_p1 = scmp.ne.s32.totalorder %s3509_s8, %s3505_s30 }
  0x1e   : > { %4799 = sst [smem:[#allocation32_spill]] %s3525_s12  ;;  %p175_p2 = scmp.ne.s32.totalorder %s3497_s28, %s3493_s27 }
  0x1f   : > { %4800 = sst [smem:[#allocation33_spill]] %s3529_s13  ;;  %p3730_p3 = por %p107_p1, %p4745_p0 }
  0x20   : > { %4801 = sst [smem:[#allocation34_spill]] %s3533_s14  ;;  %p254_p4 = scmp.ne.s32.totalorder %s3489_s26, %s3485_s25 }
  0x21   : > { %4802 = sst [smem:[#allocation35_spill]] %s3537_s15  ;;  %p3738_p5 = por %p175_p2, %p4745_p0 }
  0x22   : > { %4803 = sst [smem:[#allocation36_spill]] %s3541_s16  ;;  %p255_p6 = scmp.eq.s32.totalorder %s3721_s22, 31 }
  0x23   : > { %4804 = sst [smem:[#allocation37_spill]] %s3545_s17  ;;  %p260_p7 = scmp.ne.s32.totalorder %s3485_s25, %s3481_s24 }
  0x24   : > { %4805 = sst [smem:[#allocation38_spill]] %s3549_s18  ;;  %p261_p8 = scmp.eq.s32.totalorder %s2262_s23, 31 }
  0x25   : > { %4806 = sst [smem:[#allocation39_spill]] %s3553_s19  ;;  %p3745_p9 = por %p255_p6, %p254_p4 }
  0x26   : > { %4807 = sst [smem:[#allocation40_spill]] %s3557_s20  ;;  %p2263_p10 = scmp.ge.s32.totalorder %s3561_s21, 1 }
  0x27   : > { %4808 = sst [smem:[#allocation41_spill]] %s3721_s22  ;;  %p3750_p11 = por %p261_p8, %p260_p7 }
  0x28   : > { %s4809_s16 = scalar_select %p3730_p3, 1, 0 }
  0x29   : > { %s4811_s15 = scalar_select %p3738_p5, 1, 0 }
  0x2a   : > { %4810 = sst [smem:[#allocation42_spill]] %s4809_s16  ;;  %p268_p12 = scmp.lt.s32.totalorder %s3561_s21, 33 }
  0x2b   : > { %4812 = sst [smem:[#allocation43_spill]] %s4811_s15  ;;  %s3563_s7 = smov [#allocation13]  }
  0x2c   : > { %s4813_s13 = scalar_select %p3745_p9, 1, 0 }
  0x2d   : > { %s4815_s27 = scalar_select %p3750_p11, 1, 0 }
  0x2e   : > { %4814 = sst [smem:[#allocation44_spill]] %s4813_s13  ;;  %p3755_p13 = pnand %p2263_p10, %p268_p12 }
  0x2f   : > { %4816 = sst [smem:[#allocation45_spill]] %s4815_s27  ;;  %s281_s14 = sshll.u32 %s3563_s7, 4  ;;  %s282_s14 = int_to_ptr.vmem [resolvable:$true] %s281_s14 }
  0x30   : > { %s4817_s30 = scalar_select %p3755_p13, 1, 0 }
  0x31   : > { %p2802_p1 = pneg %p3755_p13  ;;  %s4821_s2 = sld [smem:[#allocation58_spill]] }
  0x32   : > { %4818 = sst [smem:[#allocation46_spill]] %s4817_s30 }
  0x33   : > { %p3763_p2 = pnand %p2802_p1, %p4745_p0 }
  0x35   : > { %s4819_s23 = scalar_select %p3763_p2, 1, 0 }
  0x36   : > { %p4767_p6 = pneg %p3763_p2 }
  0x37   : > { %4820 = sst [smem:[#allocation47_spill]] %s4819_s23  ;;  %s3129_s27 = scalar_lea.hbm %s4821_s2, 16 }
  0x38   : > { %p3130_p4 = scmp.ne.s32.totalorder %s4821_s2, %s3129_s27  ;;  %p3136_p10 = scmp.lt.u32.totalorder %s3129_s27, %s4821_s2 }
  0x3a   : > { %p3132_p7 = pnand %p4767_p6, %p3130_p4 }
  0x3c   : > { %p3133_p8 = pneg %p3132_p7 }
  0x3e   : > { %p3138_p12 = pnand %p3136_p10, %p3133_p8 }
  0x40   : > { %3141 = shalt.err (!%p3138_p12)
}
  0x41   : > { %s3142_s24 = scalar_lea.vmem %s282_s14, 16  ;;  %s3149_s25 = scalar_lea.vmem %s282_s14, 32 }
  0x42   : > { %p3143_p1 = scmp.ne.s32.totalorder %s282_s14, %s3142_s24  ;;  %p3150_p9 = scmp.lt.s32.totalorder %s282_s14, %s282_s14 }
  0x43   : > { %p3151_p5 = scmp.lt.s32.totalorder %s3149_s25, %s3142_s24 }
  0x44   : > { %p3145_p0 = pnand %p3143_p1, %p4767_p6 }
  0x45   : > { %p3152_p3 = por %p3151_p5, %p3150_p9 }
  0x46   : > { %p3146_p11 = pneg %p3145_p0 }
  0x48   : > { %p3153_p13 = pnand %p3152_p3, %p3146_p11 }
  0x4a   : > { %3156 = shalt.err (!%p3153_p13)
}
  0x4b   : > { %2805 = dma.hbm_to_vmem [thread:$0]  (!%p3763_p2), %s4821_s2, 16, %s282_s14, [#allocation12]  }
  0x4c   : > { %s42_s16 = sadd.s32 1, %s3545_s17  ;;  %s45_s27 = sadd.s32 1, %s3549_s18 }
  0x4d   : > { %p43_p0 = scmp.ge.s32.totalorder %s42_s16, 2  ;;  %s49_s7 = sadd.s32 1, %s3553_s19 }
  0x4e   : > { %s53_s24 = sadd.s32 1, %s3557_s20  ;;  %p69_p3 = scmp.ne.s32.totalorder %s3525_s12, %s3521_s11 }
  0x4f   : > { %s4929_s16 = smov (%p43_p0, %s42_s16), 0  ;;  %s4931_s27 = smov (!%p43_p0, %s45_s27), %s3549_s18 }
  0x50   : > { %4822 = sst [smem:[#allocation48_spill]] %s4929_s16  ;;  %p47_p5 = scmp.ge.s32.totalorder %s4931_s27, 2 }
  0x51   : > { %p4769_p9 = scmp.eq.s32.totalorder %s3561_s21, 0  ;;  %p75_p11 = scmp.ne.s32.totalorder %s3521_s11, %s3517_s10 }
  0x52   : > { %p85_p13 = scmp.eq.s32.totalorder %s3549_s18, 0  ;;  %s4933_s27 = smov (%p47_p5, %s4931_s27), 0 }
  0x53   : > { %4823 = sst [smem:[#allocation49_spill]] %s4933_s27  ;;  %s4935_s7 = smov (!%p47_p5, %s49_s7), %s3553_s19 }
  0x54   : > { %s58_s14 = ssub.s32 %s3549_s18, %s4933_s27  ;;  %p3810_p4 = por %p4769_p9, %p69_p3 }
  0x55   : > { %p51_p7 = scmp.ge.s32.totalorder %s4935_s7, 4  ;;  %p4825_p8 = scmp.eq.s32.totalorder %s3721_s22, 0 }
  0x56   : > { %s3821_s10 = scalar_select %p85_p13, %s3545_s17, 0 }
  0x57   : > { %p3816_p10 = por %p4825_p8, %p75_p11  ;;  %s4937_s7 = smov (%p51_p7, %s4935_s7), 0 }
  0x58   : > { %4828 = sst [smem:[#allocation51_spill]] %s4937_s7  ;;  %s4939_s24 = smov (!%p51_p7, %s53_s24), %s3557_s20 }
  0x59   : > { %s4826_s15 = scalar_select %p3816_p10, 1, 0 }
  0x5a   : > { %p87_p12 = scmp.eq.s32.totalorder %s4933_s27, 0  ;;  %s3829_s25 = ssub.s32 %s3553_s19, %s4937_s7 }
  0x5b   : > { %4827 = sst [smem:[#allocation50_spill]] %s4826_s15  ;;  %p55_p1 = scmp.ge.s32.totalorder %s4939_s24, 2 }
  0x5c   : > { %s88_s2 = scalar_select %p87_p12, %s4929_s16, 0 }
  0x5d   : > { %s4941_s24 = smov (%p55_p1, %s4939_s24), 0  ;;  %p4768_p3 = scmp.lt.s32.totalorder %s3561_s21, 32 }
  0x5e   : > { %4829 = sst [smem:[#allocation52_spill]] %s4941_s24  ;;  %s4830_s17 = smov %s4941_s24 }
  0x5f   : > { %s90_s15 = ssub.s32 %s3821_s10, %s88_s2  ;;  %s57_s11 = ssub.s32 %s3557_s20, %s4830_s17 }
  0x60   : > { %s59_s7 = sor.u32 %s58_s14, %s57_s11  ;;  %s3840_s27 = sor.u32 %s90_s15, %s57_s11 }
  0x61   : > { %p60_p5 = scmp.eq.s32.totalorder %s59_s7, 0  ;;  %s239_s16 = sor.u32 %s3829_s25, %s57_s11 }
  0x62   : > { %s4831_s30 = sadd.s32 1, %s3525_s12  ;;  %s241_s6 = sor.u32 %s239_s16, %s58_s14 }
  0x63   : > { %s3847_s24 = scalar_select %p60_p5, %s3525_s12, %s4831_s30  }
  0x64   : > { %s305_s2 = sand.u32 1, %s3525_s12   ;;  %p242_p13 = scmp.eq.s32.totalorder %s241_s6, 0 }
  0x65   : > { %4832 = sst [smem:[#allocation53_spill]] %s3847_s24  ;;  %s2267_s3 = sshll.u32 %s305_s2, 6 }
  0x66   : > { %s2268_s17 = sshll.u32 %s3549_s18, 3  ;;  %s4833_s22 = sadd.s32 1, %s3489_s26 }
  0x67   : > { %s3854_s5 = scalar_select %p242_p13, %s3489_s26, %s4833_s22  }
  0x68   : > { %s2269_s15 = sshll.u32 %s3557_s20, 4  ;;  %s307_s23 = scalar_lea.vmem [#allocation8], %s2267_s3 }
  0x69   : > { %s316_s4 = sshll.u32 %s307_s23, 4  ;;  %s313_s7 = sadd.s32 %s2269_s15, %s2268_s17  ;;  %s3859_s4 = int_to_ptr.vmem [resolvable:$true] %s316_s4 }
  0x6a   : > { %s2270_s11 = sshll.u32 %s313_s7, 7  ;;  %p3865_p7 = pnand %p4768_p3, %p3810_p4 }
  0x6b   : > { %s4835_s0 = sld [smem:[#allocation56_spill]]  ;;  %s4836_s3 = sand.u32 1, %s3561_s21  }
  0x6c   : > { %s3876_s17 = scalar_lea.sflag [#allocation9], %s4836_s3  ;;  %p3159_p4 = pneg %p3865_p7 }
  0x71   : > { %s3872_s22 = scalar_lea.hbm %s4835_s0, %s2270_s11  ;;  %s3162_s2 = scalar_lea.hbm %s4835_s0, 4096 }
  0x72   : > { %s3157_s23 = scalar_lea.hbm %s3872_s22, 1024  ;;  %p3163_p5 = scmp.lt.u32.totalorder %s3872_s22, %s4835_s0 }
  0x73   : > { %p3158_p8 = scmp.ne.s32.totalorder %s3872_s22, %s3157_s23  ;;  %p3164_p13 = scmp.lt.u32.totalorder %s3162_s2, %s3157_s23 }
  0x74   : > { %p3166_p0 = scmp.lt.u32.totalorder %s3157_s23, %s3872_s22 }
  0x75   : > { %p3160_p12 = pnand %p3159_p4, %p3158_p8  ;;  %p3165_p6 = por %p3164_p13, %p3163_p5 }
  0x77   : > { %p3161_p1 = pneg %p3160_p12  ;;  %p3167_p3 = por %p3166_p0, %p3165_p6 }
  0x79   : > { %p3168_p9 = pnand %p3167_p3, %p3161_p1 }
  0x7b   : > { %3171 = shalt.err (!%p3168_p9)
}
  0x7c   : > { %s3172_s6 = scalar_lea.vmem %s3859_s4, 1024  ;;  %s3564_s16 = smov [#allocation8]  }
  0x7d   : > { %p3173_p8 = scmp.ne.s32.totalorder %s3859_s4, %s3172_s6  ;;  %s3177_s3 = sshll.u32 %s3564_s16, 4  ;;  %s3178_s3 = int_to_ptr.vmem [resolvable:$false] %s3177_s3 }
  0x7e   : > { %s3179_s14 = scalar_lea.vmem %s3178_s3, 2048  ;;  %p3180_p10 = scmp.lt.s32.totalorder %s3859_s4, %s3178_s3 }
  0x7f   : > { %p3175_p12 = pnand %p3173_p8, %p3159_p4  ;;  %p3181_p5 = scmp.lt.s32.totalorder %s3179_s14, %s3172_s6 }
  0x81   : > { %p3176_p11 = pneg %p3175_p12  ;;  %p3182_p13 = por %p3181_p5, %p3180_p10 }
  0x83   : > { %p3183_p6 = pnand %p3182_p13, %p3176_p11 }
  0x85   : > { %3186 = shalt.err (!%p3183_p6)
}
  0x86   : > { %s4771_s23 = smov 128   ;;  %s4773_s13 = smov 8  }
  0x87   : > { %2812 = dma.hbm_to_vmem [thread:$0]  (!%p3865_p7), %s3872_s22, 1024, %s3859_s4, %s3876_s17, %s4771_s23, %s4771_s23, %s4773_s13  }
  0x88   : > { %s2272_s2 = sshll.u32 %s3821_s10, 3  ;;  %s4837_s1 = sld [smem:[#allocation57_spill]] }
  0x89   : > { %s338_s7 = sadd.s32 %s2272_s2, %s2269_s15  ;;  %s94_s30 = sadd.s32 1, %s3513_s9 }
  0x8a   : > { %s2274_s11 = sshll.u32 %s338_s7, 7  ;;  %p4838_p9 = scmp.eq.s32.totalorder %s3840_s27, 0 }
  0x8b   : > { %p101_p10 = scmp.ne.s32.totalorder %s3513_s9, %s3509_s8  ;;  %s328_s4 = sand.u32 1, %s3513_s9  }
  0x8c   : > { %s3919_s14 = scalar_select %p4838_p9, %s3513_s9, %s94_s30  }
  0x8d   : > { %s2271_s22 = sshll.u32 %s328_s4, 6  ;;  %p4840_p0 = scmp.eq.s32.totalorder %s3561_s21, 0 }
  0x8e   : > { %s3913_s3 = scalar_lea.hbm %s4837_s1, %s2274_s11  ;;  %4839 = sst [smem:[#allocation54_spill]] %s3919_s14 }
  0x8f   : > { %p103_p3 = por %p101_p10, %p4840_p0  ;;  %s330_s10 = scalar_lea.vmem [#allocation11], %s2271_s22 }
  0x90   : > { %s341_s15 = sshll.u32 %s330_s10, 4  ;;  %p4841_p11 = scmp.lt.s32.totalorder %s3561_s21, 32  ;;  %s3926_s15 = int_to_ptr.vmem [resolvable:$true] %s341_s15 }
  0x91   : > { %s162_s27 = sadd.s32 1, %s3501_s29  ;;  %s353_s7 = sand.u32 1, %s3501_s29  }
  0x92   : > { %p3930_p7 = pnand %p4841_p11, %p103_p3  ;;  %s4843_s11 = sand.u32 1, %s3561_s21  }
  0x93   : > { %s3940_s6 = scalar_lea.sflag [#allocation12], %s4843_s11  ;;  %s3187_s16 = scalar_lea.hbm %s3913_s3, 1024 }
  0x94   : > { %p3188_p1 = scmp.ne.s32.totalorder %s3913_s3, %s3187_s16  ;;  %p3189_p8 = pneg %p3930_p7 }
  0x95   : > { %s3192_s22 = scalar_lea.hbm %s4837_s1, 4096  ;;  %p3193_p13 = scmp.lt.u32.totalorder %s3913_s3, %s4837_s1 }
  0x96   : > { %p3190_p12 = pnand %p3189_p8, %p3188_p1  ;;  %p3194_p6 = scmp.lt.u32.totalorder %s3192_s22, %s3187_s16 }
  0x97   : > { %p3196_p10 = scmp.lt.u32.totalorder %s3187_s16, %s3913_s3 }
  0x98   : > { %p3191_p5 = pneg %p3190_p12  ;;  %p3195_p9 = por %p3194_p6, %p3193_p13 }
  0x9a   : > { %p3197_p0 = por %p3196_p10, %p3195_p9 }
  0x9c   : > { %p3198_p3 = pnand %p3197_p0, %p3191_p5 }
  0x9e   : > { %3201 = shalt.err (!%p3198_p3)
}
  0x9f   : > { %s3202_s11 = scalar_lea.vmem %s3926_s15, 1024  ;;  %s3567_s30 = smov [#allocation11]  }
  0xa0   : > { %p3203_p11 = scmp.ne.s32.totalorder %s3926_s15, %s3202_s11  ;;  %s3207_s4 = sshll.u32 %s3567_s30, 4  ;;  %s3208_s4 = int_to_ptr.vmem [resolvable:$false] %s3207_s4 }
  0xa1   : > { %s3209_s23 = scalar_lea.vmem %s3208_s4, 2048  ;;  %p3210_p4 = scmp.lt.s32.totalorder %s3926_s15, %s3208_s4 }
  0xa2   : > { %p3205_p1 = pnand %p3203_p11, %p3189_p8  ;;  %p3211_p13 = scmp.lt.s32.totalorder %s3209_s23, %s3202_s11 }
  0xa4   : > { %p3206_p12 = pneg %p3205_p1  ;;  %p3212_p6 = por %p3211_p13, %p3210_p4 }
  0xa6   : > { %p3213_p9 = pnand %p3212_p6, %p3206_p12 }
  0xa8   : > { %3216 = shalt.err (!%p3213_p9)
}
  0xa9   : > { %s4844_s16 = smov 128   ;;  %p4845_p4 = scmp.eq.s32.totalorder %s3829_s25, 0 }
  0xaa   : > { %2815 = dma.hbm_to_vmem [thread:$0]  (!%p3930_p7), %s3913_s3, 1024, %s3926_s15, %s3940_s6, %s4844_s16, %s4844_s16, %s4773_s13  }
  0xab   : > { %s3976_s22 = scalar_select %p4845_p4, %s3501_s29, %s162_s27  }
  0xac   : > { %p4847_p8 = scmp.eq.s32.totalorder %s3561_s21, 0  ;;  %p4848_p5 = scmp.ne.s32.totalorder %s3501_s29, %s3497_s28 }
  0xad   : > { %4846 = sst [smem:[#allocation55_spill]] %s3976_s22  ;;  %s3985_s2 = sshll.u32 %s353_s7, 7 }
  0xae   : > { %p171_p10 = por %p4848_p5, %p4847_p8  ;;  %s3988_s10 = sshll.u32 %s3553_s19, 11 }
  0xaf   : > { %s4849_s4 = sld [smem:[#allocation60_spill]]  ;;  %s355_s25 = scalar_lea.vmem [#allocation16], %s3985_s2 }
  0xb0   : > { %s362_s3 = sshll.u32 %s355_s25, 4  ;;  %p4850_p7 = scmp.lt.s32.totalorder %s3561_s21, 32  ;;  %s3997_s3 = int_to_ptr.vmem [resolvable:$true] %s362_s3 }
  0xb1   : > { %s3568_s27 = smov [#allocation14]  }
  0xb2   : > { %p4001_p0 = pnand %p4850_p7, %p171_p10  ;;  %s4005_s7 = sshll.u32 %s3568_s27, 4  ;;  %s293_s7 = int_to_ptr.vmem [resolvable:$true] %s4005_s7 }
  0xb4   : > { %s4851_s15 = scalar_select %p4001_p0, 1, 0 }
  0xb5   : > { %s3994_s23 = scalar_lea.hbm %s4849_s4, %s3988_s10  ;;  %p4011_p11 = pneg %p4001_p0 }
  0xb6   : > { %s3217_s11 = scalar_lea.hbm %s3994_s23, 2048  ;;  %s3222_s0 = scalar_lea.hbm %s4849_s4, 8192 }
  0xb7   : > { %p3218_p3 = scmp.ne.s32.totalorder %s3994_s23, %s3217_s11  ;;  %p3223_p13 = scmp.lt.u32.totalorder %s3994_s23, %s4849_s4 }
  0xb8   : > { %s4852_s30 = scalar_select %p4011_p11, 1, 0 }
  0xb9   : > { %p3220_p1 = pnand %p4011_p11, %p3218_p3  ;;  %p3224_p6 = scmp.lt.u32.totalorder %s3222_s0, %s3217_s11 }
  0xba   : > { %p3226_p4 = scmp.lt.u32.totalorder %s3217_s11, %s3994_s23 }
  0xbb   : > { %p3221_p12 = pneg %p3220_p1  ;;  %p3225_p9 = por %p3224_p6, %p3223_p13 }
  0xbd   : > { %p3227_p8 = por %p3226_p4, %p3225_p9 }
  0xbf   : > { %p3228_p5 = pnand %p3227_p8, %p3221_p12 }
  0xc1   : > { %3231 = shalt.err (!%p3228_p5)
}
  0xc2   : > { %s3232_s27 = scalar_lea.vmem %s3997_s3, 2048  ;;  %s3569_s13 = smov [#allocation16]  }
  0xc3   : > { %p3233_p10 = scmp.ne.s32.totalorder %s3997_s3, %s3232_s27  ;;  %s3237_s25 = sshll.u32 %s3569_s13, 4  ;;  %s3238_s25 = int_to_ptr.vmem [resolvable:$false] %s3237_s25 }
  0xc4   : > { %s3239_s1 = scalar_lea.vmem %s3238_s25, 4096  ;;  %p3240_p1 = scmp.lt.s32.totalorder %s3997_s3, %s3238_s25 }
  0xc5   : > { %p3235_p7 = pnand %p3233_p10, %p4011_p11  ;;  %p3241_p2 = scmp.lt.s32.totalorder %s3239_s1, %s3232_s27 }
  0xc7   : > { %p3236_p3 = pneg %p3235_p7  ;;  %p3242_p13 = por %p3241_p2, %p3240_p1 }
  0xc9   : > { %p3243_p6 = pnand %p3242_p13, %p3236_p3 }
  0xcb   : > { %3246 = shalt.err (!%p3243_p6)
}
  0xcc   : > { %s4853_s0 = smov 8   ;;  %s4854_s20 = sld [smem:[#allocation47_spill]] }
  0xcd   : > { %2818 = dma.hbm_to_vmem [thread:$0]  (!%p4001_p0), %s3994_s23, 2048, %s3997_s3, %s3876_s17, %s4844_s16, %s4844_s16, %s4853_s0  }
  0xce   : > { %s4855_s25 = sld [smem:[#allocation61_spill]]  ;;  %s4857_s18 = sld [smem:[#allocation59_spill]] }
  0xd2   : > { %p4859_p12 = scmp.ne.s32.totalorder %s4854_s20, 0 }
  0xd4   : > { %s4856_s4 = smov %s4855_s25  ;;  %s4043_s27 = scalar_lea.hbm %s4855_s25, %s3988_s10 }
  0xd5   : > { %s4858_s22 = smov %s4857_s18  ;;  %s3247_s24 = scalar_lea.hbm %s4857_s18, 16 }
  0xd6   : > { %p3248_p2 = scmp.ne.s32.totalorder %s4858_s22, %s3247_s24  ;;  %p4860_p9 = pneg %p4859_p12 }
  0xd7   : > { %p3254_p5 = scmp.lt.u32.totalorder %s3247_s24, %s4858_s22 }
  0xd8   : > { %p3250_p4 = pnand %p3248_p2, %p4860_p9 }
  0xda   : > { %p3251_p8 = pneg %p3250_p4 }
  0xdc   : > { %p3256_p10 = pnand %p3254_p5, %p3251_p8 }
  0xde   : > { %3259 = shalt.err (!%p3256_p10)
}
  0xdf   : > { %s3260_s3 = scalar_lea.vmem %s293_s7, 16  ;;  %p4861_p3 = pmov %p4860_p9 }
  0xe0   : > { %p3261_p7 = scmp.ne.s32.totalorder %s293_s7, %s3260_s3  ;;  %s3267_s18 = scalar_lea.vmem %s293_s7, 32 }
  0xe1   : > { %p3268_p6 = scmp.lt.s32.totalorder %s293_s7, %s293_s7  ;;  %p3269_p0 = scmp.lt.s32.totalorder %s3267_s18, %s3260_s3 }
  0xe2   : > { %p3263_p1 = pnand %p3261_p7, %p4861_p3 }
  0xe3   : > { %p3270_p11 = por %p3269_p0, %p3268_p6 }
  0xe4   : > { %p3264_p13 = pneg %p3263_p1 }
  0xe6   : > { %p3271_p2 = pnand %p3270_p11, %p3264_p13 }
  0xe8   : > { %3274 = shalt.err (!%p3271_p2)
}
  0xe9   : > { %2808 = dma.hbm_to_vmem [thread:$0]  (!%p4859_p12), %s4858_s22, 16, %s293_s7, [#allocation15]  }
  0xea   : > { %s376_s19 = scalar_lea.vmem [#allocation17], %s3985_s2  ;;  %s4862_s13 = sld [smem:[#allocation62_spill]] }
  0xeb   : > { %s383_s24 = sshll.u32 %s376_s19, 4  ;;  %s3275_s20 = scalar_lea.hbm %s4043_s27, 2048  ;;  %s4066_s24 = int_to_ptr.vmem [resolvable:$true] %s383_s24 }
  0xec   : > { %p3276_p0 = scmp.ne.s32.totalorder %s4043_s27, %s3275_s20  ;;  %p4864_p11 = scmp.ne.s32.totalorder %s4852_s30, 0 }
  0xed   : > { %s3280_s18 = scalar_lea.hbm %s4856_s4, 8192  ;;  %p3281_p12 = scmp.lt.u32.totalorder %s4043_s27, %s4856_s4 }
  0xee   : > { %p3278_p9 = pnand %p3276_p0, %p4864_p11  ;;  %p3282_p8 = scmp.lt.u32.totalorder %s3280_s18, %s3275_s20 }
  0xef   : > { %p3284_p10 = scmp.lt.u32.totalorder %s3275_s20, %s4043_s27 }
  0xf0   : > { %s4863_s1 = smov %s4862_s13  ;;  %s4072_s25 = scalar_lea.hbm %s4862_s13, %s3988_s10 }
  0xf1   : > { %p3279_p4 = pneg %p3278_p9  ;;  %p3283_p5 = por %p3282_p8, %p3281_p12 }
  0xf3   : > { %p3285_p7 = por %p3284_p10, %p3283_p5 }
  0xf5   : > { %p3286_p3 = pnand %p3285_p7, %p3279_p4 }
  0xf7   : > { %3289 = shalt.err (!%p3286_p3)
}
  0xf8   : > { %s3290_s10 = scalar_lea.vmem %s4066_s24, 2048  ;;  %s3570_s9 = smov [#allocation17]  }
  0xf9   : > { %p3291_p1 = scmp.ne.s32.totalorder %s4066_s24, %s3290_s10  ;;  %s3295_s19 = sshll.u32 %s3570_s9, 4  ;;  %s3296_s19 = int_to_ptr.vmem [resolvable:$false] %s3295_s19 }
  0xfa   : > { %s3297_s14 = scalar_lea.vmem %s3296_s19, 4096  ;;  %p3298_p2 = scmp.lt.s32.totalorder %s4066_s24, %s3296_s19 }
  0xfb   : > { %p3293_p13 = pnand %p3291_p1, %p4864_p11  ;;  %p3299_p0 = scmp.lt.s32.totalorder %s3297_s14, %s3290_s10 }
  0xfd   : > { %p3294_p6 = pneg %p3293_p13  ;;  %p3300_p9 = por %p3299_p0, %p3298_p2 }
  0xff   : > { %p3301_p12 = pnand %p3300_p9, %p3294_p6 }
 0x101   : > { %3304 = shalt.err (!%p3301_p12)
}
 0x102   : > { %p4865_p4 = scmp.ne.s32.totalorder %s4851_s15, 0  ;;  %s397_s11 = scalar_lea.vmem [#allocation18], %s3985_s2 }
 0x103   : > { %s404_s13 = sshll.u32 %s397_s11, 4  ;;  %s3305_s20 = scalar_lea.hbm %s4072_s25, 2048  ;;  %s4100_s13 = int_to_ptr.vmem [resolvable:$true] %s404_s13 }
 0x104   : > { %2821 = dma.hbm_to_vmem [thread:$0]  (!%p4865_p4), %s4043_s27, 2048, %s4066_s24, %s3940_s6, %s4844_s16, %s4844_s16, %s4853_s0  }
 0x105   : > { %p3306_p8 = scmp.ne.s32.totalorder %s4072_s25, %s3305_s20  ;;  %s3310_s18 = scalar_lea.hbm %s4863_s1, 8192 }
 0x106   : > { %p3311_p7 = scmp.lt.u32.totalorder %s4072_s25, %s4863_s1  ;;  %p3312_p3 = scmp.lt.u32.totalorder %s3310_s18, %s3305_s20 }
 0x107   : > { %p3308_p5 = pnand %p3306_p8, %p4864_p11  ;;  %p3314_p13 = scmp.lt.u32.totalorder %s3305_s20, %s4072_s25 }
 0x108   : > { %p3313_p1 = por %p3312_p3, %p3311_p7 }
 0x109   : > { %p3309_p10 = pneg %p3308_p5 }
 0x10a   : > { %p3315_p6 = por %p3314_p13, %p3313_p1 }
 0x10c   : > { %p3316_p2 = pnand %p3315_p6, %p3309_p10 }
 0x10e   : > { %3319 = shalt.err (!%p3316_p2)
}
 0x10f   : > { %s3320_s6 = scalar_lea.vmem %s4100_s13, 2048  ;;  %s3571_s2 = smov [#allocation18]  }
 0x110   : > { %p3321_p0 = scmp.ne.s32.totalorder %s4100_s13, %s3320_s6  ;;  %s3325_s27 = sshll.u32 %s3571_s2, 4  ;;  %s3326_s27 = int_to_ptr.vmem [resolvable:$false] %s3325_s27 }
 0x111   : > { %s3327_s24 = scalar_lea.vmem %s3326_s27, 4096  ;;  %p3328_p8 = scmp.lt.s32.totalorder %s4100_s13, %s3326_s27 }
 0x112   : > { %p3323_p9 = pnand %p3321_p0, %p4864_p11  ;;  %p3329_p5 = scmp.lt.s32.totalorder %s3327_s24, %s3320_s6 }
 0x114   : > { %p3324_p12 = pneg %p3323_p9  ;;  %p3330_p7 = por %p3329_p5, %p3328_p8 }
 0x116   : > { %p3331_p3 = pnand %p3330_p7, %p3324_p12 }
 0x118   : > { %3334 = shalt.err (!%p3331_p3)
}
 0x119   : > { %2824 = dma.hbm_to_vmem [thread:$0]  (!%p4865_p4), %s4072_s25, 2048, %s4100_s13, %s3876_s17, %s4844_s16, %s4844_s16, %s4853_s0  }
 0x11a   : > { %s4866_s30 = sld [smem:[#allocation46_spill]] }
 0x120   : > { %p4867_p11 = scmp.ne.s32.totalorder %s4866_s30, 0 }
 0x121   : > { %s4868_s10 = sld [smem:[#allocation41_spill]] (!%p4867_p11)  ;;  %s4869_s9 = sld [smem:[#allocation31_spill]] (!%p4867_p11) }
 0x122   : > { %416 = sbr.rel (%p4867_p11) target bundleno = 2444 (0x98c), region = 48  ;;  %s4870_s19 = sld [smem:[#allocation50_spill]] (!%p4867_p11) }
 0x127   : > { %s418_s14 = sand.u32 (!%p4867_p11), 1, %s4868_s10   ;;  %s420_s11 = sand.u32 (!%p4867_p11), 1, %s4869_s9  }
 0x128   : > { %s2285_s20 = sshll.u32 (!%p4867_p11), %s420_s11, 6  ;;  %s419_s23 = scalar_lea.sflag (!%p4867_p11), [#allocation9], %s418_s14 }
 0x129   : > { %s4131_s3 = scalar_lea.vmem [#allocation8], %s2285_s20  ;;  %p4871_p10 = scmp.ne.s32.totalorder %s4870_s19, 0 }
 0x12b   : > { %3448 = dma.done.wait (%p4871_p10), %s419_s23, 1024  }
 0x12c   : > { %3450 = vsyncadd (%p4871_p10), %s419_s23, 4294966272  ;;  %s4872_s15 = sld [smem:[#allocation42_spill]]  ;;  %s429_s17 = sand.u32 1, %s3509_s8  }
 0x12d   : > { %s2286_s16 = sshll.u32 %s429_s17, 6  ;;  %s428_s0 = scalar_lea.sflag [#allocation12], %s418_s14 }
 0x12e   : > { %s4138_s25 = scalar_lea.vmem [#allocation11], %s2286_s16 }
 0x132   : > { %p4873_p4 = scmp.ne.s32.totalorder %s4872_s15, 0 }
 0x134   : > { %3452 = dma.done.wait (%p4873_p4), %s428_s0, 1024  }
 0x135   : > { %3454 = vsyncadd (%p4873_p4), %s428_s0, 4294966272  ;;  %p4874_p1 = scmp.eq.s32.totalorder %s4868_s10, 0 }
 0x137   : > { %3456 = dma.done.wait (%p4874_p1), [#allocation12], 16   ;;  %p4875_p13 = pmov %p4874_p1 }
 0x138   : > { %p4876_p6 = pmov %p4874_p1 }
 0x139   : > { %3458 = vsyncadd (%p4875_p13), [#allocation12], 4294967280 }
 0x13a   : > { %3460 = dma.done.wait (%p4876_p6), [#allocation15], 16   ;;  %p4877_p2 = pmov %p4874_p1 }
 0x13b   : > { %s4878_s13 = sld [smem:[#allocation43_spill]]  ;;  %s446_s18 = sand.u32 1, %s3497_s28  }
 0x13c   : > { %3462 = vsyncadd (%p4877_p2), [#allocation15], 4294967280  ;;  %s2289_s12 = sshll.u32 %s446_s18, 7 }
 0x13d   : > { %s4153_s7 = scalar_lea.vmem [#allocation16], %s2289_s12 }
 0x141   : > { %p4879_p0 = scmp.ne.s32.totalorder %s4878_s13, 0 }
 0x143   : > { %3464 = dma.done.wait (%p4879_p0), %s419_s23, 2048  }
 0x144   : > { %3466 = vsyncadd (%p4879_p0), %s419_s23, 4294965248  ;;  %s4159_s6 = scalar_lea.vmem [#allocation17], %s2289_s12 }
 0x145   : > { %3468 = dma.done.wait (%p4879_p0), %s428_s0, 2048  }
 0x146   : > { %3470 = vsyncadd (%p4879_p0), %s428_s0, 4294965248  ;;  %s4165_s2 = scalar_lea.vmem [#allocation18], %s2289_s12 }
 0x147   : > { %3472 = dma.done.wait (%p4879_p0), %s419_s23, 2048  }
 0x148   : > { %3474 = vsyncadd (%p4879_p0), %s419_s23, 4294965248  ;;  %s4880_s27 = sld [smem:[#allocation29_spill]]  ;;  %s4881_s9 = sld [smem:[#allocation34_spill]] }
 0x14e   : > { %s514_s24 = sand.u32 1, %s4880_s27   ;;  %p2293_p9 = scmp.ne.s32.totalorder %s4881_s9, 0 }
 0x14f   : > { %s2292_s30 = sshll.u32 %s514_s24, 6  ;;  %v526_v0 = vld [vmem:[%s4138_s25] sm:$0xff] (!%p2293_p9)  ;;  %v528_v1 = vld [vmem:[%s4138_s25 + $0x10] sm:$0xff] (!%p2293_p9)  ;;  %v527_v2 = vld [vmem:[%s4138_s25 + $0x8] sm:$0xff] (!%p2293_p9)  ;;  %s4882_s19 = sld [smem:[#allocation33_spill]] (!%p2293_p9) }
 0x150   : > { %s4174_s10 = scalar_lea.vmem [#allocation19], %s2292_s30  ;;  %525 = sbr.rel (%p2293_p9) target bundleno = 892 (0x37c), region = 80  ;;  %536 = vadd.xlane.f32.xlu0 (!%p2293_p9), %v526_v0  ;;  %540 = vadd.xlane.f32.xlu1 (!%p2293_p9), %v528_v1  ;;  %v529_v3 = vld [vmem:[%s4138_s25 + $0x18] sm:$0xff] (!%p2293_p9)  ;;  %v530_v4 = vld [vmem:[%s4138_s25 + $0x20] sm:$0xff] (!%p2293_p9)  ;;  %v531_v5 = vld [vmem:[%s4138_s25 + $0x28] sm:$0xff] (!%p2293_p9) }
 0x151   : > { %v532_v6 = vld [vmem:[%s4138_s25 + $0x30] sm:$0xff] (!%p2293_p9)  ;;  %v533_v7 = vld [vmem:[%s4138_s25 + $0x38] sm:$0xff] (!%p2293_p9)  ;;  %v710_v40 = vld [vmem:[%s4159_s6] sm:$0xff] (!%p2293_p9) }
 0x152   : > { %v711_v41 = vld [vmem:[%s4159_s6 + $0x8] sm:$0xff] (!%p2293_p9)  ;;  %v841_v42 = vld [vmem:[%s4165_s2] sm:$0xff] (!%p2293_p9)  ;;  %v712_v46 = vld [vmem:[%s4159_s6 + $0x10] sm:$0xff] (!%p2293_p9) }
 0x153   : > { %v2630_v43 = vpack.c.bf16 (!%p2293_p9), %v711_v41, %v710_v40  ;;  %v842_v44 = vld [vmem:[%s4165_s2 + $0x8] sm:$0xff] (!%p2293_p9)  ;;  %v713_v47 = vld [vmem:[%s4159_s6 + $0x18] sm:$0xff] (!%p2293_p9)  ;;  %v843_v48 = vld [vmem:[%s4165_s2 + $0x10] sm:$0xff] (!%p2293_p9) }
 0x154   : > { %538 = vadd.xlane.f32.xlu0 (!%p2293_p9), %v527_v2  ;;  %542 = vadd.xlane.f32.xlu1 (!%p2293_p9), %v529_v3  ;;  %v2662_v45 = vpack.c.bf16 (!%p2293_p9), %v842_v44, %v841_v42  ;;  %v2634_v49 = vpack.c.bf16 (!%p2293_p9), %v713_v47, %v712_v46  ;;  %v844_v50 = vld [vmem:[%s4165_s2 + $0x18] sm:$0xff] (!%p2293_p9)  ;;  %v714_v52 = vld [vmem:[%s4159_s6 + $0x20] sm:$0xff] (!%p2293_p9)  ;;  %v715_v53 = vld [vmem:[%s4159_s6 + $0x28] sm:$0xff] (!%p2293_p9) }
 0x155   : > { %2631 = vmatprep.subr.bf16.mxu0 (!%p2293_p9), %v2630_v43  ;;  %v2666_v51 = vpack.c.bf16 (!%p2293_p9), %v844_v50, %v843_v48  ;;  %v845_v54 = vld [vmem:[%s4165_s2 + $0x20] sm:$0xff] (!%p2293_p9)  ;;  %v2638_v55 = vpack.c.bf16 (!%p2293_p9), %v715_v53, %v714_v52  ;;  %v846_v56 = vld [vmem:[%s4165_s2 + $0x28] sm:$0xff] (!%p2293_p9)  ;;  %v716_v58 = vld [vmem:[%s4159_s6 + $0x30] sm:$0xff] (!%p2293_p9)  ;;  %s2296_s14 = sshll.u32 (!%p2293_p9), %s4882_s19, 6 }
 0x156   : > { %2663 = vmatprep.subr.bf16.mxu1 (!%p2293_p9), %v2662_v45  ;;  %2633 = vmatpush3.bf16.msra.mxu0 (!%p2293_p9), %v2630_v43  ;;  %v2670_v57 = vpack.c.bf16 (!%p2293_p9), %v846_v56, %v845_v54  ;;  %v717_v59 = vld [vmem:[%s4159_s6 + $0x38] sm:$0xff] (!%p2293_p9)  ;;  %v847_v60 = vld [vmem:[%s4165_s2 + $0x30] sm:$0xff] (!%p2293_p9)  ;;  %s831_s11 = scalar_lea.vmem (!%p2293_p9), [#allocation3], %s2296_s14  ;;  %s962_s20 = scalar_lea.vmem (!%p2293_p9), [#allocation4], %s2296_s14 }
 0x157   : > { %2665 = vmatpush3.bf16.msra.mxu1 %v2662_v45  ;;  %2635 = vmatprep.subr.bf16.mxu0 %v2634_v49  ;;  %v2642_v61 = vpack.c.bf16 %v717_v59, %v716_v58  ;;  %v848_v62 = vld [vmem:[%s4165_s2 + $0x38] sm:$0xff] }
 0x158   : > { %544 = vadd.xlane.f32.xlu0 %v530_v4  ;;  %546 = vadd.xlane.f32.xlu1 %v531_v5  ;;  %v2674_v63 = vpack.c.bf16 %v848_v62, %v847_v60 }
 0x159   : > { %2667 = vmatprep.subr.bf16.mxu1 %v2666_v51 }
 0x15a   : > { %2637 = vmatpush3.bf16.msra.mxu0 %v2634_v49 }
 0x15b   : > { %2669 = vmatpush3.bf16.msra.mxu1 %v2666_v51  ;;  %2639 = vmatprep.subr.bf16.mxu0 %v2638_v55 }
 0x15c   : > { %548 = vadd.xlane.f32.xlu0 %v532_v6  ;;  %550 = vadd.xlane.f32.xlu1 %v533_v7 }
 0x15d   : > { %2671 = vmatprep.subr.bf16.mxu1 %v2670_v57 }
 0x15e   : > { %2641 = vmatpush3.bf16.msra.mxu0 %v2638_v55 }
 0x15f   : > { %2673 = vmatpush3.bf16.msra.mxu1 %v2670_v57  ;;  %2643 = vmatprep.subr.bf16.mxu0 %v2642_v61 }
 0x160   : > { %2675 = vmatprep.subr.bf16.mxu1 %v2674_v63 }
 0x162   : > { %2645 = vmatpush3.bf16.msra.mxu0 %v2642_v61 }
 0x163   : > { %2677 = vmatpush3.bf16.msra.mxu1 %v2674_v63 }
 0x1dd   : > { %v537_v8 = vpop.xlane.xlu0 %536  ;;  %v541_v9 = vpop.xlane.xlu1 %540 }
 0x1de   : > { %v553_v10 = vmul.f32 0.0078125, %v537_v8  ;;  %v555_v11 = vmul.f32 0.0078125, %v541_v9  ;;  %v851_v8 = vld [vmem:[%s4165_s2 + $0x50] sm:$0xff] }
 0x1e0   : > { %v4185_v12 = vsub.f32 %v526_v0, %v553_v10  ;;  %v4187_v13 = vsub.f32 %v528_v1, %v555_v11  ;;  %v718_v0 = vld [vmem:[%s4159_s6 + $0x40] sm:$0xff]  ;;  %v719_v1 = vld [vmem:[%s4159_s6 + $0x48] sm:$0xff]  ;;  %v852_v10 = vld [vmem:[%s4165_s2 + $0x58] sm:$0xff] }
 0x1e1   : > { %v539_v14 = vpop.xlane.xlu0 %538  ;;  %v543_v15 = vpop.xlane.xlu1 %542  ;;  %v2682_v11 = vpack.c.bf16 %v852_v10, %v851_v8 }
 0x1e2   : > { %v554_v16 = vmul.f32 0.0078125, %v539_v14  ;;  %v569_v17 = vmul.f32 %v4185_v12, %v4185_v12  ;;  %v556_v18 = vmul.f32 0.0078125, %v543_v15  ;;  %v571_v21 = vmul.f32 %v4187_v13, %v4187_v13  ;;  %v722_v14 = vld [vmem:[%s4159_s6 + $0x60] sm:$0xff]  ;;  %v723_v15 = vld [vmem:[%s4159_s6 + $0x68] sm:$0xff] }
 0x1e4   : > { %v4191_v19 = vsub.f32 %v527_v2, %v554_v16  ;;  %577 = vadd.xlane.f32.xlu0 %v569_v17  ;;  %v4193_v20 = vsub.f32 %v529_v3, %v556_v18  ;;  %v849_v2 = vld [vmem:[%s4165_s2 + $0x40] sm:$0xff]  ;;  %v2646_v3 = vpack.c.bf16 %v719_v1, %v718_v0  ;;  %v2654_v17 = vpack.c.bf16 %v723_v15, %v722_v14  ;;  %v854_v18 = vld [vmem:[%s4165_s2 + $0x68] sm:$0xff] }
 0x1e5   : > { %v545_v22 = vpop.xlane.xlu0 %544  ;;  %v547_v23 = vpop.xlane.xlu1 %546  ;;  %v853_v16 = vld [vmem:[%s4165_s2 + $0x60] sm:$0xff] }
 0x1e6   : > { %v557_v24 = vmul.f32 0.0078125, %v545_v22  ;;  %v570_v25 = vmul.f32 %v4191_v19, %v4191_v19  ;;  %v558_v26 = vmul.f32 0.0078125, %v547_v23  ;;  %v572_v29 = vmul.f32 %v4193_v20, %v4193_v20  ;;  %2647 = vmatprep.subr.bf16.mxu0 %v2646_v3  ;;  %v724_v22 = vld [vmem:[%s4159_s6 + $0x70] sm:$0xff]  ;;  %v725_v23 = vld [vmem:[%s4159_s6 + $0x78] sm:$0xff] }
 0x1e7   : > { %2649 = vmatpush3.bf16.msra.mxu0 %v2646_v3 }
 0x1e8   : > { %v4199_v27 = vsub.f32 %v530_v4, %v557_v24  ;;  %581 = vadd.xlane.f32.xlu0 %v571_v21  ;;  %579 = vadd.xlane.f32.xlu1 %v570_v25  ;;  %v4201_v28 = vsub.f32 %v531_v5, %v558_v26  ;;  %v850_v4 = vld [vmem:[%s4165_s2 + $0x48] sm:$0xff]  ;;  %v2686_v21 = vpack.c.bf16 %v854_v18, %v853_v16  ;;  %v855_v25 = vld [vmem:[%s4165_s2 + $0x70] sm:$0xff]  ;;  %v856_v26 = vld [vmem:[%s4165_s2 + $0x78] sm:$0xff] }
 0x1e9   : > { %v549_v30 = vpop.xlane.xlu0 %548  ;;  %v551_v31 = vpop.xlane.xlu1 %550  ;;  %v2678_v5 = vpack.c.bf16 %v850_v4, %v849_v2  ;;  %v2658_v24 = vpack.c.bf16 %v725_v23, %v724_v22 }
 0x1ea   : > { %v559_v32 = vmul.f32 0.0078125, %v549_v30  ;;  %v573_v33 = vmul.f32 %v4199_v27, %v4199_v27  ;;  %v560_v34 = vmul.f32 0.0078125, %v551_v31  ;;  %v574_v37 = vmul.f32 %v4201_v28, %v4201_v28 }
 0x1eb   : > { %2679 = vmatprep.subr.bf16.mxu1 %v2678_v5 }
 0x1ec   : > { %v4207_v35 = vsub.f32 %v532_v6, %v559_v32  ;;  %583 = vadd.xlane.f32.xlu1 %v572_v29  ;;  %585 = vadd.xlane.f32.xlu0 %v573_v33  ;;  %v4209_v36 = vsub.f32 %v533_v7, %v560_v34  ;;  %v720_v6 = vld [vmem:[%s4159_s6 + $0x50] sm:$0xff]  ;;  %v721_v7 = vld [vmem:[%s4159_s6 + $0x58] sm:$0xff]  ;;  %v2690_v29 = vpack.c.bf16 %v856_v26, %v855_v25 }
 0x1ed   : > { %2681 = vmatpush3.bf16.msra.mxu1 %v2678_v5  ;;  %v2650_v9 = vpack.c.bf16 %v721_v7, %v720_v6 }
 0x1ee   : > { %v575_v38 = vmul.f32 %v4207_v35, %v4207_v35  ;;  %v576_v39 = vmul.f32 %v4209_v36, %v4209_v36  ;;  %2683 = vmatprep.subr.bf16.mxu1 %v2682_v11 }
 0x1ef   : > { %2651 = vmatprep.subr.bf16.mxu0 %v2650_v9 }
 0x1f0   : > { %587 = vadd.xlane.f32.xlu1 %v574_v37  ;;  %589 = vadd.xlane.f32.xlu0 %v575_v38 }
 0x1f1   : > { %2653 = vmatpush3.bf16.msra.mxu0 %v2650_v9  ;;  %2685 = vmatpush3.bf16.msra.mxu1 %v2682_v11 }
 0x1f2   : > { %2655 = vmatprep.subr.bf16.mxu0 %v2654_v17  ;;  %2687 = vmatprep.subr.bf16.mxu1 %v2686_v21 }
 0x1f4   : > { %591 = vadd.xlane.f32.xlu1 %v576_v39 }
 0x1f5   : > { %2657 = vmatpush3.bf16.msra.mxu0 %v2654_v17  ;;  %2689 = vmatpush3.bf16.msra.mxu1 %v2686_v21 }
 0x1f6   : > { %2659 = vmatprep.subr.bf16.mxu0 %v2658_v24  ;;  %2691 = vmatprep.subr.bf16.mxu1 %v2690_v29 }
 0x1f9   : > { %2661 = vmatpush3.bf16.msra.mxu0 %v2658_v24  ;;  %2693 = vmatpush3.bf16.msra.mxu1 %v2690_v29 }
 0x271   : > { %v578_v30 = vpop.xlane.xlu0 %577 }
 0x272   : > { %v593_v31 = vmul.f32 0.0078125, %v578_v30 }
 0x274   : > { %v601_v32 = vadd.f32 1e-05, %v593_v31  ;;  %v2294_v31 = vld [vmem:[#allocation13] ss:$0 sm:$0xff] }
 0x275   : > { %v580_v33 = vpop.xlane.xlu1 %579  ;;  %v582_v34 = vpop.xlane.xlu0 %581 }
 0x276   : > { %3013 = vrsqrt.f32 %v601_v32  ;;  %v594_v37 = vmul.f32 0.0078125, %v580_v33  ;;  %v595_v38 = vmul.f32 0.0078125, %v582_v34  ;;  %vm611_vm0 = vcmp.eq.f32.partialorder %v601_v32, inf }
 0x277   : > { %v614_v59 = vand.u32 2147483648, %v601_v32  ;;  %vm613_vm2 = vcmp.eq.f32.partialorder %v601_v32, 0.0 }
 0x278   : > { %v602_v39 = vadd.f32 1e-05, %v594_v37  ;;  %v603_v40 = vadd.f32 1e-05, %v595_v38 }
 0x279   : > { %v584_v41 = vpop.xlane.xlu1 %583  ;;  %v586_v42 = vpop.xlane.xlu0 %585 }
 0x27a   : > { %3015 = vrsqrt.f32 %v602_v39  ;;  %v596_v43 = vmul.f32 0.0078125, %v584_v41  ;;  %v597_v44 = vmul.f32 0.0078125, %v586_v42  ;;  %vm618_vm1 = vcmp.eq.f32.partialorder %v602_v39, inf }
 0x27b   : > { %3017 = vrsqrt.f32 %v603_v40  ;;  %v621_v62 = vand.u32 2147483648, %v602_v39  ;;  %vm625_vm3 = vcmp.eq.f32.partialorder %v603_v40, inf  ;;  %v628_v3 = vand.u32 2147483648, %v603_v40 }
 0x27c   : > { %v604_v47 = vadd.f32 1e-05, %v596_v43  ;;  %v605_v48 = vadd.f32 1e-05, %v597_v44  ;;  %vm620_vm4 = vcmp.eq.f32.partialorder %v602_v39, 0.0  ;;  %vm627_vm5 = vcmp.eq.f32.partialorder %v603_v40, 0.0 }
 0x27d   : > { %v588_v45 = vpop.xlane.xlu1 %587  ;;  %v590_v46 = vpop.xlane.xlu0 %589 }
 0x27e   : > { %v598_v49 = vmul.f32 0.0078125, %v588_v45  ;;  %v599_v50 = vmul.f32 0.0078125, %v590_v46  ;;  %3019 = vrsqrt.f32 %v604_v47  ;;  %vm632_vm6 = vcmp.eq.f32.partialorder %v604_v47, inf }
 0x27f   : > { %3021 = vrsqrt.f32 %v605_v48  ;;  %v635_v10 = vand.u32 2147483648, %v604_v47  ;;  %vm634_vm7 = vcmp.eq.f32.partialorder %v604_v47, 0.0  ;;  %vm639_vm8 = vcmp.eq.f32.partialorder %v605_v48, inf }
 0x280   : > { %v3014_v51 = vpop.eup %3013  ;;  %v606_v54 = vadd.f32 1e-05, %v598_v49  ;;  %v4249_v55 = vadd.f32 1e-05, %v599_v50  ;;  %v642_v15 = vand.u32 2147483648, %v605_v48  ;;  %vm641_vm9 = vcmp.eq.f32.partialorder %v605_v48, 0.0 }
 0x281   : > { %v610_v52 = vmul.f32 %v3014_v51, %v601_v32  ;;  %v592_v53 = vpop.xlane.xlu1 %591 }
 0x282   : > { %v600_v56 = vmul.f32 0.0078125, %v592_v53  ;;  %3023 = vrsqrt.f32 %v606_v54  ;;  %vm646_vm10 = vcmp.eq.f32.partialorder %v606_v54, inf  ;;  %v649_v24 = vand.u32 2147483648, %v606_v54 }
 0x283   : > { %v612_v57 = vsel %vm611_vm0, %v601_v32, %v610_v52  ;;  %3025 = vrsqrt.f32 %v4249_v55  ;;  %vm648_vm11 = vcmp.eq.f32.partialorder %v606_v54, 0.0  ;;  %vm653_vm12 = vcmp.eq.f32.partialorder %v4249_v55, inf }
 0x284   : > { %v3016_v58 = vpop.eup %3015  ;;  %v4252_v0 = vadd.f32 1e-05, %v600_v56  ;;  %v615_v1 = vsel %vm613_vm2, %v614_v59, %v612_v57  ;;  %v656_v30 = vand.u32 2147483648, %v4249_v55  ;;  %vm655_vm13 = vcmp.eq.f32.partialorder %v4249_v55, 0.0 }
 0x285   : > { %v3018_v60 = vpop.eup %3017  ;;  %v617_v61 = vmul.f32 %v3016_v58, %v602_v39  ;;  %3027 = vrcp.f32 %v615_v1  ;;  %vm832_vm0 = vcmask 261120  }
 0x286   : > { %v624_v63 = vmul.f32 %v3018_v60, %v603_v40  ;;  %3029 = vrsqrt.f32 %v4252_v0  ;;  %vm660_vm14 = vcmp.eq.f32.partialorder %v4252_v0, inf  ;;  %v663_v42 = vand.u32 2147483648, %v4252_v0 }
 0x287   : > { %v619_v2 = vsel %vm618_vm1, %v602_v39, %v617_v61  ;;  %v2295_v39 = vld [vmem:[#allocation14] ss:$0 sm:$0xff]  ;;  %vm662_vm15 = vcmp.eq.f32.partialorder %v4252_v0, 0.0 }
 0x288   : > { %v626_v4 = vsel %vm625_vm3, %v603_v40, %v624_v63  ;;  %v622_v5 = vsel %vm620_vm4, %v621_v62, %v619_v2  ;;  %v3020_v7 = vpop.eup %3019 }
 0x289   : > { %v629_v6 = vsel %vm627_vm5, %v628_v3, %v626_v4  ;;  %3031 = vrcp.f32 %v622_v5  ;;  %v3022_v8 = vpop.eup %3021  ;;  %v631_v9 = vmul.f32 %v3020_v7, %v604_v47 }
 0x28a   : > { %3033 = vrcp.f32 %v629_v6  ;;  %v638_v11 = vmul.f32 %v3022_v8, %v605_v48 }
 0x28b   : > { %v633_v14 = vsel %vm632_vm6, %v604_v47, %v631_v9 }
 0x28c   : > { %v3024_v16 = vpop.eup %3023  ;;  %v640_v17 = vsel %vm639_vm8, %v605_v48, %v638_v11  ;;  %v636_v18 = vsel %vm634_vm7, %v635_v10, %v633_v14 }
 0x28d   : > { %v3026_v21 = vpop.eup %3025  ;;  %v645_v22 = vmul.f32 %v3024_v16, %v606_v54  ;;  %3035 = vrcp.f32 %v636_v18  ;;  %v643_v23 = vsel %vm641_vm9, %v642_v15, %v640_v17 }
 0x28e   : > { %v652_v25 = vmul.f32 %v3026_v21, %v4249_v55  ;;  %3037 = vrcp.f32 %v643_v23 }
 0x28f   : > { %v3028_v26 = vpop.eup %3027  ;;  %v647_v29 = vsel %vm646_vm10, %v606_v54, %v645_v22 }
 0x290   : > { %v3030_v32 = vpop.eup %3029  ;;  %v654_v33 = vsel %vm653_vm12, %v4249_v55, %v652_v25  ;;  %v666_v34 = vmul.f32 %v3028_v26, %v4185_v12  ;;  %v650_v37 = vsel %vm648_vm11, %v649_v24, %v647_v29 }
 0x291   : > { %v659_v38 = vmul.f32 %v3030_v32, %v4252_v0  ;;  %3039 = vrcp.f32 %v650_v37  ;;  %v657_v40 = vsel %vm655_vm13, %v656_v30, %v654_v33 }
 0x292   : > { %v687_v43 = vmul.f32 %v2294_v31, %v666_v34  ;;  %3041 = vrcp.f32 %v657_v40 }
 0x293   : > { %v3032_v41 = vpop.eup %3031  ;;  %v661_v45 = vsel %vm660_vm14, %v4252_v0, %v659_v38 }
 0x294   : > { %v3034_v44 = vpop.eup %3033  ;;  %v668_v12 = vmul.f32 %v3032_v41, %v4191_v19  ;;  %v701_v46 = vadd.f32 %v2295_v39, %v687_v43  ;;  %v664_v48 = vsel %vm662_vm15, %v663_v42, %v661_v45 }
 0x295   : > { %v670_v47 = vmul.f32 %v3034_v44, %v4187_v13  ;;  %3043 = vrcp.f32 %v664_v48 }
 0x296   : > { %v688_v49 = vmul.f32 %v2294_v31, %v668_v12  ;;  %2474 = vmatprep.mubr.f32.mxu0 %v701_v46  ;;  %2518 = vmatprep.mubr.f32.mxu1 %v701_v46 }
 0x297   : > { %v689_v50 = vmul.f32 %v2294_v31, %v670_v47  ;;  %v3036_v51 = vpop.eup %3035 }
 0x298   : > { %v702_v52 = vadd.f32 %v2295_v39, %v688_v49  ;;  %v3038_v53 = vpop.eup %3037  ;;  %v672_v55 = vmul.f32 %v3036_v51, %v4193_v20 }
 0x299   : > { %v703_v54 = vadd.f32 %v2295_v39, %v689_v50  ;;  %v674_v56 = vmul.f32 %v3038_v53, %v4199_v27 }
 0x29a   : > { %2475 = vmatmul.mubr.f32.vlgmr.msra.gmra.mrb[0].mxu0 %v702_v52  ;;  %2519 = vmatmul.mubr.f32.vlgmr.msra.gmra.mrb[0].mxu1 %v702_v52  ;;  %v690_v19 = vmul.f32 %v2294_v31, %v672_v55 }
 0x29b   : > { %2477 = vmatprep.mubr.f32.mxu0 %v703_v54  ;;  %2521 = vmatprep.mubr.f32.mxu1 %v703_v54  ;;  %v3040_v13 = vpop.eup %3039  ;;  %v691_v57 = vmul.f32 %v2294_v31, %v674_v56 }
 0x29c   : > { %v3042_v58 = vpop.eup %3041  ;;  %v704_v59 = vadd.f32 %v2295_v39, %v690_v19  ;;  %v676_v60 = vmul.f32 %v3040_v13, %v4201_v28 }
 0x29d   : > { %v705_v61 = vadd.f32 %v2295_v39, %v691_v57  ;;  %v678_v62 = vmul.f32 %v3042_v58, %v4207_v35 }
 0x29e   : > { %2478 = vmatmul.mubr.f32.gmra.mrb[2].mxu0 %v704_v59  ;;  %2522 = vmatmul.mubr.f32.gmra.mrb[2].mxu1 %v704_v59  ;;  %v692_v63 = vmul.f32 %v2294_v31, %v676_v60 }
 0x29f   : > { %v3044_v20 = vpop.eup %3043  ;;  %2480 = vmatprep.mubr.f32.mxu0 %v705_v61  ;;  %2524 = vmatprep.mubr.f32.mxu1 %v705_v61  ;;  %v693_v27 = vmul.f32 %v2294_v31, %v678_v62 }
 0x2a0   : > { %v706_v0 = vadd.f32 %v2295_v39, %v692_v63  ;;  %v680_v1 = vmul.f32 %v3044_v20, %v4209_v36 }
 0x2a1   : > { %v707_v2 = vadd.f32 %v2295_v39, %v693_v27 }
 0x2a2   : > { %2481 = vmatmul.mubr.f32.gmra.mrb[4].mxu0 %v706_v0  ;;  %2525 = vmatmul.mubr.f32.gmra.mrb[4].mxu1 %v706_v0  ;;  %v694_v3 = vmul.f32 %v2294_v31, %v680_v1 }
 0x2a3   : > { %2483 = vmatprep.mubr.f32.mxu0 %v707_v2  ;;  %2527 = vmatprep.mubr.f32.mxu1 %v707_v2 }
 0x2a4   : > { %v708_v28 = vadd.f32 %v2295_v39, %v694_v3 }
 0x2a6   : > { %2484 = vmatmul.mubr.f32.gmra.mrb[6].mxu0 %v708_v28  ;;  %2528 = vmatmul.mubr.f32.gmra.mrb[6].mxu1 %v708_v28 }
 0x36d   : > { %v2476_v35 = vpop.f32.mrb[0].mxu0  ;;  %v2520_v4 = vpop.f32.mrb[0].mxu1 }
 0x36e   : > { %834 = vst.msk [vmem:[%s831_s11 + $0x8] sm:$0xff] %vm832_vm0, %v2476_v35  ;;  %964 = vst.msk [vmem:[%s962_s20 + $0x8] sm:$0xff] %vm832_vm0, %v2520_v4  ;;  %v792_v36 = vpop.f32.mrb[1].mxu0  ;;  %v923_v5 = vpop.f32.mrb[1].mxu1 }
 0x36f   : > { %833 = vst.msk [vmem:[%s831_s11] sm:$0xff] %vm832_vm0, %v792_v36  ;;  %963 = vst.msk [vmem:[%s962_s20] sm:$0xff] %vm832_vm0, %v923_v5 }
 0x371   : > { %v2479_v6 = vpop.f32.mrb[2].mxu0  ;;  %v2523_v7 = vpop.f32.mrb[2].mxu1 }
 0x372   : > { %836 = vst.msk [vmem:[%s831_s11 + $0x18] sm:$0xff] %vm832_vm0, %v2479_v6  ;;  %966 = vst.msk [vmem:[%s962_s20 + $0x18] sm:$0xff] %vm832_vm0, %v2523_v7  ;;  %v802_v8 = vpop.f32.mrb[3].mxu0  ;;  %v933_v9 = vpop.f32.mrb[3].mxu1 }
 0x373   : > { %835 = vst.msk [vmem:[%s831_s11 + $0x10] sm:$0xff] %vm832_vm0, %v802_v8  ;;  %965 = vst.msk [vmem:[%s962_s20 + $0x10] sm:$0xff] %vm832_vm0, %v933_v9 }
 0x375   : > { %v2482_v10 = vpop.f32.mrb[4].mxu0  ;;  %v2526_v11 = vpop.f32.mrb[4].mxu1 }
 0x376   : > { %838 = vst.msk [vmem:[%s831_s11 + $0x28] sm:$0xff] %vm832_vm0, %v2482_v10  ;;  %968 = vst.msk [vmem:[%s962_s20 + $0x28] sm:$0xff] %vm832_vm0, %v2526_v11  ;;  %v812_v14 = vpop.f32.mrb[5].mxu0  ;;  %v943_v15 = vpop.f32.mrb[5].mxu1 }
 0x377   : > { %837 = vst.msk [vmem:[%s831_s11 + $0x20] sm:$0xff] %vm832_vm0, %v812_v14  ;;  %967 = vst.msk [vmem:[%s962_s20 + $0x20] sm:$0xff] %vm832_vm0, %v943_v15 }
 0x379   : > { %v2485_v16 = vpop.f32.mrb[6].mxu0  ;;  %v2529_v17 = vpop.f32.mrb[6].mxu1 }
 0x37a   : > { %840 = vst.msk [vmem:[%s831_s11 + $0x38] sm:$0xff] %vm832_vm0, %v2485_v16  ;;  %970 = vst.msk [vmem:[%s962_s20 + $0x38] sm:$0xff] %vm832_vm0, %v2529_v17  ;;  %v822_v18 = vpop.f32.mrb[7].mxu0  ;;  %v953_v21 = vpop.f32.mrb[7].mxu1 }
 0x37b   : > { %839 = vst.msk [vmem:[%s831_s11 + $0x30] sm:$0xff] %vm832_vm0, %v822_v18  ;;  %969 = vst.msk [vmem:[%s962_s20 + $0x30] sm:$0xff] %vm832_vm0, %v953_v21 }
 0x37c PF: > { %s4883_s23 = sld [smem:[#allocation33_spill]] }
 0x382   : > { %p2297_p12 = scmp.ne.s32.totalorder %s4883_s23, 0 }
 0x383   : > { %v1001_v22 = vld [vmem:[%s4131_s3] sm:$0xff] (!%p2297_p12)  ;;  %v1002_v23 = vld [vmem:[%s4131_s3 + $0x8] sm:$0xff] (!%p2297_p12)  ;;  %v1003_v26 = vld [vmem:[%s4131_s3 + $0x10] sm:$0xff] (!%p2297_p12)  ;;  %vm975_vm1 = vcmask (!%p2297_p12), 7168   ;;  %vm992_vm2 = vcmask (!%p2297_p12), 261120  }
 0x384   : > { %974 = sbr.rel (%p2297_p12) target bundleno = 1458 (0x5b2), region = 84  ;;  %1011 = vadd.xlane.f32.xlu0 (!%p2297_p12), %v1001_v22  ;;  %1013 = vadd.xlane.f32.xlu1 (!%p2297_p12), %v1002_v23  ;;  %v1005_v24 = vld [vmem:[%s4131_s3 + $0x20] sm:$0xff] (!%p2297_p12)  ;;  %v1006_v25 = vld [vmem:[%s4131_s3 + $0x28] sm:$0xff] (!%p2297_p12)  ;;  %v1007_v29 = vld [vmem:[%s4131_s3 + $0x30] sm:$0xff] (!%p2297_p12) }
 0x385   : > { %v1004_v30 = vld [vmem:[%s4131_s3 + $0x18] sm:$0xff] (!%p2297_p12)  ;;  %v1184_v63 = vld [vmem:[%s4153_s7] sm:$0xff] (!%p2297_p12)  ;;  %v1185_v20 = vld [vmem:[%s4153_s7 + $0x8] sm:$0xff] (!%p2297_p12) }
 0x386   : > { %v1008_v31 = vld [vmem:[%s4131_s3 + $0x38] sm:$0xff] (!%p2297_p12)  ;;  %v2694_v27 = vpack.c.bf16 (!%p2297_p12), %v1185_v20, %v1184_v63  ;;  %v1188_v3 = vld [vmem:[%s4153_s7 + $0x20] sm:$0xff] (!%p2297_p12)  ;;  %v1189_v28 = vld [vmem:[%s4153_s7 + $0x28] sm:$0xff] (!%p2297_p12) }
 0x387   : > { %v1186_v0 = vld [vmem:[%s4153_s7 + $0x10] sm:$0xff] (!%p2297_p12)  ;;  %v1187_v1 = vld [vmem:[%s4153_s7 + $0x18] sm:$0xff] (!%p2297_p12)  ;;  %v2702_v35 = vpack.c.bf16 (!%p2297_p12), %v1189_v28, %v1188_v3  ;;  %v1192_v6 = vld [vmem:[%s4153_s7 + $0x40] sm:$0xff] (!%p2297_p12) }
 0x388   : > { %1019 = vadd.xlane.f32.xlu0 (!%p2297_p12), %v1005_v24  ;;  %1021 = vadd.xlane.f32.xlu1 (!%p2297_p12), %v1006_v25  ;;  %v2698_v2 = vpack.c.bf16 (!%p2297_p12), %v1187_v1, %v1186_v0  ;;  %v1190_v4 = vld [vmem:[%s4153_s7 + $0x30] sm:$0xff] (!%p2297_p12)  ;;  %v1191_v36 = vld [vmem:[%s4153_s7 + $0x38] sm:$0xff] (!%p2297_p12)  ;;  %v1193_v7 = vld [vmem:[%s4153_s7 + $0x48] sm:$0xff] (!%p2297_p12) }
 0x389   : > { %2695 = vmatprep.subr.bf16.mxu0 (!%p2297_p12), %v2694_v27  ;;  %2766 = vmatprep.subr.bf16.mxu1 (!%p2297_p12), %v2694_v27  ;;  %v2706_v5 = vpack.c.bf16 (!%p2297_p12), %v1191_v36, %v1190_v4  ;;  %v2710_v8 = vpack.c.bf16 (!%p2297_p12), %v1193_v7, %v1192_v6  ;;  %v1194_v9 = vld [vmem:[%s4153_s7 + $0x50] sm:$0xff] (!%p2297_p12)  ;;  %v1195_v10 = vld [vmem:[%s4153_s7 + $0x58] sm:$0xff] (!%p2297_p12)  ;;  %v1196_v14 = vld [vmem:[%s4153_s7 + $0x60] sm:$0xff] (!%p2297_p12) }
 0x38a   : > { %2697 = vmatpush3.bf16.msra.mxu0 (!%p2297_p12), %v2694_v27  ;;  %2774 = vmatpush3.bf16.msra.mxu1 (!%p2297_p12), %v2694_v27  ;;  %v2714_v11 = vpack.c.bf16 (!%p2297_p12), %v1195_v10, %v1194_v9  ;;  %v1197_v15 = vld [vmem:[%s4153_s7 + $0x68] sm:$0xff] (!%p2297_p12)  ;;  %v1198_v17 = vld [vmem:[%s4153_s7 + $0x70] sm:$0xff] (!%p2297_p12)  ;;  %v1199_v18 = vld [vmem:[%s4153_s7 + $0x78] sm:$0xff] (!%p2297_p12) }
 0x38b   : > { %2699 = vmatprep.subr.bf16.mxu0 %v2698_v2  ;;  %2767 = vmatprep.subr.bf16.mxu1 %v2698_v2  ;;  %v2718_v16 = vpack.c.bf16 %v1197_v15, %v1196_v14  ;;  %v2722_v21 = vpack.c.bf16 %v1199_v18, %v1198_v17 }
 0x38c   : > { %1015 = vadd.xlane.f32.xlu0 %v1003_v26  ;;  %1023 = vadd.xlane.f32.xlu1 %v1007_v29 }
 0x38e   : > { %2701 = vmatpush3.bf16.msra.mxu0 %v2698_v2  ;;  %2775 = vmatpush3.bf16.msra.mxu1 %v2698_v2 }
 0x38f   : > { %2703 = vmatprep.subr.bf16.mxu0 %v2702_v35  ;;  %2768 = vmatprep.subr.bf16.mxu1 %v2702_v35 }
 0x390   : > { %1017 = vadd.xlane.f32.xlu0 %v1004_v30  ;;  %1025 = vadd.xlane.f32.xlu1 %v1008_v31 }
 0x392   : > { %2705 = vmatpush3.bf16.msra.mxu0 %v2702_v35  ;;  %2776 = vmatpush3.bf16.msra.mxu1 %v2702_v35 }
 0x393   : > { %2707 = vmatprep.subr.bf16.mxu0 %v2706_v5  ;;  %2769 = vmatprep.subr.bf16.mxu1 %v2706_v5 }
 0x396   : > { %2709 = vmatpush3.bf16.msra.mxu0 %v2706_v5  ;;  %2777 = vmatpush3.bf16.msra.mxu1 %v2706_v5 }
 0x397   : > { %2711 = vmatprep.subr.bf16.mxu0 %v2710_v8  ;;  %2770 = vmatprep.subr.bf16.mxu1 %v2710_v8 }
 0x39a   : > { %2713 = vmatpush3.bf16.msra.mxu0 %v2710_v8  ;;  %2778 = vmatpush3.bf16.msra.mxu1 %v2710_v8 }
 0x39b   : > { %2715 = vmatprep.subr.bf16.mxu0 %v2714_v11  ;;  %2771 = vmatprep.subr.bf16.mxu1 %v2714_v11 }
 0x39e   : > { %2717 = vmatpush3.bf16.msra.mxu0 %v2714_v11  ;;  %2779 = vmatpush3.bf16.msra.mxu1 %v2714_v11 }
 0x39f   : > { %2719 = vmatprep.subr.bf16.mxu0 %v2718_v16  ;;  %2772 = vmatprep.subr.bf16.mxu1 %v2718_v16 }
 0x3a2   : > { %2721 = vmatpush3.bf16.msra.mxu0 %v2718_v16  ;;  %2780 = vmatpush3.bf16.msra.mxu1 %v2718_v16 }
 0x3a3   : > { %2723 = vmatprep.subr.bf16.mxu0 %v2722_v21  ;;  %2773 = vmatprep.subr.bf16.mxu1 %v2722_v21 }
 0x3a6   : > { %2725 = vmatpush3.bf16.msra.mxu0 %v2722_v21  ;;  %2781 = vmatpush3.bf16.msra.mxu1 %v2722_v21 }
 0x411   : > { %v1012_v32 = vpop.xlane.xlu0 %1011  ;;  %v1014_v33 = vpop.xlane.xlu1 %1013 }
 0x412   : > { %v1028_v34 = vmul.f32 0.0078125, %v1012_v32  ;;  %v1029_v37 = vmul.f32 0.0078125, %v1014_v33 }
 0x414   : > { %v4299_v38 = vsub.f32 %v1001_v22, %v1028_v34  ;;  %v4301_v39 = vsub.f32 %v1002_v23, %v1029_v37  ;;  %v3572_v22 = vmov -1e+30   ;;  %v3573_v23 = vmov 0.0  }
 0x415   : > { %v1020_v40 = vpop.xlane.xlu0 %1019  ;;  %v1022_v41 = vpop.xlane.xlu1 %1021  ;;  %976 = vst.msk [vmem:[#allocation5] sm:$0xff] %vm975_vm1, %v3572_v22  ;;  %977 = vst.msk [vmem:[#allocation5 + $0x8] sm:$0xff] %vm975_vm1, %v3572_v22 }
 0x416   : > { %v1032_v42 = vmul.f32 0.0078125, %v1020_v40  ;;  %v1044_v43 = vmul.f32 %v4299_v38, %v4299_v38  ;;  %v1033_v44 = vmul.f32 0.0078125, %v1022_v41  ;;  %v1045_v46 = vmul.f32 %v4301_v39, %v4301_v39  ;;  %978 = vst.msk [vmem:[#allocation5 + $0x10] sm:$0xff] %vm975_vm1, %v3572_v22  ;;  %979 = vst.msk [vmem:[#allocation5 + $0x18] sm:$0xff] %vm975_vm1, %v3572_v22 }
 0x417   : > { %980 = vst.msk [vmem:[#allocation5 + $0x20] sm:$0xff] %vm975_vm1, %v3572_v22  ;;  %981 = vst.msk [vmem:[#allocation5 + $0x28] sm:$0xff] %vm975_vm1, %v3572_v22 }
 0x418   : > { %v4305_v45 = vsub.f32 %v1005_v24, %v1032_v42  ;;  %1052 = vadd.xlane.f32.xlu0 %v1044_v43  ;;  %v4307_v12 = vsub.f32 %v1006_v25, %v1033_v44  ;;  %982 = vst.msk [vmem:[#allocation5 + $0x30] sm:$0xff] %vm975_vm1, %v3572_v22  ;;  %983 = vst.msk [vmem:[#allocation5 + $0x38] sm:$0xff] %vm975_vm1, %v3572_v22 }
 0x419   : > { %v1016_v47 = vpop.xlane.xlu0 %1015  ;;  %v1024_v48 = vpop.xlane.xlu1 %1023  ;;  %984 = vst.msk [vmem:[#allocation6] sm:$0xff] %vm975_vm1, %v3573_v23  ;;  %985 = vst.msk [vmem:[#allocation6 + $0x8] sm:$0xff] %vm975_vm1, %v3573_v23 }
 0x41a   : > { %v1030_v49 = vmul.f32 0.0078125, %v1016_v47  ;;  %v1048_v50 = vmul.f32 %v4305_v45, %v4305_v45  ;;  %v1034_v51 = vmul.f32 0.0078125, %v1024_v48  ;;  %v1049_v54 = vmul.f32 %v4307_v12, %v4307_v12  ;;  %986 = vst.msk [vmem:[#allocation6 + $0x10] sm:$0xff] %vm975_vm1, %v3573_v23  ;;  %987 = vst.msk [vmem:[#allocation6 + $0x18] sm:$0xff] %vm975_vm1, %v3573_v23 }
 0x41b   : > { %988 = vst.msk [vmem:[#allocation6 + $0x20] sm:$0xff] %vm975_vm1, %v3573_v23  ;;  %989 = vst.msk [vmem:[#allocation6 + $0x28] sm:$0xff] %vm975_vm1, %v3573_v23 }
 0x41c   : > { %v4313_v52 = vsub.f32 %v1003_v26, %v1030_v49  ;;  %1054 = vadd.xlane.f32.xlu0 %v1045_v46  ;;  %1060 = vadd.xlane.f32.xlu1 %v1048_v50  ;;  %v4315_v53 = vsub.f32 %v1007_v29, %v1034_v51  ;;  %990 = vst.msk [vmem:[#allocation6 + $0x30] sm:$0xff] %vm975_vm1, %v3573_v23  ;;  %991 = vst.msk [vmem:[#allocation6 + $0x38] sm:$0xff] %vm975_vm1, %v3573_v23 }
 0x41d   : > { %v1018_v55 = vpop.xlane.xlu0 %1017  ;;  %v1026_v56 = vpop.xlane.xlu1 %1025  ;;  %993 = vst.msk [vmem:[#allocation7] sm:$0xff] %vm992_vm2, %v3573_v23  ;;  %994 = vst.msk [vmem:[#allocation7 + $0x8] sm:$0xff] %vm992_vm2, %v3573_v23 }
 0x41e   : > { %v1031_v19 = vmul.f32 0.0078125, %v1018_v55  ;;  %v1046_v13 = vmul.f32 %v4313_v52, %v4313_v52  ;;  %v1035_v57 = vmul.f32 0.0078125, %v1026_v56  ;;  %v1050_v60 = vmul.f32 %v4315_v53, %v4315_v53  ;;  %995 = vst.msk [vmem:[#allocation7 + $0x10] sm:$0xff] %vm992_vm2, %v3573_v23  ;;  %996 = vst.msk [vmem:[#allocation7 + $0x18] sm:$0xff] %vm992_vm2, %v3573_v23 }
 0x41f   : > { %997 = vst.msk [vmem:[#allocation7 + $0x20] sm:$0xff] %vm992_vm2, %v3573_v23  ;;  %998 = vst.msk [vmem:[#allocation7 + $0x28] sm:$0xff] %vm992_vm2, %v3573_v23 }
 0x420   : > { %v4321_v58 = vsub.f32 %v1004_v30, %v1031_v19  ;;  %1062 = vadd.xlane.f32.xlu1 %v1049_v54  ;;  %1056 = vadd.xlane.f32.xlu0 %v1046_v13  ;;  %v4323_v59 = vsub.f32 %v1008_v31, %v1035_v57  ;;  %999 = vst.msk [vmem:[#allocation7 + $0x30] sm:$0xff] %vm992_vm2, %v3573_v23  ;;  %1000 = vst.msk [vmem:[#allocation7 + $0x38] sm:$0xff] %vm992_vm2, %v3573_v23 }
 0x422   : > { %v1047_v61 = vmul.f32 %v4321_v58, %v4321_v58  ;;  %v1051_v62 = vmul.f32 %v4323_v59, %v4323_v59 }
 0x424   : > { %1064 = vadd.xlane.f32.xlu1 %v1050_v60  ;;  %1058 = vadd.xlane.f32.xlu0 %v1047_v61 }
 0x428   : > { %1066 = vadd.xlane.f32.xlu1 %v1051_v62 }
 0x4a5   : > { %v1053_v24 = vpop.xlane.xlu0 %1052 }
 0x4a6   : > { %v1068_v25 = vmul.f32 0.0078125, %v1053_v24 }
 0x4a8   : > { %v1076_v26 = vadd.f32 1e-05, %v1068_v25  ;;  %v2298_v25 = vld [vmem:[#allocation13] ss:$0 sm:$0xff] }
 0x4a9   : > { %v1061_v29 = vpop.xlane.xlu1 %1060  ;;  %v1055_v30 = vpop.xlane.xlu0 %1054 }
 0x4aa   : > { %3045 = vrsqrt.f32 %v1076_v26  ;;  %v1072_v31 = vmul.f32 0.0078125, %v1061_v29  ;;  %v1069_v32 = vmul.f32 0.0078125, %v1055_v30  ;;  %vm1086_vm3 = vcmp.eq.f32.partialorder %v1076_v26, inf }
 0x4ab   : > { %v1089_v60 = vand.u32 2147483648, %v1076_v26  ;;  %vm1088_vm5 = vcmp.eq.f32.partialorder %v1076_v26, 0.0 }
 0x4ac   : > { %v1080_v33 = vadd.f32 1e-05, %v1072_v31  ;;  %v1077_v34 = vadd.f32 1e-05, %v1069_v32 }
 0x4ad   : > { %v1063_v37 = vpop.xlane.xlu1 %1062  ;;  %v1057_v40 = vpop.xlane.xlu0 %1056 }
 0x4ae   : > { %3047 = vrsqrt.f32 %v1080_v33  ;;  %v1073_v41 = vmul.f32 0.0078125, %v1063_v37  ;;  %v1070_v43 = vmul.f32 0.0078125, %v1057_v40  ;;  %vm1114_vm4 = vcmp.eq.f32.partialorder %v1080_v33, inf }
 0x4af   : > { %3049 = vrsqrt.f32 %v1077_v34  ;;  %v1117_v63 = vand.u32 2147483648, %v1080_v33  ;;  %vm1093_vm6 = vcmp.eq.f32.partialorder %v1077_v34, inf  ;;  %v1096_v1 = vand.u32 2147483648, %v1077_v34 }
 0x4b0   : > { %v1081_v42 = vadd.f32 1e-05, %v1073_v41  ;;  %v1078_v47 = vadd.f32 1e-05, %v1070_v43  ;;  %vm1095_vm7 = vcmp.eq.f32.partialorder %v1077_v34, 0.0  ;;  %vm1116_vm8 = vcmp.eq.f32.partialorder %v1080_v33, 0.0 }
 0x4b1   : > { %v1065_v44 = vpop.xlane.xlu1 %1064  ;;  %v1059_v46 = vpop.xlane.xlu0 %1058 }
 0x4b2   : > { %3051 = vrsqrt.f32 %v1081_v42  ;;  %v1074_v48 = vmul.f32 0.0078125, %v1065_v44  ;;  %v1071_v49 = vmul.f32 0.0078125, %v1059_v46  ;;  %vm1121_vm9 = vcmp.eq.f32.partialorder %v1081_v42, inf }
 0x4b3   : > { %3053 = vrsqrt.f32 %v1078_v47  ;;  %v1124_v5 = vand.u32 2147483648, %v1081_v42  ;;  %vm1123_vm10 = vcmp.eq.f32.partialorder %v1081_v42, 0.0  ;;  %vm1100_vm11 = vcmp.eq.f32.partialorder %v1078_v47, inf }
 0x4b4   : > { %v3046_v50 = vpop.eup %3045  ;;  %v1082_v55 = vadd.f32 1e-05, %v1074_v48  ;;  %v4371_v56 = vadd.f32 1e-05, %v1071_v49  ;;  %v1103_v10 = vand.u32 2147483648, %v1078_v47  ;;  %vm1102_vm12 = vcmp.eq.f32.partialorder %v1078_v47, 0.0 }
 0x4b5   : > { %v1085_v51 = vmul.f32 %v3046_v50, %v1076_v26  ;;  %v1067_v54 = vpop.xlane.xlu1 %1066 }
 0x4b6   : > { %v1075_v19 = vmul.f32 0.0078125, %v1067_v54  ;;  %3055 = vrsqrt.f32 %v1082_v55  ;;  %vm1128_vm13 = vcmp.eq.f32.partialorder %v1082_v55, inf  ;;  %v1131_v18 = vand.u32 2147483648, %v1082_v55 }
 0x4b7   : > { %v1087_v13 = vsel %vm1086_vm3, %v1076_v26, %v1085_v51  ;;  %3057 = vrsqrt.f32 %v4371_v56  ;;  %vm1130_vm14 = vcmp.eq.f32.partialorder %v1082_v55, 0.0  ;;  %vm1107_vm15 = vcmp.eq.f32.partialorder %v4371_v56, inf }
 0x4b8   : > { %v3048_v57 = vpop.eup %3047  ;;  %v4374_v27 = vadd.f32 1e-05, %v1075_v19  ;;  %v1090_v0 = vsel %vm1088_vm5, %v1089_v60, %v1087_v13  ;;  %v1110_v24 = vand.u32 2147483648, %v4371_v56  ;;  %vm1109_vm0 = vcmp.eq.f32.partialorder %v4371_v56, 0.0 }
 0x4b9   : > { %v3050_v61 = vpop.eup %3049  ;;  %v1113_v62 = vmul.f32 %v3048_v57, %v1080_v33  ;;  %3059 = vrcp.f32 %v1090_v0 }
 0x4ba   : > { %v1092_v20 = vmul.f32 %v3050_v61, %v1077_v34  ;;  %3061 = vrsqrt.f32 %v4374_v27  ;;  %vm1135_vm1 = vcmp.eq.f32.partialorder %v4374_v27, inf  ;;  %v1138_v40 = vand.u32 2147483648, %v4374_v27 }
 0x4bb   : > { %v1115_v2 = vsel %vm1114_vm4, %v1080_v33, %v1113_v62  ;;  %v2299_v33 = vld [vmem:[#allocation14] ss:$0 sm:$0xff]  ;;  %vm1137_vm3 = vcmp.eq.f32.partialorder %v4374_v27, 0.0 }
 0x4bc   : > { %v3052_v3 = vpop.eup %3051  ;;  %v1094_v28 = vsel %vm1093_vm6, %v1077_v34, %v1092_v20  ;;  %v1118_v36 = vsel %vm1116_vm8, %v1117_v63, %v1115_v2 }
 0x4bd   : > { %v1120_v35 = vmul.f32 %v3052_v3, %v1081_v42  ;;  %v1097_v4 = vsel %vm1095_vm7, %v1096_v1, %v1094_v28  ;;  %v3054_v6 = vpop.eup %3053 }
 0x4be   : > { %3063 = vrcp.f32 %v1097_v4  ;;  %v1099_v8 = vmul.f32 %v3054_v6, %v1078_v47 }
 0x4bf   : > { %v1122_v7 = vsel %vm1121_vm9, %v1081_v42, %v1120_v35  ;;  %3065 = vrcp.f32 %v1118_v36 }
 0x4c0   : > { %v1125_v9 = vsel %vm1123_vm10, %v1124_v5, %v1122_v7  ;;  %v3056_v11 = vpop.eup %3055  ;;  %v1101_v14 = vsel %vm1100_vm11, %v1078_v47, %v1099_v8 }
 0x4c1   : > { %3067 = vrcp.f32 %v1125_v9  ;;  %v3058_v15 = vpop.eup %3057  ;;  %v1127_v16 = vmul.f32 %v3056_v11, %v1082_v55  ;;  %v1104_v17 = vsel %vm1102_vm12, %v1103_v10, %v1101_v14 }
 0x4c2   : > { %v1106_v21 = vmul.f32 %v3058_v15, %v4371_v56  ;;  %3069 = vrcp.f32 %v1104_v17 }
 0x4c3   : > { %v3060_v22 = vpop.eup %3059  ;;  %v1129_v23 = vsel %vm1128_vm13, %v1082_v55, %v1127_v16 }
 0x4c4   : > { %v3062_v26 = vpop.eup %3061  ;;  %v1108_v29 = vsel %vm1107_vm15, %v4371_v56, %v1106_v21  ;;  %v1141_v30 = vmul.f32 %v3060_v22, %v4299_v38  ;;  %v1132_v31 = vsel %vm1130_vm14, %v1131_v18, %v1129_v23 }
 0x4c5   : > { %v1134_v32 = vmul.f32 %v3062_v26, %v4374_v27  ;;  %v1111_v34 = vsel %vm1109_vm0, %v1110_v24, %v1108_v29  ;;  %3071 = vrcp.f32 %v1132_v31 }
 0x4c6   : > { %v1162_v41 = vmul.f32 %v2298_v25, %v1141_v30  ;;  %3073 = vrcp.f32 %v1111_v34 }
 0x4c7   : > { %v1136_v43 = vsel %vm1135_vm1, %v4374_v27, %v1134_v32 }
 0x4c8   : > { %v3064_v37 = vpop.eup %3063  ;;  %v1176_v44 = vadd.f32 %v2299_v33, %v1162_v41  ;;  %v1139_v47 = vsel %vm1137_vm3, %v1138_v40, %v1136_v43 }
 0x4c9   : > { %v3066_v42 = vpop.eup %3065  ;;  %v1143_v38 = vmul.f32 %v3064_v37, %v4301_v39  ;;  %3075 = vrcp.f32 %v1139_v47 }
 0x4ca   : > { %v1149_v46 = vmul.f32 %v3066_v42, %v4305_v45  ;;  %2562 = vmatprep.mubr.f32.mxu0 %v1176_v44 }
 0x4cb   : > { %v3068_v48 = vpop.eup %3067  ;;  %v1163_v49 = vmul.f32 %v2298_v25, %v1143_v38 }
 0x4cc   : > { %v1166_v50 = vmul.f32 %v2298_v25, %v1149_v46  ;;  %v1151_v51 = vmul.f32 %v3068_v48, %v4307_v12  ;;  %v3070_v55 = vpop.eup %3069 }
 0x4cd   : > { %v1177_v54 = vadd.f32 %v2299_v33, %v1163_v49  ;;  %v1145_v13 = vmul.f32 %v3070_v55, %v4313_v52 }
 0x4ce   : > { %v1180_v56 = vadd.f32 %v2299_v33, %v1166_v50  ;;  %v1167_v19 = vmul.f32 %v2298_v25, %v1151_v51 }
 0x4cf   : > { %2563 = vmatmul.mubr.f32.vlgmr.msra.gmra.mrb[0].mxu0 %v1177_v54  ;;  %v3072_v57 = vpop.eup %3071  ;;  %v1164_v60 = vmul.f32 %v2298_v25, %v1145_v13 }
 0x4d0   : > { %2568 = vmatprep.mubr.f32.mxu1 %v1180_v56  ;;  %v1181_v39 = vadd.f32 %v2299_v33, %v1167_v19  ;;  %v3074_v45 = vpop.eup %3073  ;;  %v1153_v61 = vmul.f32 %v3072_v57, %v4315_v53 }
 0x4d1   : > { %v1178_v62 = vadd.f32 %v2299_v33, %v1164_v60  ;;  %v1147_v63 = vmul.f32 %v3074_v45, %v4321_v58 }
 0x4d2   : > { %2569 = vmatmul.mubr.f32.vlgmr.msra.gmra.mrb[0].mxu1 %v1181_v39  ;;  %v1168_v20 = vmul.f32 %v2298_v25, %v1153_v61 }
 0x4d3   : > { %v3076_v12 = vpop.eup %3075  ;;  %2565 = vmatprep.mubr.f32.mxu0 %v1178_v62  ;;  %v1165_v27 = vmul.f32 %v2298_v25, %v1147_v63 }
 0x4d4   : > { %v1182_v0 = vadd.f32 %v2299_v33, %v1168_v20  ;;  %v1155_v1 = vmul.f32 %v3076_v12, %v4323_v59 }
 0x4d5   : > { %v1179_v2 = vadd.f32 %v2299_v33, %v1165_v27 }
 0x4d6   : > { %2571 = vmatprep.mubr.f32.mxu1 %v1182_v0  ;;  %v1169_v52 = vmul.f32 %v2298_v25, %v1155_v1 }
 0x4d7   : > { %2566 = vmatmul.mubr.f32.gmra.mrb[2].mxu0 %v1179_v2 }
 0x4d8   : > { %v1183_v3 = vadd.f32 %v2299_v33, %v1169_v52 }
 0x4da   : > { %2572 = vmatmul.mubr.f32.gmra.mrb[2].mxu1 %v1183_v3 }
 0x5a2   : > { %v2564_v28 = vpop.f32.mrb[0].mxu0 }
 0x5a3   : > { %v1306_v35 = vmul.f32 0.17677669, %v2564_v28  ;;  %v1266_v4 = vpop.f32.mrb[1].mxu0 }
 0x5a4   : > { %v1305_v53 = vmul.f32 0.17677669, %v1266_v4 }
 0x5a5   : > { %1314 = vst.msk [vmem:[#allocation2 + $0x8] sm:$0xff] %vm992_vm2, %v1306_v35  ;;  %v2570_v58 = vpop.f32.mrb[0].mxu1 }
 0x5a6   : > { %1313 = vst.msk [vmem:[#allocation2] sm:$0xff] %vm992_vm2, %v1305_v53  ;;  %v1310_v36 = vmul.f32 0.17677669, %v2570_v58  ;;  %v1286_v5 = vpop.f32.mrb[1].mxu1 }
 0x5a7   : > { %v1309_v6 = vmul.f32 0.17677669, %v1286_v5 }
 0x5a8   : > { %1318 = vst.msk [vmem:[#allocation2 + $0x28] sm:$0xff] %vm992_vm2, %v1310_v36 }
 0x5a9   : > { %1317 = vst.msk [vmem:[#allocation2 + $0x20] sm:$0xff] %vm992_vm2, %v1309_v6 }
 0x5aa   : > { %v2567_v59 = vpop.f32.mrb[2].mxu0 }
 0x5ab   : > { %v1308_v7 = vmul.f32 0.17677669, %v2567_v59  ;;  %v1276_v8 = vpop.f32.mrb[3].mxu0 }
 0x5ac   : > { %v1307_v9 = vmul.f32 0.17677669, %v1276_v8 }
 0x5ad   : > { %1316 = vst.msk [vmem:[#allocation2 + $0x18] sm:$0xff] %vm992_vm2, %v1308_v7  ;;  %v2573_v10 = vpop.f32.mrb[2].mxu1 }
 0x5ae   : > { %1315 = vst.msk [vmem:[#allocation2 + $0x10] sm:$0xff] %vm992_vm2, %v1307_v9  ;;  %v1312_v11 = vmul.f32 0.17677669, %v2573_v10  ;;  %v1296_v14 = vpop.f32.mrb[3].mxu1 }
 0x5af   : > { %v1311_v15 = vmul.f32 0.17677669, %v1296_v14 }
 0x5b0   : > { %1320 = vst.msk [vmem:[#allocation2 + $0x38] sm:$0xff] %vm992_vm2, %v1312_v11 }
 0x5b1   : > { %1319 = vst.msk [vmem:[#allocation2 + $0x30] sm:$0xff] %vm992_vm2, %v1311_v15 }
 0x5b2 PF: > { %s4884_s3 = sld [smem:[#allocation33_spill]]  ;;  %s4885_s15 = sld [smem:[#allocation34_spill]] }
 0x5b8   : > { %s4404_s17 = sshll.u32 %s4884_s3, 6  ;;  %s2301_s16 = sshll.u32 %s4885_s15, 6 }
 0x5b9   : > { %s1323_s0 = sadd.s32 63, %s2301_s16 }
 0x5ba   : > { %p2302_p8 = scmp.gt.s32.totalorder %s4404_s17, %s1323_s0 }
 0x5bb   : > { %vm1354_vm4 = vcmask (!%p2302_p8), 261120   ;;  %v1346_v16 = vld [vmem:[#allocation2] sm:$0xff] (!%p2302_p8)  ;;  %s1328_s25 = scalar_lea.vmem (!%p2302_p8), [#allocation3], %s4404_s17  ;;  %v1347_v34 = vld [vmem:[#allocation2 + $0x8] sm:$0xff] (!%p2302_p8)  ;;  %v1348_v37 = vld [vmem:[#allocation2 + $0x10] sm:$0xff] (!%p2302_p8)  ;;  %v1508_v44 = vlaneseq (!%p2302_p8)  ;;  %v1517_v48 = vstv (!%p2302_p8), %s2301_s16  ;;  %v1528_v49 = vstv (!%p2302_p8), %s4404_s17  ;;  %s4482_s18 = scalar_lea.vmem (!%p2302_p8), [#allocation4], %s4404_s17 }
 0x5bc   : > { %1327 = sbr.rel (%p2302_p8) target bundleno = 2249 (0x8c9), region = 88  ;;  %v1329_v17 = vld [vmem:[%s1328_s25] sm:$0xff] (!%p2302_p8)  ;;  %v1330_v18 = vld [vmem:[%s1328_s25 + $0x8] sm:$0xff] (!%p2302_p8)  ;;  %vm4413_vm2 = vmpackc.low (!%p2302_p8), %vm1354_vm4, %vm1354_vm4  ;;  %2590 = vmatprep.mubr.msk.f32.mxu0 (!%p2302_p8), %vm1354_vm4, %v1346_v16  ;;  %vm1554_vm6 = vcmask (!%p2302_p8), 523264   ;;  %vm1723_vm14 = vcmask (!%p2302_p8), 7168  }
 0x5bd   : > { %v2726_v22 = vpack.c.bf16 (!%p2302_p8), %v1330_v18, %v1329_v17  ;;  %v1331_v23 = vld [vmem:[%s1328_s25 + $0x10] sm:$0xff] (!%p2302_p8)  ;;  %v1332_v24 = vld [vmem:[%s1328_s25 + $0x18] sm:$0xff] (!%p2302_p8)  ;;  %v1333_v26 = vld [vmem:[%s1328_s25 + $0x20] sm:$0xff] (!%p2302_p8)  ;;  %v1509_v46 = vshrl.u32 (!%p2302_p8), %v1508_v44, 7  ;;  %v1527_v47 = vand.u32 (!%p2302_p8), 127, %v1508_v44  ;;  %v3574_v18 = vmov (!%p2302_p8), 0  }
 0x5be   : > { %v2732_v25 = vpack.c.bf16 (!%p2302_p8), %v1332_v24, %v1331_v23  ;;  %v1334_v29 = vld [vmem:[%s1328_s25 + $0x28] sm:$0xff] (!%p2302_p8)  ;;  %v1335_v31 = vld [vmem:[%s1328_s25 + $0x30] sm:$0xff] (!%p2302_p8)  ;;  %v1336_v32 = vld [vmem:[%s1328_s25 + $0x38] sm:$0xff] (!%p2302_p8)  ;;  %3077 = vset.pattern.permute.xlu0 (!%p2302_p8), %v3574_v18  ;;  %3078 = vset.pattern.permute.xlu1 (!%p2302_p8), %v3574_v18 }
 0x5bf   : > { %2728 = vmatprep.subr.msk.bf16.mxu0 (!%p2302_p8), %vm4413_vm2, %v2726_v22  ;;  %v2738_v30 = vpack.c.bf16 (!%p2302_p8), %v1334_v29, %v1333_v26  ;;  %v2744_v33 = vpack.c.bf16 (!%p2302_p8), %v1336_v32, %v1335_v31  ;;  %v1349_v40 = vld [vmem:[#allocation2 + $0x18] sm:$0xff] (!%p2302_p8)  ;;  %v1350_v41 = vld [vmem:[#allocation2 + $0x20] sm:$0xff] (!%p2302_p8)  ;;  %v1351_v42 = vld [vmem:[#allocation2 + $0x28] sm:$0xff] (!%p2302_p8)  ;;  %v1510_v50 = vadd.s32 (!%p2302_p8), 8, %v1509_v46  ;;  %v1529_v51 = vadd.s32 (!%p2302_p8), %v1528_v49, %v1527_v47 }
 0x5c0   : > { %2731 = vmatpush3.bf16.xpose.msk.msra.mxu0 (!%p2302_p8), %vm4413_vm2, %v2726_v22  ;;  %v1352_v43 = vld [vmem:[#allocation2 + $0x30] sm:$0xff] (!%p2302_p8)  ;;  %v1353_v38 = vld [vmem:[#allocation2 + $0x38] sm:$0xff] (!%p2302_p8)  ;;  %v1518_v54 = vadd.s32 (!%p2302_p8), %v1517_v48, %v1509_v46  ;;  %v1511_v55 = vadd.s32 (!%p2302_p8), 16, %v1509_v46  ;;  %v1512_v19 = vadd.s32 (!%p2302_p8), 24, %v1509_v46  ;;  %v1514_v13 = vadd.s32 (!%p2302_p8), 40, %v1509_v46  ;;  %v1546_v21 = vld [vmem:[#allocation5] sm:$0xff] (!%p2302_p8) }
 0x5c1   : > { %2734 = vmatprep.subr.msk.bf16.mxu0 (!%p2302_p8), %vm4413_vm2, %v2732_v25  ;;  %v1519_v56 = vadd.s32 (!%p2302_p8), %v1517_v48, %v1510_v50  ;;  %v1513_v39 = vadd.s32 (!%p2302_p8), 32, %v1509_v46  ;;  %v1516_v27 = vadd.s32 (!%p2302_p8), 56, %v1509_v46  ;;  %v1515_v0 = vadd.s32 (!%p2302_p8), 48, %v1509_v46  ;;  %v4476_v24 = vld [vmem:[#allocation5 + $0x8] sm:$0xff] (!%p2302_p8)  ;;  %v1338_v31 = vld [vmem:[%s4482_s18] sm:$0xff] (!%p2302_p8)  ;;  %v1340_v44 = vld [vmem:[%s4482_s18 + $0x10] sm:$0xff] (!%p2302_p8) }
 0x5c2   : > { %vm1530_vm5 = vcmp.gt.s32.totalorder (!%p2302_p8), %v1529_v51, %v1518_v54  ;;  %v1520_v57 = vadd.s32 (!%p2302_p8), %v1517_v48, %v1511_v55  ;;  %v1521_v61 = vadd.s32 (!%p2302_p8), %v1517_v48, %v1512_v19  ;;  %v1523_v63 = vadd.s32 (!%p2302_p8), %v1517_v48, %v1514_v13  ;;  %v1339_v32 = vld [vmem:[%s4482_s18 + $0x8] sm:$0xff] (!%p2302_p8)  ;;  %v1341_v46 = vld [vmem:[%s4482_s18 + $0x18] sm:$0xff] (!%p2302_p8)  ;;  %v4495_v50 = vld [vmem:[#allocation5 + $0x30] sm:$0xff] (!%p2302_p8) }
 0x5c3   : > { %vm1531_vm7 = vcmp.gt.s32.totalorder %v1529_v51, %v1519_v56  ;;  %v1522_v20 = vadd.s32 %v1517_v48, %v1513_v39  ;;  %v1525_v4 = vadd.s32 %v1517_v48, %v1516_v27  ;;  %v1524_v53 = vadd.s32 %v1517_v48, %v1515_v0  ;;  %v1551_v49 = vld [vmem:[#allocation5 + $0x28] sm:$0xff]  ;;  %v1342_v19 = vld [vmem:[%s4482_s18 + $0x20] sm:$0xff]  ;;  %v1344_v0 = vld [vmem:[%s4482_s18 + $0x30] sm:$0xff] }
 0x5c4   : > { %vm1532_vm8 = vcmp.gt.s32.totalorder %v1529_v51, %v1520_v57  ;;  %vm1533_vm9 = vcmp.gt.s32.totalorder %v1529_v51, %v1521_v61  ;;  %vm1535_vm10 = vcmp.gt.s32.totalorder %v1529_v51, %v1523_v63  ;;  %v1343_v13 = vld [vmem:[%s4482_s18 + $0x28] sm:$0xff] }
 0x5c5   : > { %vm1534_vm11 = vcmp.gt.s32.totalorder %v1529_v51, %v1522_v20  ;;  %vm1537_vm12 = vcmp.gt.s32.totalorder %v1529_v51, %v1525_v4  ;;  %vm1536_vm13 = vcmp.gt.s32.totalorder %v1529_v51, %v1524_v53  ;;  %v2754_v51 = vpack.c.bf16 %v1341_v46, %v1340_v44 }
 0x5c6   : > { %v2758_v61 = vpack.c.bf16 %v1343_v13, %v1342_v19 }
 0x5c8   : > { %2737 = vmatpush3.bf16.xpose.msk.msra.mxu0 %vm4413_vm2, %v2732_v25  ;;  %v4478_v25 = vld [vmem:[#allocation5 + $0x10] sm:$0xff] }
 0x5c9   : > { %2740 = vmatprep.subr.msk.bf16.mxu0 %vm4413_vm2, %v2738_v30 }
 0x5d0   : > { %2743 = vmatpush3.bf16.xpose.msk.msra.mxu0 %vm4413_vm2, %v2738_v30 }
 0x5d1   : > { %2746 = vmatprep.subr.msk.bf16.mxu0 %vm4413_vm2, %v2744_v33 }
 0x5d8   : > { %2749 = vmatpush3.bf16.xpose.msk.msra.mxu0 %vm4413_vm2, %v2744_v33 }
 0x5df   : > { %2591 = vmatmul.mubr.msk.f32.vlgmr.msra.gmra.mrb[0].mxu0 %vm1354_vm4, %v1347_v34 }
 0x5e0   : > { %2593 = vmatprep.mubr.msk.f32.mxu0 %vm1354_vm4, %v1348_v37 }
 0x5e3   : > { %2594 = vmatmul.mubr.msk.f32.gmra.mrb[2].mxu0 %vm1354_vm4, %v1349_v40  ;;  %v2750_v40 = vpack.c.bf16 %v1339_v32, %v1338_v31 }
 0x5e4   : > { %2596 = vmatprep.mubr.msk.f32.mxu0 %vm1354_vm4, %v1350_v41  ;;  %v1549_v41 = vld [vmem:[#allocation5 + $0x18] sm:$0xff] }
 0x5e5   : > { %2751 = vmatprep.subr.bf16.mxu1 %v2750_v40 }
 0x5e6   : > { %2753 = vmatpush3.bf16.msra.mxu1 %v2750_v40 }
 0x5e7   : > { %2597 = vmatmul.mubr.msk.f32.gmra.mrb[4].mxu0 %vm1354_vm4, %v1351_v42  ;;  %v4488_v42 = vld [vmem:[#allocation5 + $0x20] sm:$0xff]  ;;  %2755 = vmatprep.subr.bf16.mxu1 %v2754_v51 }
 0x5e8   : > { %2599 = vmatprep.mubr.msk.f32.mxu0 %vm1354_vm4, %v1352_v43 }
 0x5ea   : > { %2757 = vmatpush3.bf16.msra.mxu1 %v2754_v51 }
 0x5eb   : > { %2600 = vmatmul.mubr.msk.f32.gmra.mrb[6].mxu0 %vm1354_vm4, %v1353_v38  ;;  %2759 = vmatprep.subr.bf16.mxu1 %v2758_v61 }
 0x5ee   : > { %2761 = vmatpush3.bf16.msra.mxu1 %v2758_v61 }
 0x6b2   : > { %v2592_v60 = vpop.f32.mrb[0].mxu0 }
 0x6b3   : > { %v1469_v45 = vpop.f32.mrb[1].mxu0  ;;  %v4448_v1 = vsel %vm1531_vm7, -1e+30, %v2592_v60 }
 0x6b4   : > { %v4444_v62 = vsel %vm1530_vm5, -1e+30, %v1469_v45  ;;  %v1558_v28 = vsel %vm1554_vm6, %v4448_v1, -inf  ;;  %v4504_v45 = vld [vmem:[#allocation5 + $0x38] sm:$0xff] }
 0x6b5   : > { %v1555_v12 = vsel %vm1554_vm6, %v4444_v62, -inf }
 0x6b6   : > { %1556 = vmax.xlane.f32.xlu0 %v1555_v12  ;;  %v2595_v2 = vpop.f32.mrb[2].mxu0 }
 0x6b7   : > { %v1479_v52 = vpop.f32.mrb[3].mxu0  ;;  %v4456_v58 = vsel %vm1533_vm9, -1e+30, %v2595_v2  ;;  %v1345_v2 = vld [vmem:[%s4482_s18 + $0x38] sm:$0xff] }
 0x6b8   : > { %v4450_v3 = vsel %vm1532_vm8, -1e+30, %v1479_v52  ;;  %v1564_v7 = vsel %vm1554_vm6, %v4456_v58, -inf  ;;  %v2762_v4 = vpack.c.bf16 %v1345_v2, %v1344_v0 }
 0x6b9   : > { %v1561_v35 = vsel %vm1554_vm6, %v4450_v3, -inf }
 0x6ba   : > { %1559 = vmax.xlane.f32.xlu0 %v1558_v28  ;;  %1562 = vmax.xlane.f32.xlu1 %v1561_v35  ;;  %v2598_v36 = vpop.f32.mrb[4].mxu0 }
 0x6bb   : > { %v1489_v5 = vpop.f32.mrb[5].mxu0  ;;  %v4458_v6 = vsel %vm1535_vm10, -1e+30, %v2598_v36  ;;  %2763 = vmatprep.subr.bf16.mxu1 %v2762_v4 }
 0x6bc   : > { %v4460_v59 = vsel %vm1534_vm11, -1e+30, %v1489_v5  ;;  %v1570_v10 = vsel %vm1554_vm6, %v4458_v6, -inf  ;;  %2765 = vmatpush3.bf16.msra.mxu1 %v2762_v4 }
 0x6bd   : > { %v1567_v8 = vsel %vm1554_vm6, %v4460_v59, -inf }
 0x6be   : > { %1565 = vmax.xlane.f32.xlu1 %v1564_v7  ;;  %1568 = vmax.xlane.f32.xlu0 %v1567_v8  ;;  %v2601_v9 = vpop.f32.mrb[6].mxu0 }
 0x6bf   : > { %v1499_v11 = vpop.f32.mrb[7].mxu0  ;;  %v4468_v14 = vsel %vm1537_vm12, -1e+30, %v2601_v9 }
 0x6c0   : > { %v4470_v15 = vsel %vm1536_vm13, -1e+30, %v1499_v11  ;;  %v1576_v17 = vsel %vm1554_vm6, %v4468_v14, -inf }
 0x6c1   : > { %v1573_v16 = vsel %vm1554_vm6, %v4470_v15, -inf }
 0x6c2   : > { %1571 = vmax.xlane.f32.xlu1 %v1570_v10  ;;  %1574 = vmax.xlane.f32.xlu0 %v1573_v16 }
 0x6c6   : > { %1577 = vmax.xlane.f32.xlu1 %v1576_v17 }
 0x743   : > { %v1557_v22 = vpop.xlane.xlu0 %1556 }
 0x744   : > { %v1579_v23 = vmax.f32 %v1546_v21, %v1557_v22 }
 0x746   : > { %v1587_v26 = vsub.f32 %v1546_v21, %v1579_v23  ;;  %1933 = vst.msk [vmem:[#allocation5] sm:$0xff] %vm1723_vm14, %v1579_v23  ;;  %1613 = vperm.xlu0 %3077, %v1579_v23  }
 0x747   : > { %v1560_v29 = vpop.xlane.xlu0 %1559  ;;  %v1563_v30 = vpop.xlane.xlu1 %1562 }
 0x748   : > { %v1595_v33 = vmul.f32 1.442695, %v1587_v26  ;;  %v1580_v34 = vmax.f32 %v4476_v24, %v1560_v29  ;;  %v1581_v37 = vmax.f32 %v4478_v25, %v1563_v30 }
 0x74a   : > { %3079 = vpow2.f32 %v1595_v33  ;;  %1934 = vst.msk [vmem:[#allocation5 + $0x8] sm:$0xff] %vm1723_vm14, %v1580_v34  ;;  %1935 = vst.msk [vmem:[#allocation5 + $0x10] sm:$0xff] %vm1723_vm14, %v1581_v37  ;;  %1618 = vperm.xlu1 %3078, %v1580_v34   ;;  %v1588_v12 = vsub.f32 %v4476_v24, %v1580_v34  ;;  %v1589_v5 = vsub.f32 %v4478_v25, %v1581_v37 }
 0x74b   : > { %v1566_v43 = vpop.xlane.xlu1 %1565  ;;  %v1569_v38 = vpop.xlane.xlu0 %1568 }
 0x74c   : > { %v1582_v47 = vmax.f32 %v1549_v41, %v1566_v43  ;;  %v1583_v48 = vmax.f32 %v4488_v42, %v1569_v38  ;;  %v1597_v36 = vmul.f32 1.442695, %v1588_v12  ;;  %v1599_v7 = vmul.f32 1.442695, %v1589_v5 }
 0x74e   : > { %v1590_v54 = vsub.f32 %v1549_v41, %v1582_v47  ;;  %1936 = vst.msk [vmem:[#allocation5 + $0x18] sm:$0xff] %vm1723_vm14, %v1582_v47  ;;  %1628 = vperm.xlu1 %3078, %v1582_v47   ;;  %1937 = vst.msk [vmem:[#allocation5 + $0x20] sm:$0xff] %vm1723_vm14, %v1583_v48  ;;  %v1591_v8 = vsub.f32 %v4488_v42, %v1583_v48 }
 0x74f   : > { %v1572_v55 = vpop.xlane.xlu1 %1571  ;;  %v1575_v56 = vpop.xlane.xlu0 %1574 }
 0x750   : > { %v1601_v39 = vmul.f32 1.442695, %v1590_v54  ;;  %v1584_v57 = vmax.f32 %v1551_v49, %v1572_v55  ;;  %v4502_v60 = vmax.f32 %v4495_v50, %v1575_v56  ;;  %v1603_v10 = vmul.f32 1.442695, %v1591_v8  ;;  %v1676_v8 = vld [vmem:[#allocation6 + $0x8] sm:$0xff] }
 0x752   : > { %3081 = vpow2.f32 %v1601_v39  ;;  %v1592_v63 = vsub.f32 %v1551_v49, %v1584_v57  ;;  %1938 = vst.msk [vmem:[#allocation5 + $0x28] sm:$0xff] %vm1723_vm14, %v1584_v57  ;;  %1623 = vperm.xlu1 %3078, %v1581_v37   ;;  %v1593_v20 = vsub.f32 %v4495_v50, %v4502_v60  ;;  %1939 = vst.msk [vmem:[#allocation5 + $0x30] sm:$0xff] %vm1723_vm14, %v4502_v60 }
 0x753   : > { %v1578_v27 = vpop.xlane.xlu1 %1577 }
 0x754   : > { %v4514_v52 = vpop.eup %3079  ;;  %v1605_v28 = vmul.f32 1.442695, %v1592_v63  ;;  %v4517_v35 = vmax.f32 %v4504_v45, %v1578_v27  ;;  %v1607_v63 = vmul.f32 1.442695, %v1593_v20 }
 0x755   : > { %1742 = vperm.xlu0 %3077, %v4514_v52  }
 0x756   : > { %3083 = vpow2.f32 %v1605_v28  ;;  %1638 = vperm.xlu1 %3078, %v1584_v57   ;;  %v1594_v53 = vsub.f32 %v4504_v45, %v4517_v35  ;;  %1940 = vst.msk [vmem:[#allocation5 + $0x38] sm:$0xff] %vm1723_vm14, %v4517_v35 }
 0x757   : > { %3085 = vpow2.f32 %v1597_v36 }
 0x758   : > { %3087 = vpow2.f32 %v1599_v7  ;;  %v1609_v12 = vmul.f32 1.442695, %v1594_v53  ;;  %v1675_v7 = vld [vmem:[#allocation6] sm:$0xff] }
 0x759   : > { %3089 = vpow2.f32 %v1603_v10  ;;  %v1683_v50 = vmul.f32 %v4514_v52, %v1675_v7  ;;  %v1678_v10 = vld [vmem:[#allocation6 + $0x18] sm:$0xff] }
 0x75a   : > { %1633 = vperm.xlu1 %3078, %v1583_v48  }
 0x75c   : > { %v4526_v9 = vpop.eup %3081 }
 0x75d   : > { %1757 = vperm.xlu0 %3077, %v4526_v9  }
 0x75e   : > { %1643 = vperm.xlu1 %3078, %v4502_v60  }
 0x760   : > { %v4530_v11 = vpop.eup %3083 }
 0x761   : > { %1767 = vperm.xlu0 %3077, %v4530_v11   ;;  %v4534_v16 = vpop.eup %3085 }
 0x762   : > { %1648 = vperm.xlu1 %3078, %v4517_v35   ;;  %v4537_v17 = vpop.eup %3087  ;;  %v1684_v35 = vmul.f32 %v4534_v16, %v1676_v8 }
 0x763   : > { %v4540_v18 = vpop.eup %3089 }
 0x766   : > { %1747 = vperm.xlu1 %3078, %v4534_v16  }
 0x76a   : > { %1752 = vperm.xlu1 %3078, %v4537_v17  }
 0x76e   : > { %1762 = vperm.xlu1 %3078, %v4540_v18  }
 0x7c5   : > { %v1614_v21 = vpop.permute.xlu0 %1613 }
 0x7c6   : > { %v1651_v22 = vsub.f32 %v4444_v62, %v1614_v21 }
 0x7c8   : > { %v1659_v23 = vmul.f32 1.442695, %v1651_v22  ;;  %v1686_v22 = vmul.f32 %v4526_v9, %v1678_v10 }
 0x7c9   : > { %v1619_v24 = vpop.permute.xlu1 %1618 }
 0x7ca   : > { %3091 = vpow2.f32 %v1659_v23  ;;  %v1652_v25 = vsub.f32 %v4448_v1, %v1619_v24  ;;  %v1677_v24 = vld [vmem:[#allocation6 + $0x10] sm:$0xff] }
 0x7cb   : > { %v1685_v52 = vmul.f32 %v4537_v17, %v1677_v24 }
 0x7cc   : > { %v1661_v26 = vmul.f32 1.442695, %v1652_v25 }
 0x7cd   : > { %v1629_v29 = vpop.permute.xlu1 %1628 }
 0x7ce   : > { %3093 = vpow2.f32 %v1661_v26  ;;  %v1654_v30 = vsub.f32 %v4456_v58, %v1629_v29  ;;  %v1680_v29 = vld [vmem:[#allocation6 + $0x28] sm:$0xff] }
 0x7cf   : > { %v1688_v16 = vmul.f32 %v4530_v11, %v1680_v29 }
 0x7d0   : > { %v1665_v31 = vmul.f32 1.442695, %v1654_v30 }
 0x7d1   : > { %v1624_v32 = vpop.permute.xlu1 %1623 }
 0x7d2   : > { %3095 = vpow2.f32 %v1665_v31  ;;  %v1653_v33 = vsub.f32 %v4450_v3, %v1624_v32  ;;  %v1679_v32 = vld [vmem:[#allocation6 + $0x20] sm:$0xff] }
 0x7d3   : > { %v1687_v9 = vmul.f32 %v4540_v18, %v1679_v32 }
 0x7d4   : > { %v3092_v34 = vpop.eup %3091  ;;  %v1663_v37 = vmul.f32 1.442695, %v1653_v33  ;;  %v1743_v28 = vpop.permute.xlu0 %1742 }
 0x7d5   : > { %v1639_v40 = vpop.permute.xlu1 %1638  ;;  %2618 = vmatprep.mubr.msk.f32.mxu1 %vm1554_vm6, %v3092_v34  ;;  %v1691_v62 = vsel %vm1554_vm6, %v3092_v34, 0.0 }
 0x7d6   : > { %3097 = vpow2.f32 %v1663_v37  ;;  %v1656_v1 = vsub.f32 %v4458_v6, %v1639_v40  ;;  %1692 = vadd.xlane.f32.xlu1 %v1691_v62  ;;  %v1681_v37 = vld [vmem:[#allocation6 + $0x30] sm:$0xff] }
 0x7d8   : > { %v3094_v41 = vpop.eup %3093  ;;  %v1669_v42 = vmul.f32 1.442695, %v1656_v1  ;;  %v1682_v1 = vld [vmem:[#allocation6 + $0x38] sm:$0xff] }
 0x7d9   : > { %v1634_v43 = vpop.permute.xlu1 %1633  ;;  %2619 = vmatmul.mubr.msk.f32.vlgmr.msra.gmra.mrb[0].mxu1 %vm1554_vm6, %v3094_v41  ;;  %v1694_v58 = vsel %vm1554_vm6, %v3094_v41, 0.0 }
 0x7da   : > { %3099 = vpow2.f32 %v1669_v42  ;;  %v1655_v3 = vsub.f32 %v4460_v59, %v1634_v43  ;;  %1695 = vadd.xlane.f32.xlu0 %v1694_v58  ;;  %v1733_v58 = vld [vmem:[#allocation7 + $0x8] sm:$0xff] }
 0x7dc   : > { %v3096_v38 = vpop.eup %3095  ;;  %v1667_v44 = vmul.f32 1.442695, %v1655_v3  ;;  %v1758_v36 = vpop.permute.xlu0 %1757  ;;  %v1732_v3 = vld [vmem:[#allocation7] sm:$0xff] }
 0x7dd   : > { %v1644_v46 = vpop.permute.xlu1 %1643  ;;  %v1700_v47 = vsel %vm1554_vm6, %v3096_v38, 0.0  ;;  %v1780_v18 = vmul.f32 %v1743_v28, %v1732_v3 }
 0x7de   : > { %3101 = vpow2.f32 %v1667_v44  ;;  %v1657_v6 = vsub.f32 %v4470_v15, %v1644_v46  ;;  %1701 = vadd.xlane.f32.xlu1 %v1700_v47 }
 0x7e0   : > { %v3098_v48 = vpop.eup %3097  ;;  %v1671_v49 = vmul.f32 1.442695, %v1657_v6  ;;  %v1768_v60 = vpop.permute.xlu0 %1767 }
 0x7e1   : > { %v1649_v51 = vpop.permute.xlu1 %1648  ;;  %2621 = vmatprep.mubr.msk.f32.mxu1 %vm1554_vm6, %v3098_v48  ;;  %v1697_v54 = vsel %vm1554_vm6, %v3098_v48, 0.0  ;;  %v1735_v48 = vld [vmem:[#allocation7 + $0x18] sm:$0xff] }
 0x7e2   : > { %3103 = vpow2.f32 %v1671_v49  ;;  %v1658_v59 = vsub.f32 %v4468_v14, %v1649_v51  ;;  %1698 = vadd.xlane.f32.xlu0 %v1697_v54  ;;  %2622 = vmatmul.mubr.msk.f32.gmra.mrb[2].mxu1 %vm1554_vm6, %v3096_v38  ;;  %v1734_v49 = vld [vmem:[#allocation7 + $0x10] sm:$0xff]  ;;  %v1783_v51 = vmul.f32 %v1758_v36, %v1735_v48 }
 0x7e4   : > { %v3100_v55 = vpop.eup %3099  ;;  %v1673_v56 = vmul.f32 1.442695, %v1658_v59 }
 0x7e5   : > { %v1706_v19 = vsel %vm1554_vm6, %v3100_v55, 0.0  ;;  %v1748_v2 = vpop.permute.xlu1 %1747 }
 0x7e6   : > { %3105 = vpow2.f32 %v1673_v56  ;;  %1707 = vadd.xlane.f32.xlu1 %v1706_v19  ;;  %v1781_v38 = vmul.f32 %v1748_v2, %v1733_v58  ;;  %v1738_v2 = vld [vmem:[#allocation7 + $0x30] sm:$0xff] }
 0x7e7   : > { %3107 = vpow2.f32 %v1607_v63 }
 0x7e8   : > { %v3102_v15 = vpop.eup %3101  ;;  %3109 = vpow2.f32 %v1609_v12 }
 0x7e9   : > { %2624 = vmatprep.mubr.msk.f32.mxu1 %vm1554_vm6, %v3102_v15  ;;  %v1703_v13 = vsel %vm1554_vm6, %v3102_v15, 0.0  ;;  %v1753_v4 = vpop.permute.xlu1 %1752  ;;  %v1737_v15 = vld [vmem:[#allocation7 + $0x28] sm:$0xff] }
 0x7ea   : > { %1704 = vadd.xlane.f32.xlu0 %v1703_v13  ;;  %2625 = vmatmul.mubr.msk.f32.gmra.mrb[4].mxu1 %vm1554_vm6, %v3100_v55  ;;  %v1782_v54 = vmul.f32 %v1753_v4, %v1734_v49  ;;  %v1736_v13 = vld [vmem:[#allocation7 + $0x20] sm:$0xff] }
 0x7ec   : > { %v3104_v39 = vpop.eup %3103 }
 0x7ed   : > { %2627 = vmatprep.mubr.msk.f32.mxu1 %vm1554_vm6, %v3104_v39  ;;  %v1709_v14 = vsel %vm1554_vm6, %v3104_v39, 0.0  ;;  %v4573_v5 = vpop.permute.xlu1 %1762  ;;  %v1785_v39 = vmul.f32 %v1768_v60, %v1737_v15 }
 0x7ee   : > { %1710 = vadd.xlane.f32.xlu0 %v1709_v14  ;;  %v1784_v14 = vmul.f32 %v4573_v5, %v1736_v13 }
 0x7f0   : > { %v3106_v57 = vpop.eup %3105 }
 0x7f1   : > { %2628 = vmatmul.mubr.msk.f32.gmra.mrb[6].mxu1 %vm1554_vm6, %v3106_v57  ;;  %v1712_v61 = vsel %vm1554_vm6, %v3106_v57, 0.0  ;;  %v3108_v27 = vpop.eup %3107 }
 0x7f2   : > { %1713 = vadd.xlane.f32.xlu1 %v1712_v61  ;;  %v3110_v0 = vpop.eup %3109  ;;  %v1689_v17 = vmul.f32 %v3108_v27, %v1681_v37 }
 0x7f3   : > { %v1690_v42 = vmul.f32 %v3110_v0, %v1682_v1 }
 0x803   : > { %1772 = vperm.xlu1 %3078, %v3108_v27   ;;  %v1739_v27 = vld [vmem:[#allocation7 + $0x38] sm:$0xff] }
 0x804   : > { %1777 = vperm.xlu0 %3077, %v3110_v0  }
 0x863   : > { %v1693_v20 = vpop.xlane.xlu1 %1692 }
 0x864   : > { %v1715_v45 = vadd.f32 %v1693_v20, %v1683_v50 }
 0x866   : > { %1724 = vst.msk [vmem:[#allocation6] sm:$0xff] %vm1723_vm14, %v1715_v45 }
 0x867   : > { %v1696_v53 = vpop.xlane.xlu0 %1695 }
 0x868   : > { %v1716_v21 = vadd.f32 %v1696_v53, %v1684_v35 }
 0x86a   : > { %1725 = vst.msk [vmem:[#allocation6 + $0x8] sm:$0xff] %vm1723_vm14, %v1716_v21 }
 0x86b   : > { %v1702_v23 = vpop.xlane.xlu1 %1701 }
 0x86c   : > { %v1718_v25 = vadd.f32 %v1702_v23, %v1686_v22 }
 0x86e   : > { %1727 = vst.msk [vmem:[#allocation6 + $0x18] sm:$0xff] %vm1723_vm14, %v1718_v25 }
 0x86f   : > { %v1699_v26 = vpop.xlane.xlu0 %1698 }
 0x870   : > { %v1717_v30 = vadd.f32 %v1699_v26, %v1685_v52 }
 0x872   : > { %1726 = vst.msk [vmem:[#allocation6 + $0x10] sm:$0xff] %vm1723_vm14, %v1717_v30 }
 0x873   : > { %v1708_v31 = vpop.xlane.xlu1 %1707 }
 0x874   : > { %v1720_v33 = vadd.f32 %v1708_v31, %v1688_v16 }
 0x876   : > { %1729 = vst.msk [vmem:[#allocation6 + $0x28] sm:$0xff] %vm1723_vm14, %v1720_v33 }
 0x877   : > { %v1705_v34 = vpop.xlane.xlu0 %1704 }
 0x878   : > { %v1719_v40 = vadd.f32 %v1705_v34, %v1687_v9 }
 0x87a   : > { %1728 = vst.msk [vmem:[#allocation6 + $0x20] sm:$0xff] %vm1723_vm14, %v1719_v40 }
 0x87b   : > { %v1711_v62 = vpop.xlane.xlu0 %1710 }
 0x87c   : > { %v1721_v41 = vadd.f32 %v1711_v62, %v1689_v17 }
 0x87e   : > { %1730 = vst.msk [vmem:[#allocation6 + $0x30] sm:$0xff] %vm1723_vm14, %v1721_v41 }
 0x87f   : > { %v1714_v11 = vpop.xlane.xlu1 %1713 }
 0x880   : > { %v1722_v43 = vadd.f32 %v1714_v11, %v1690_v42 }
 0x882   : > { %1731 = vst.msk [vmem:[#allocation6 + $0x38] sm:$0xff] %vm1723_vm14, %v1722_v43 }
 0x883   : > { %v1778_v0 = vpop.permute.xlu0 %1777  ;;  %v1773_v28 = vpop.permute.xlu1 %1772 }
 0x884   : > { %v1787_v4 = vmul.f32 %v1778_v0, %v1739_v27  ;;  %v1786_v36 = vmul.f32 %v1773_v28, %v1738_v2 }
 0x8ac   : > { %v2620_v44 = vpop.f32.mrb[0].mxu1 }
 0x8ad   : > { %v1918_v46 = vadd.f32 %v2620_v44, %v1781_v38  ;;  %v1878_v47 = vpop.f32.mrb[1].mxu1 }
 0x8ae   : > { %v1917_v6 = vadd.f32 %v1878_v47, %v1780_v18 }
 0x8af   : > { %1926 = vst.msk [vmem:[#allocation7 + $0x8] sm:$0xff] %vm1354_vm4, %v1918_v46 }
 0x8b0   : > { %1925 = vst.msk [vmem:[#allocation7] sm:$0xff] %vm1354_vm4, %v1917_v6 }
 0x8b5   : > { %v2623_v59 = vpop.f32.mrb[2].mxu1 }
 0x8b6   : > { %v1920_v55 = vadd.f32 %v2623_v59, %v1783_v51  ;;  %v1888_v56 = vpop.f32.mrb[3].mxu1 }
 0x8b7   : > { %v1919_v19 = vadd.f32 %v1888_v56, %v1782_v54 }
 0x8b8   : > { %1928 = vst.msk [vmem:[#allocation7 + $0x18] sm:$0xff] %vm1354_vm4, %v1920_v55 }
 0x8b9   : > { %1927 = vst.msk [vmem:[#allocation7 + $0x10] sm:$0xff] %vm1354_vm4, %v1919_v19 }
 0x8bd   : > { %v2626_v57 = vpop.f32.mrb[4].mxu1 }
 0x8be   : > { %v1922_v61 = vadd.f32 %v2626_v57, %v1785_v39  ;;  %v1898_v63 = vpop.f32.mrb[5].mxu1 }
 0x8bf   : > { %v1921_v12 = vadd.f32 %v1898_v63, %v1784_v14 }
 0x8c0   : > { %1930 = vst.msk [vmem:[#allocation7 + $0x28] sm:$0xff] %vm1354_vm4, %v1922_v61 }
 0x8c1   : > { %1929 = vst.msk [vmem:[#allocation7 + $0x20] sm:$0xff] %vm1354_vm4, %v1921_v12 }
 0x8c4   : > { %v2629_v7 = vpop.f32.mrb[6].mxu1 }
 0x8c5   : > { %v1924_v50 = vadd.f32 %v2629_v7, %v1787_v4  ;;  %v1908_v20 = vpop.f32.mrb[7].mxu1 }
 0x8c6   : > { %v1923_v60 = vadd.f32 %v1908_v20, %v1786_v36 }
 0x8c7   : > { %1932 = vst.msk [vmem:[#allocation7 + $0x38] sm:$0xff] %vm1354_vm4, %v1924_v50 }
 0x8c8   : > { %1931 = vst.msk [vmem:[#allocation7 + $0x30] sm:$0xff] %vm1354_vm4, %v1923_v60 }
 0x8c9 PF: > { %s4889_s12 = sld [smem:[#allocation33_spill]] }
 0x8cf   : > { %p2327_p5 = scmp.ne.s32.totalorder %s4889_s12, 1 }
 0x8d0   : > { %v1955_v5 = vld [vmem:[#allocation6 + $0x10] sm:$0xff] (!%p2327_p5)  ;;  %v1953_v8 = vld [vmem:[#allocation6] sm:$0xff] (!%p2327_p5)  ;;  %v1956_v45 = vld [vmem:[#allocation6 + $0x18] sm:$0xff] (!%p2327_p5)  ;;  %v3575_v35 = vmov (!%p2327_p5), 0   ;;  %vm2017_vm15 = vcmask (!%p2327_p5), 261120  }
 0x8d1   : > { %1944 = sbr.rel (%p2327_p5) target bundleno = 2412 (0x96c), region = 92  ;;  %3112 = vset.pattern.permute.xlu1 (!%p2327_p5), %v3575_v35  ;;  %3111 = vset.pattern.permute.xlu0 (!%p2327_p5), %v3575_v35  ;;  %3113 = vrcp.f32 (!%p2327_p5), %v1955_v5  ;;  %v1954_v53 = vld [vmem:[#allocation6 + $0x8] sm:$0xff] (!%p2327_p5)  ;;  %v1957_v21 = vld [vmem:[#allocation6 + $0x20] sm:$0xff] (!%p2327_p5)  ;;  %v1960_v22 = vld [vmem:[#allocation6 + $0x38] sm:$0xff] (!%p2327_p5) }
 0x8d2   : > { %3115 = vrcp.f32 (!%p2327_p5), %v1953_v8  ;;  %v1958_v10 = vld [vmem:[#allocation6 + $0x28] sm:$0xff] (!%p2327_p5)  ;;  %v1959_v23 = vld [vmem:[#allocation6 + $0x30] sm:$0xff] (!%p2327_p5)  ;;  %v1945_v33 = vld [vmem:[#allocation7] sm:$0xff] (!%p2327_p5) }
 0x8d3   : > { %3117 = vrcp.f32 (!%p2327_p5), %v1956_v45  ;;  %v1947_v32 = vld [vmem:[#allocation7 + $0x10] sm:$0xff] (!%p2327_p5)  ;;  %v1948_v17 = vld [vmem:[#allocation7 + $0x18] sm:$0xff] (!%p2327_p5)  ;;  %v1946_v62 = vld [vmem:[#allocation7 + $0x8] sm:$0xff] (!%p2327_p5) }
 0x8d4   : > { %3119 = vrcp.f32 (!%p2327_p5), %v1954_v53  ;;  %v1950_v43 = vld [vmem:[#allocation7 + $0x28] sm:$0xff] (!%p2327_p5)  ;;  %v1949_v58 = vld [vmem:[#allocation7 + $0x20] sm:$0xff] (!%p2327_p5)  ;;  %v1952_v46 = vld [vmem:[#allocation7 + $0x38] sm:$0xff] (!%p2327_p5) }
 0x8d5   : > { %3121 = vrcp.f32 (!%p2327_p5), %v1958_v10  ;;  %v1951_v47 = vld [vmem:[#allocation7 + $0x30] sm:$0xff] (!%p2327_p5) }
 0x8d6   : > { %3123 = vrcp.f32 (!%p2327_p5), %v1957_v21 }
 0x8d7   : > { %3125 = vrcp.f32 (!%p2327_p5), %v1960_v22 }
 0x8d8   : > { %3127 = vrcp.f32 %v1959_v23 }
 0x8db   : > { %v3114_v24 = vpop.eup %3113 }
 0x8dc   : > { %v3116_v25 = vpop.eup %3115  ;;  %1981 = vperm.xlu1 %3112, %v3114_v24  }
 0x8dd   : > { %v3118_v52 = vpop.eup %3117  ;;  %1971 = vperm.xlu0 %3111, %v3116_v25  }
 0x8de   : > { %v3120_v26 = vpop.eup %3119 }
 0x8df   : > { %v3122_v29 = vpop.eup %3121 }
 0x8e0   : > { %1986 = vperm.xlu1 %3112, %v3118_v52   ;;  %v3124_v30 = vpop.eup %3123 }
 0x8e1   : > { %1976 = vperm.xlu0 %3111, %v3120_v26   ;;  %v3126_v16 = vpop.eup %3125 }
 0x8e2   : > { %v3128_v31 = vpop.eup %3127 }
 0x8e4   : > { %1996 = vperm.xlu1 %3112, %v3122_v29  }
 0x8e5   : > { %1991 = vperm.xlu0 %3111, %v3124_v30  }
 0x8e8   : > { %2006 = vperm.xlu1 %3112, %v3126_v16  }
 0x8e9   : > { %2001 = vperm.xlu0 %3111, %v3128_v31  }
 0x95b   : > { %v1982_v9 = vpop.permute.xlu1 %1981 }
 0x95c   : > { %v2011_v34 = vmul.f32 %v1982_v9, %v1947_v32  ;;  %v1972_v37 = vpop.permute.xlu0 %1971 }
 0x95d   : > { %v2009_v40 = vmul.f32 %v1972_v37, %v1945_v33 }
 0x95e   : > { %2020 = vst.msk [vmem:[%s4174_s10 + $0x10] sm:$0xff] %vm2017_vm15, %v2011_v34 }
 0x95f   : > { %2018 = vst.msk [vmem:[%s4174_s10] sm:$0xff] %vm2017_vm15, %v2009_v40  ;;  %v1987_v1 = vpop.permute.xlu1 %1986 }
 0x960   : > { %v2012_v41 = vmul.f32 %v1987_v1, %v1948_v17  ;;  %v1977_v42 = vpop.permute.xlu0 %1976 }
 0x961   : > { %v2010_v11 = vmul.f32 %v1977_v42, %v1946_v62 }
 0x962   : > { %2021 = vst.msk [vmem:[%s4174_s10 + $0x18] sm:$0xff] %vm2017_vm15, %v2012_v41 }
 0x963   : > { %2019 = vst.msk [vmem:[%s4174_s10 + $0x8] sm:$0xff] %vm2017_vm15, %v2010_v11  ;;  %v1997_v3 = vpop.permute.xlu1 %1996 }
 0x964   : > { %v2014_v38 = vmul.f32 %v1997_v3, %v1950_v43  ;;  %v1992_v18 = vpop.permute.xlu0 %1991 }
 0x965   : > { %v2013_v44 = vmul.f32 %v1992_v18, %v1949_v58 }
 0x966   : > { %2023 = vst.msk [vmem:[%s4174_s10 + $0x28] sm:$0xff] %vm2017_vm15, %v2014_v38 }
 0x967   : > { %2022 = vst.msk [vmem:[%s4174_s10 + $0x20] sm:$0xff] %vm2017_vm15, %v2013_v44  ;;  %v2007_v6 = vpop.permute.xlu1 %2006 }
 0x968   : > { %v2016_v48 = vmul.f32 %v2007_v6, %v1952_v46  ;;  %v2002_v49 = vpop.permute.xlu0 %2001 }
 0x969   : > { %v2015_v51 = vmul.f32 %v2002_v49, %v1951_v47 }
 0x96a   : > { %2025 = vst.msk [vmem:[%s4174_s10 + $0x38] sm:$0xff] %vm2017_vm15, %v2016_v48 }
 0x96b   : > { %2024 = vst.msk [vmem:[%s4174_s10 + $0x30] sm:$0xff] %vm2017_vm15, %v2015_v51 }
 0x96c PF: > { %s4890_s7 = sld [smem:[#allocation34_spill]]  ;;  %s4891_s6 = sld [smem:[#allocation35_spill]] }
 0x96d   : > { %s4892_s2 = sld [smem:[#allocation36_spill]]  ;;  %s4894_s30 = sld [smem:[#allocation44_spill]] }
 0x96e   : > { %s2044_s20 = sshll.u32 %s4174_s10, 4  ;;  %s4895_s16 = sld [smem:[#allocation63_spill]]  ;;  %s4619_s20 = int_to_ptr.vmem [resolvable:$true] %s2044_s20 }
 0x96f   : > { %s4628_s13 = scalar_lea.sflag [#allocation10], %s514_s24  ;;  %s3335_s18 = scalar_lea.vmem %s4619_s20, 1024 }
 0x970   : > { %p3336_p7 = scmp.ne.s32.totalorder %s4619_s20, %s3335_s18  ;;  %s3576_s10 = smov [#allocation19]  }
 0x971   : > { %s3339_s12 = sshll.u32 %s3576_s10, 4  ;;  %s3340_s12 = int_to_ptr.vmem [resolvable:$false] %s3339_s12 }
 0x972   : > { %s2329_s9 = sshll.u32 %s4890_s7, 3  ;;  %s2330_s19 = sshll.u32 %s4891_s6, 4 }
 0x973   : > { %s2331_s14 = sshll.u32 %s4892_s2, 6  ;;  %s2039_s11 = sadd.s32 %s2330_s19, %s2329_s9 }
 0x974   : > { %s2041_s23 = sadd.s32 %s2331_s14, %s2039_s11  ;;  %s4896_s0 = smov %s4895_s16 }
 0x975   : > { %s2332_s3 = sshll.u32 %s2041_s23, 7  ;;  %p4897_p3 = scmp.ne.s32.totalorder %s4894_s30, 0 }
 0x976   : > { %s4624_s25 = scalar_lea.hbm %s4895_s16, %s2332_s3  ;;  %s3341_s7 = scalar_lea.vmem %s3340_s12, 2048 }
 0x977   : > { %p3337_p11 = pnand %p3336_p7, %p4897_p3  ;;  %p3342_p4 = scmp.lt.s32.totalorder %s4619_s20, %s3340_s12 }
 0x978   : > { %p3343_p1 = scmp.lt.s32.totalorder %s3341_s7, %s3335_s18 }
 0x979   : > { %p3338_p10 = pneg %p3337_p11 }
 0x97a   : > { %p3344_p13 = por %p3343_p1, %p3342_p4 }
 0x97c   : > { %p3345_p6 = pnand %p3344_p13, %p3338_p10 }
 0x97e   : > { %3348 = shalt.err (!%p3345_p6)
}
 0x97f   : > { %s3349_s24 = scalar_lea.hbm %s4624_s25, 1024  ;;  %s3353_s27 = scalar_lea.hbm %s4896_s0, 16384 }
 0x980   : > { %p3350_p2 = scmp.ne.s32.totalorder %s4624_s25, %s3349_s24  ;;  %p3354_p12 = scmp.lt.u32.totalorder %s4624_s25, %s4896_s0 }
 0x981   : > { %p3355_p8 = scmp.lt.u32.totalorder %s3353_s27, %s3349_s24  ;;  %p3357_p7 = scmp.lt.u32.totalorder %s3349_s24, %s4624_s25 }
 0x982   : > { %p3351_p0 = pnand %p3350_p2, %p4897_p3 }
 0x983   : > { %p3356_p5 = por %p3355_p8, %p3354_p12 }
 0x984   : > { %p3352_p9 = pneg %p3351_p0 }
 0x985   : > { %p3358_p11 = por %p3357_p7, %p3356_p5 }
 0x987   : > { %p3359_p10 = pnand %p3358_p11, %p3352_p9 }
 0x989   : > { %3362 = shalt.err (!%p3359_p10)
}
 0x98a   : > { %s3577_s14 = smov 128   ;;  %s3578_s11 = smov 8  }
 0x98b   : > { %2800 = dma.vmem_to_hbm [thread:$0]  (%p4897_p3), %s4619_s20, 1024, %s4624_s25, %s4628_s13, %s3577_s14, %s3577_s14, %s3578_s11  }
 0x98c PF: > { %s4898_s23 = sld [smem:[#allocation28_spill]]  ;;  %s4899_s3 = sld [smem:[#allocation45_spill]] }
 0x98d   : > { %p2834_p4 = scmp.ge.s32.totalorder %s3561_s21, 2 }
 0x992   : > { %s2059_s15 = sand.u32 1, %s4898_s23   ;;  %p4900_p1 = scmp.ne.s32.totalorder %s4899_s3, 0 }
 0x993   : > { %s2060_s17 = scalar_lea.sflag [#allocation10], %s2059_s15 }
 0x994   : > { %p2826_p13 = pnand %p2834_p4, %p4900_p1 }
 0x996   : > { %3476 = dma.done.wait (!%p2826_p13), %s2060_s17, 1024  }
 0x997   : > { %3478 = vsyncadd (!%p2826_p13), %s2060_s17, 4294966272  ;;  %s27_s21 = sadd.s32 1, %s3561_s21   ;;  %s4902_s24 = sld [smem:[#allocation29_spill]] }
 0x998   : > { %p4657_p6 = scmp.ge.s32.totalorder %s27_s21, 34   ;;  %s4903_s30 = sld [smem:[#allocation55_spill]] }
 0x999   : > { %s4904_s20 = sld [smem:[#allocation30_spill]]  ;;  %s4905_s9 = sld [smem:[#allocation54_spill]] }
 0x99a   : > { %s4906_s10 = sld [smem:[#allocation31_spill]]  ;;  %s4907_s11 = sld [smem:[#allocation32_spill]] }
 0x99b   : > { %s4908_s12 = sld [smem:[#allocation53_spill]]  ;;  %s4910_s14 = sld [smem:[#allocation38_spill]] }
 0x99c   : > { %s4909_s13 = sld [smem:[#allocation37_spill]]  ;;  %s4911_s15 = sld [smem:[#allocation39_spill]] }
 0x99d   : > { %s4912_s18 = sld [smem:[#allocation40_spill]]  ;;  %s4913_s17 = sld [smem:[#allocation48_spill]] }
 0x99e   : > { %s4914_s25 = smov %s3489_s26  ;;  %s4915_s7 = sld [smem:[#allocation49_spill]] }
 0x99f   : > { %s4916_s26 = smov %s3854_s5  ;;  %s4917_s19 = sld [smem:[#allocation51_spill]] }
 0x9a0   : > { %s4918_s27 = smov %s3497_s28  ;;  %s4919_s6 = sld [smem:[#allocation52_spill]] }
 0x9a1   : > { %s4920_s28 = smov %s3501_s29  ;;  %s4921_s29 = smov %s4903_s30 }
 0x9a2   : > { %s4923_s30 = smov %s3509_s8  ;;  %s4924_s8 = smov %s4904_s20 }
 0x9a3   : > { %s4925_s16 = smov %s4912_s18  ;;  %26 = sbr.rel (!%p4657_p6) target bundleno = 26 (0x1a), region = 167 }
 0x9a4   : > { %s4926_s18 = smov %s4915_s7 }
 0x9a6   : > { %s4927_s20 = smov %s4919_s6 }
 0x9aa   :  { %2065 = vsyncpa [#allocation9], 1 }
 0x9ab   :  { %2067 = vsyncpa [#allocation9 + $0x1], 1 }
 0x9ac   :  { %2068 = vsyncpa [#allocation12], 1 }
 0x9ad   :  { %2070 = vsyncpa [#allocation12 + $0x1], 1 }
 0x9ae   :  { %2071 = vsyncpa [#allocation15], 1 }
 0x9af   :  { %2072 = vsyncpa [#allocation10], 1 }
 0x9b0   :  { %2074 = vsyncpa [#allocation10 + $0x1], 1 }

</bundles_post_ra>
